<compile_context>
chip_gen: v7x
topology: tpu7x:2x2x1
jax: 0.10.0
libtpu: 0.0.40
codegen_flags: <defaults>
</compile_context>

<pallas_src>
import jax
import jax.numpy as jnp
from jax import lax
from jax.experimental import pallas as pl
from jax.experimental.pallas import tpu as pltpu


_NEG = -3.0e38  # effectively -inf for f32 max-pool padding (frame-pool pass only)


def _round_up(x, m):
    return ((x + m - 1) // m) * m


def _sl(start, size, stride):
    return pl.ds(start, size) if stride == 1 else pl.ds(start, size, stride)


# --------------------------------------------------------------------------
# Fused Conv3d (+ optional bias/activation) + spatial MaxPool, one pallas_call
# --------------------------------------------------------------------------

def conv3d_spatial_maxpool(x_pad, w_taps, bias, *, batch, ksize, strides, pool,
                           act=None):
    """x_pad : (batch*Fp, Hp, Wp, Cin)  zero-padded activation, channels-last,
               with batch and (padded) frame dims folded into the leading dim.
       w_taps: (kf*kh*kw, Cin, Cpad)    per-tap weight matrices, Cpad % 128 == 0.
       bias  : None or (1, Cpad) float32 (padding channels must be 0).
       pool  : None or (pool_k, pool_s, pool_p) applied to H and W only.
       act   : None or an elementwise jnp callable (applied before the pool).
       Returns (batch*Fo, OH, OW, Cpad) float32."""
    BFp, Hp, Wp, Cin = x_pad.shape
    Fp = BFp // batch
    kf, kh, kw = ksize
    sf, sh, sw = strides
    ntaps, cin_w, Cpad = w_taps.shape
    assert ntaps == kf * kh * kw and cin_w == Cin and Cpad % 128 == 0

    Fo = (Fp - kf) // sf + 1
    Ho = (Hp - kh) // sh + 1
    Wo = (Wp - kw) // sw + 1
    if pool is not None:
        pk, ps, pp = pool
        OH = (Ho + 2 * pp - pk) // ps + 1
        OW = (Wo + 2 * pp - pk) // ps + 1
    else:
        OH, OW = Ho, Wo

    has_bias = bias is not None

    # TODO(synk): very large feature maps (e.g. 224x224 first layer) would need an
    # extra H-tiling grid axis with a pooling halo; fine for the sizes used here.

    def kernel(*refs):
        x_refs = refs[:kf]          # kf frame slabs, each (1, Hp, Wp, Cin)
        w_ref = refs[kf]            # (ntaps, Cin, Cpad)
        idx = kf + 1
        if has_bias:
            b_ref = refs[idx]       # (1, Cpad)
            idx += 1
        o_ref = refs[idx]           # (1, OH, OW, Cpad)

        # ---- Conv3d: accumulate per-tap MXU matmuls (im2col never hits HBM) ----
        acc = jnp.zeros((Ho * Wo, Cpad), jnp.float32)
        t = 0
        for i in range(kf):
            for j in range(kh):
                for k in range(kw):
                    patch = x_refs[i][0, _sl(j, Ho, sh), _sl(k, Wo, sw), :]
                    acc = acc + jnp.dot(
                        patch.reshape(Ho * Wo, Cin), w_ref[t],
                        preferred_element_type=jnp.float32)
                    t += 1
        if has_bias:
            acc = acc + b_ref[...]              # (1, Cpad) broadcasts over rows
        if act is not None:
            acc = act(acc)
        y = acc.reshape(Ho, Wo, Cpad)

        if pool is None:
            o_ref[0] = y.astype(o_ref.dtype)
            return

        # ---- Spatial max-pool epilogue (conv tile still resident in VMEM). ----
        # Clamped windows == implicit -inf padding; every window overlaps at
        # least one valid element for any PyTorch-legal padding <= kernel // 2.
        rows = []
        for po in range(OH):
            lo = max(0, po * ps - pp)
            hi = min(Ho, po * ps - pp + pk)
            assert hi > lo, "max-pool window entirely inside padding"
            rows.append(jnp.max(y[lo:hi], axis=0))          # (Wo, Cpad)
        hp = jnp.stack(rows, axis=0)                        # (OH, Wo, Cpad)
        for qo in range(OW):
            lo = max(0, qo * ps - pp)
            hi = min(Wo, qo * ps - pp + pk)
            assert hi > lo, "max-pool window entirely inside padding"
            o_ref[0, :, qo, :] = jnp.max(
                hp[:, lo:hi, :], axis=1).astype(o_ref.dtype)

    in_specs = [
        pl.BlockSpec((1, Hp, Wp, Cin),
                     (lambda b, f, i=i: (b * Fp + f * sf + i, 0, 0, 0)))
        for i in range(kf)
    ]
    in_specs.append(pl.BlockSpec((ntaps, Cin, Cpad), lambda b, f: (0, 0, 0)))
    inputs = [x_pad] * kf + [w_taps]
    if has_bias:
        in_specs.append(pl.BlockSpec((1, Cpad), lambda b, f: (0, 0)))
        inputs.append(bias)

    return pl.pallas_call(
        kernel,
        out_shape=jax.ShapeDtypeStruct((batch * Fo, OH, OW, Cpad), jnp.float32),
        grid_spec=pltpu.PrefetchScalarGridSpec(
            num_scalar_prefetch=0,
            grid=(batch, Fo),
            in_specs=in_specs,
            out_specs=pl.BlockSpec((1, OH, OW, Cpad),
                                   lambda b, f: (b * Fo + f, 0, 0, 0)),
        ),
        compiler_params=pltpu.CompilerParams(
            dimension_semantics=("parallel", "parallel"),
            vmem_limit_bytes=32 * 1024 * 1024,
        ),
    )(*inputs)


# --------------------------------------------------------------------------
# Frame-direction max-pool (only for non-default frame-pooling configs)
# --------------------------------------------------------------------------

def frame_maxpool(y, fkp, fps, fpp):
    """y: (B, F, H, W, C) -> (B, Fo, H, W, C), max over frame windows."""
    B, F, H, W, C = y.shape
    yp = jnp.pad(y, ((0, 0), (fpp, fpp), (0, 0), (0, 0), (0, 0)),
                 constant_values=_NEG)
    Fp = F + 2 * fpp
    Fo = (Fp - fkp) // fps + 1
    yf = yp.reshape(B * Fp, H, W, C)

    def kernel(*refs):
        x_refs, o_ref = refs[:fkp], refs[fkp]
        m = x_refs[0][...]
        for r in x_refs[1:]:
            m = jnp.maximum(m, r[...])
        o_ref[...] = m

    in_specs = [
        pl.BlockSpec((1, H, W, C),
                     (lambda b, f, i=i: (b * Fp + f * fps + i, 0, 0, 0)))
        for i in range(fkp)
    ]
    out = pl.pallas_call(
        kernel,
        out_shape=jax.ShapeDtypeStruct((B * Fo, H, W, C), y.dtype),
        grid_spec=pltpu.PrefetchScalarGridSpec(
            num_scalar_prefetch=0,
            grid=(B, Fo),
            in_specs=in_specs,
            out_specs=pl.BlockSpec((1, H, W, C),
                                   lambda b, f: (b * Fo + f, 0, 0, 0)),
        ),
        compiler_params=pltpu.CompilerParams(
            dimension_semantics=("parallel", "parallel"),
            vmem_limit_bytes=32 * 1024 * 1024,
        ),
    )(*([yf] * fkp))
    return out.reshape(B, Fo, H, W, C)


# --------------------------------------------------------------------------
# Tokenizer (JAX/Pallas port of the PyTorch module)
# --------------------------------------------------------------------------

class TokenizerPallas:
    def __init__(self, frame_kernel_size, kernel_size, stride, padding,
                 frame_stride=1, frame_pooling_stride=1,
                 frame_pooling_kernel_size=1, pooling_kernel_size=3,
                 pooling_stride=2, pooling_padding=1, n_conv_layers=1,
                 n_input_channels=3, n_output_channels=64, in_planes=64,
                 activation=None, max_pool=True, conv_bias=False, key=None):
        if activation is None:
            self.activation_fn = None
        elif isinstance(activation, str):
            if activation.lower() != "relu":
                raise NotImplementedError("only 'relu' supported as a string")
            self.activation_fn = lambda v: jnp.maximum(v, 0.0)
        elif callable(activation):
            self.activation_fn = activation  # elementwise jnp callable
        else:
            raise NotImplementedError("activation must be None, 'relu' or callable")

        self.frame_kernel_size = frame_kernel_size
        self.kernel_size = kernel_size
        self.stride = stride
        self.padding = padding
        self.frame_stride = frame_stride
        self.frame_pooling_stride = frame_pooling_stride
        self.frame_pooling_kernel_size = frame_pooling_kernel_size
        self.pooling_kernel_size = pooling_kernel_size
        self.pooling_stride = pooling_stride
        self.pooling_padding = pooling_padding
        self.max_pool = max_pool
        self.n_output_channels = n_output_channels

        n_filter_list = ([n_input_channels]
                         + [in_planes for _ in range(n_conv_layers - 1)]
                         + [n_output_channels])
        key = jax.random.PRNGKey(42) if key is None else key
        self.weights = []                       # PyTorch layout (Cout, Cin, kf, kh, kw)
        self.biases = [] if conv_bias else None
        for cin, cout in zip(n_filter_list[:-1], n_filter_list[1:]):
            key, sub = jax.random.split(key)
            fan_in = cin * frame_kernel_size * kernel_size * kernel_size
            std = (2.0 / fan_in) ** 0.5          # kaiming_normal_
            self.weights.append(std * jax.random.normal(
                sub, (cout, cin, frame_kernel_size, kernel_size, kernel_size),
                dtype=jnp.float32))
            if conv_bias:
                key, sub_b = jax.random.split(key)
                bound = 1.0 / (fan_in ** 0.5)    # PyTorch default bias init
                self.biases.append(jax.random.uniform(
                    sub_b, (cout,), jnp.float32, -bound, bound))

    def __call__(self, x_ncdhw):
        # x_ncdhw: (B, C, F, H, W), exactly like the PyTorch module's input.
        kf = self.frame_kernel_size
        kh = kw = self.kernel_size
        sf, sh, sw = self.frame_stride, self.stride, self.stride
        pf, ph, pw = kf // 2, self.padding, self.padding

        y = jnp.transpose(x_ncdhw, (0, 2, 3, 4, 1)).astype(jnp.float32)  # BFHWC
        biases = (self.biases if self.biases is not None
                  else [None] * len(self.weights))
        for w, b in zip(self.weights, biases):
            cout, cin = int(w.shape[0]), int(w.shape[1])
            cin_have = int(y.shape[-1])        # may already be lane-padded
            cin_pad = _round_up(cin_have, 8)   # sublane-friendly contraction dim
            cpad = _round_up(cout, 128)        # lane-dense stores / full MXU N

            # (Cout, Cin, kf, kh, kw) -> (taps, Cin, Cout), zero-pad channels.
            w_taps = jnp.transpose(w, (2, 3, 4, 1, 0)).reshape(
                kf * kh * kw, cin, cout)
            w_taps = jnp.pad(
                w_taps, ((0, 0), (0, cin_pad - cin), (0, cpad - cout)))
            bias_arg = None
            if b is not None:
                bias_arg = jnp.pad(b, (0, cpad - cout)).reshape(1, cpad)

            # One cheap pad of the (small) activation: conv zero-padding plus
            # channel padding; fold B and F so Pallas blocks stay rank-4.
            y_pad = jnp.pad(y, ((0, 0), (pf, pf), (ph, ph), (pw, pw),
                                (0, cin_pad - cin_have)))
            B, Fp, Hp, Wp, _ = y_pad.shape
            pool = ((self.pooling_kernel_size, self.pooling_stride,
                     self.pooling_padding) if self.max_pool else None)

            out = conv3d_spatial_maxpool(
                y_pad.reshape(B * Fp, Hp, Wp, cin_pad), w_taps, bias_arg,
                batch=B, ksize=(kf, kh, kw), strides=(sf, sh, sw), pool=pool,
                act=self.activation_fn)
            Fo = out.shape[0] // B
            y = out.reshape(B, Fo, out.shape[1], out.shape[2], cpad)

            if self.max_pool and (self.frame_pooling_kernel_size != 1
                                  or self.frame_pooling_stride != 1):
                y = frame_maxpool(y, self.frame_pooling_kernel_size,
                                  self.frame_pooling_stride,
                                  self.frame_pooling_kernel_size // 2)

        B, F, H, W, Cp = y.shape
        # == rearrange('b c f h w -> b (f h w) c'); drop channel padding last.
        return y.reshape(B, F * H * W, Cp)[:, :, :self.n_output_channels]


# --------------------------------------------------------------------------
# Pure-JAX reference (for correctness check only)
# --------------------------------------------------------------------------

def reference_forward(tok, x_ncdhw):
    y = jnp.transpose(x_ncdhw, (0, 2, 3, 4, 1)).astype(jnp.float32)
    biases = tok.biases if tok.biases is not None else [None] * len(tok.weights)
    for w, b in zip(tok.weights, biases):
        w_dhwio = jnp.transpose(w, (2, 3, 4, 1, 0))
        y = lax.conv_general_dilated(
            y, w_dhwio,
            window_strides=(tok.frame_stride, tok.stride, tok.stride),
            padding=[(tok.frame_kernel_size // 2,) * 2,
                     (tok.padding,) * 2, (tok.padding,) * 2],
            dimension_numbers=("NDHWC", "DHWIO", "NDHWC"),
            precision=lax.Precision.HIGHEST,
        )
        if b is not None:
            y = y + b.reshape(1, 1, 1, 1, -1)
        if tok.activation_fn is not None:
            y = tok.activation_fn(y)
        if tok.max_pool:
            y = lax.reduce_window(
                y, -jnp.inf, lax.max,
                window_dimensions=(1, tok.frame_pooling_kernel_size,
                                   tok.pooling_kernel_size,
                                   tok.pooling_kernel_size, 1),
                window_strides=(1, tok.frame_pooling_stride,
                                tok.pooling_stride, tok.pooling_stride, 1),
                padding=((0, 0), (tok.frame_pooling_kernel_size // 2,) * 2,
                         (tok.pooling_padding,) * 2,
                         (tok.pooling_padding,) * 2, (0, 0)),
            )
    B, F, H, W, C = y.shape
    return y.reshape(B, F * H * W, C)


if __name__ == "__main__":
    # Deterministic small input: batch=2, C_in=3, frames=4, H=W=16  (B,C,F,H,W).
    key = jax.random.PRNGKey(0)
    x = jax.random.normal(key, (2, 3, 4, 16, 16), dtype=jnp.float32)

    # --- Config 1: module defaults (single layer, no bias, no activation). ---
    tok1 = TokenizerPallas(
        frame_kernel_size=3, kernel_size=3, stride=1, padding=1,
        n_conv_layers=1, n_input_channels=3, n_output_channels=32,
        in_planes=32, max_pool=True, key=jax.random.PRNGKey(1),
    )
    out1 = jax.block_until_ready(jax.jit(tok1.__call__)(x))
    assert out1.shape == (2, 4 * 8 * 8, 32), out1.shape
    ref1 = jax.block_until_ready(reference_forward(tok1, x))
    err1 = float(jnp.max(jnp.abs(out1 - ref1)))
    assert jnp.allclose(out1, ref1, atol=2e-3, rtol=2e-3), err1

    # --- Config 2: two layers, conv bias + ReLU + frame pooling. ---
    tok2 = TokenizerPallas(
        frame_kernel_size=3, kernel_size=3, stride=1, padding=1,
        frame_pooling_kernel_size=3, frame_pooling_stride=1,
        n_conv_layers=2, n_input_channels=3, n_output_channels=64,
        in_planes=32, max_pool=True, activation="relu", conv_bias=True,
        key=jax.random.PRNGKey(2),
    )
    out2 = jax.block_until_ready(jax.jit(tok2.__call__)(x))
    assert out2.shape == (2, 4 * 4 * 4, 64), out2.shape
    ref2 = jax.block_until_ready(reference_forward(tok2, x))
    err2 = float(jnp.max(jnp.abs(out2 - ref2)))
    assert jnp.allclose(out2, ref2, atol=5e-3, rtol=5e-3), err2

    print("KERNEL_OK")
</pallas_src>

<mosaic_0001>
module attributes {stable_mosaic.version = 11 : i64} {
  func.func @kernel(%arg0: i32, %arg1: i32, %arg2: memref<1x18x18x8xf32, #tpu.memory_space<vmem>>, %arg3: memref<1x18x18x8xf32, #tpu.memory_space<vmem>>, %arg4: memref<1x18x18x8xf32, #tpu.memory_space<vmem>>, %arg5: memref<27x8x128xf32, #tpu.memory_space<vmem>>, %arg6: memref<1x8x8x128xf32, #tpu.memory_space<vmem>>) attributes {dimension_semantics = [#tpu.dimension_semantics<parallel>, #tpu.dimension_semantics<parallel>], iteration_bounds = array<i64: 2, 4>, scalar_prefetch = 0 : i64, scratch_operands = 0 : i64, tpu.core_type = #tpu.core_type<tc>, window_params = [{transform_indices = @transform_0, window_bounds = array<i64: 1, 18, 18, 8>}, {transform_indices = @transform_1, window_bounds = array<i64: 1, 18, 18, 8>}, {transform_indices = @transform_2, window_bounds = array<i64: 1, 18, 18, 8>}, {pipeline_mode = #tpu.pipeline_mode<synchronous>, transform_indices = @transform_3, window_bounds = array<i64: 27, 8, 128>}, {transform_indices = @transform_4, window_bounds = array<i64: 1, 8, 8, 128>}]} {
    %cst = arith.constant 0.000000e+00 : f32
    %0 = vector.broadcast %cst : f32 to vector<256x128xf32>
    %c0 = arith.constant 0 : index
    %c0_0 = arith.constant 0 : index
    %c0_1 = arith.constant 0 : index
    %c0_2 = arith.constant 0 : index
    %1 = vector.load %arg2[%c0, %c0_0, %c0_1, %c0_2] : memref<1x18x18x8xf32, #tpu.memory_space<vmem>>, vector<1x16x16x8xf32>
    %2 = vector.shape_cast %1 : vector<1x16x16x8xf32> to vector<16x16x8xf32>
    %3 = vector.shape_cast %2 : vector<16x16x8xf32> to vector<256x8xf32>
    %c0_3 = arith.constant 0 : index
    %c0_4 = arith.constant 0 : index
    %c0_5 = arith.constant 0 : index
    %4 = vector.load %arg5[%c0_3, %c0_4, %c0_5] : memref<27x8x128xf32, #tpu.memory_space<vmem>>, vector<1x8x128xf32>
    %5 = vector.shape_cast %4 : vector<1x8x128xf32> to vector<8x128xf32>
    %cst_6 = arith.constant dense<0.000000e+00> : vector<256x128xf32>
    %6 = tpu.matmul %3, %5, %cst_6 {dimension_numbers = #tpu.dot_dimension_numbers<[1], [0], [0], [1], [0, 0, 1, 1], [], []>} : vector<256x8xf32>, vector<8x128xf32>, vector<256x128xf32> -> vector<256x128xf32>
    %7 = arith.addf %0, %6 : vector<256x128xf32>
    %c0_7 = arith.constant 0 : index
    %c0_8 = arith.constant 0 : index
    %c1 = arith.constant 1 : index
    %c0_9 = arith.constant 0 : index
    %8 = vector.load %arg2[%c0_7, %c0_8, %c1, %c0_9] : memref<1x18x18x8xf32, #tpu.memory_space<vmem>>, vector<1x16x16x8xf32>
    %9 = vector.shape_cast %8 : vector<1x16x16x8xf32> to vector<16x16x8xf32>
    %10 = vector.shape_cast %9 : vector<16x16x8xf32> to vector<256x8xf32>
    %c1_10 = arith.constant 1 : index
    %c0_11 = arith.constant 0 : index
    %c0_12 = arith.constant 0 : index
    %11 = vector.load %arg5[%c1_10, %c0_11, %c0_12] : memref<27x8x128xf32, #tpu.memory_space<vmem>>, vector<1x8x128xf32>
    %12 = vector.shape_cast %11 : vector<1x8x128xf32> to vector<8x128xf32>
    %cst_13 = arith.constant dense<0.000000e+00> : vector<256x128xf32>
    %13 = tpu.matmul %10, %12, %cst_13 {dimension_numbers = #tpu.dot_dimension_numbers<[1], [0], [0], [1], [0, 0, 1, 1], [], []>} : vector<256x8xf32>, vector<8x128xf32>, vector<256x128xf32> -> vector<256x128xf32>
    %14 = arith.addf %7, %13 : vector<256x128xf32>
    %c0_14 = arith.constant 0 : index
    %c0_15 = arith.constant 0 : index
    %c2 = arith.constant 2 : index
    %c0_16 = arith.constant 0 : index
    %15 = vector.load %arg2[%c0_14, %c0_15, %c2, %c0_16] : memref<1x18x18x8xf32, #tpu.memory_space<vmem>>, vector<1x16x16x8xf32>
    %16 = vector.shape_cast %15 : vector<1x16x16x8xf32> to vector<16x16x8xf32>
    %17 = vector.shape_cast %16 : vector<16x16x8xf32> to vector<256x8xf32>
    %c2_17 = arith.constant 2 : index
    %c0_18 = arith.constant 0 : index
    %c0_19 = arith.constant 0 : index
    %18 = vector.load %arg5[%c2_17, %c0_18, %c0_19] : memref<27x8x128xf32, #tpu.memory_space<vmem>>, vector<1x8x128xf32>
    %19 = vector.shape_cast %18 : vector<1x8x128xf32> to vector<8x128xf32>
    %cst_20 = arith.constant dense<0.000000e+00> : vector<256x128xf32>
    %20 = tpu.matmul %17, %19, %cst_20 {dimension_numbers = #tpu.dot_dimension_numbers<[1], [0], [0], [1], [0, 0, 1, 1], [], []>} : vector<256x8xf32>, vector<8x128xf32>, vector<256x128xf32> -> vector<256x128xf32>
    %21 = arith.addf %14, %20 : vector<256x128xf32>
    %c0_21 = arith.constant 0 : index
    %c1_22 = arith.constant 1 : index
    %c0_23 = arith.constant 0 : index
    %c0_24 = arith.constant 0 : index
    %22 = vector.load %arg2[%c0_21, %c1_22, %c0_23, %c0_24] : memref<1x18x18x8xf32, #tpu.memory_space<vmem>>, vector<1x16x16x8xf32>
    %23 = vector.shape_cast %22 : vector<1x16x16x8xf32> to vector<16x16x8xf32>
    %24 = vector.shape_cast %23 : vector<16x16x8xf32> to vector<256x8xf32>
    %c3 = arith.constant 3 : index
    %c0_25 = arith.constant 0 : index
    %c0_26 = arith.constant 0 : index
    %25 = vector.load %arg5[%c3, %c0_25, %c0_26] : memref<27x8x128xf32, #tpu.memory_space<vmem>>, vector<1x8x128xf32>
    %26 = vector.shape_cast %25 : vector<1x8x128xf32> to vector<8x128xf32>
    %cst_27 = arith.constant dense<0.000000e+00> : vector<256x128xf32>
    %27 = tpu.matmul %24, %26, %cst_27 {dimension_numbers = #tpu.dot_dimension_numbers<[1], [0], [0], [1], [0, 0, 1, 1], [], []>} : vector<256x8xf32>, vector<8x128xf32>, vector<256x128xf32> -> vector<256x128xf32>
    %28 = arith.addf %21, %27 : vector<256x128xf32>
    %c0_28 = arith.constant 0 : index
    %c1_29 = arith.constant 1 : index
    %c1_30 = arith.constant 1 : index
    %c0_31 = arith.constant 0 : index
    %29 = vector.load %arg2[%c0_28, %c1_29, %c1_30, %c0_31] : memref<1x18x18x8xf32, #tpu.memory_space<vmem>>, vector<1x16x16x8xf32>
    %30 = vector.shape_cast %29 : vector<1x16x16x8xf32> to vector<16x16x8xf32>
    %31 = vector.shape_cast %30 : vector<16x16x8xf32> to vector<256x8xf32>
    %c4 = arith.constant 4 : index
    %c0_32 = arith.constant 0 : index
    %c0_33 = arith.constant 0 : index
    %32 = vector.load %arg5[%c4, %c0_32, %c0_33] : memref<27x8x128xf32, #tpu.memory_space<vmem>>, vector<1x8x128xf32>
    %33 = vector.shape_cast %32 : vector<1x8x128xf32> to vector<8x128xf32>
    %cst_34 = arith.constant dense<0.000000e+00> : vector<256x128xf32>
    %34 = tpu.matmul %31, %33, %cst_34 {dimension_numbers = #tpu.dot_dimension_numbers<[1], [0], [0], [1], [0, 0, 1, 1], [], []>} : vector<256x8xf32>, vector<8x128xf32>, vector<256x128xf32> -> vector<256x128xf32>
    %35 = arith.addf %28, %34 : vector<256x128xf32>
    %c0_35 = arith.constant 0 : index
    %c1_36 = arith.constant 1 : index
    %c2_37 = arith.constant 2 : index
    %c0_38 = arith.constant 0 : index
    %36 = vector.load %arg2[%c0_35, %c1_36, %c2_37, %c0_38] : memref<1x18x18x8xf32, #tpu.memory_space<vmem>>, vector<1x16x16x8xf32>
    %37 = vector.shape_cast %36 : vector<1x16x16x8xf32> to vector<16x16x8xf32>
    %38 = vector.shape_cast %37 : vector<16x16x8xf32> to vector<256x8xf32>
    %c5 = arith.constant 5 : index
    %c0_39 = arith.constant 0 : index
    %c0_40 = arith.constant 0 : index
    %39 = vector.load %arg5[%c5, %c0_39, %c0_40] : memref<27x8x128xf32, #tpu.memory_space<vmem>>, vector<1x8x128xf32>
    %40 = vector.shape_cast %39 : vector<1x8x128xf32> to vector<8x128xf32>
    %cst_41 = arith.constant dense<0.000000e+00> : vector<256x128xf32>
    %41 = tpu.matmul %38, %40, %cst_41 {dimension_numbers = #tpu.dot_dimension_numbers<[1], [0], [0], [1], [0, 0, 1, 1], [], []>} : vector<256x8xf32>, vector<8x128xf32>, vector<256x128xf32> -> vector<256x128xf32>
    %42 = arith.addf %35, %41 : vector<256x128xf32>
    %c0_42 = arith.constant 0 : index
    %c2_43 = arith.constant 2 : index
    %c0_44 = arith.constant 0 : index
    %c0_45 = arith.constant 0 : index
    %43 = vector.load %arg2[%c0_42, %c2_43, %c0_44, %c0_45] : memref<1x18x18x8xf32, #tpu.memory_space<vmem>>, vector<1x16x16x8xf32>
    %44 = vector.shape_cast %43 : vector<1x16x16x8xf32> to vector<16x16x8xf32>
    %45 = vector.shape_cast %44 : vector<16x16x8xf32> to vector<256x8xf32>
    %c6 = arith.constant 6 : index
    %c0_46 = arith.constant 0 : index
    %c0_47 = arith.constant 0 : index
    %46 = vector.load %arg5[%c6, %c0_46, %c0_47] : memref<27x8x128xf32, #tpu.memory_space<vmem>>, vector<1x8x128xf32>
    %47 = vector.shape_cast %46 : vector<1x8x128xf32> to vector<8x128xf32>
    %cst_48 = arith.constant dense<0.000000e+00> : vector<256x128xf32>
    %48 = tpu.matmul %45, %47, %cst_48 {dimension_numbers = #tpu.dot_dimension_numbers<[1], [0], [0], [1], [0, 0, 1, 1], [], []>} : vector<256x8xf32>, vector<8x128xf32>, vector<256x128xf32> -> vector<256x128xf32>
    %49 = arith.addf %42, %48 : vector<256x128xf32>
    %c0_49 = arith.constant 0 : index
    %c2_50 = arith.constant 2 : index
    %c1_51 = arith.constant 1 : index
    %c0_52 = arith.constant 0 : index
    %50 = vector.load %arg2[%c0_49, %c2_50, %c1_51, %c0_52] : memref<1x18x18x8xf32, #tpu.memory_space<vmem>>, vector<1x16x16x8xf32>
    %51 = vector.shape_cast %50 : vector<1x16x16x8xf32> to vector<16x16x8xf32>
    %52 = vector.shape_cast %51 : vector<16x16x8xf32> to vector<256x8xf32>
    %c7 = arith.constant 7 : index
    %c0_53 = arith.constant 0 : index
    %c0_54 = arith.constant 0 : index
    %53 = vector.load %arg5[%c7, %c0_53, %c0_54] : memref<27x8x128xf32, #tpu.memory_space<vmem>>, vector<1x8x128xf32>
    %54 = vector.shape_cast %53 : vector<1x8x128xf32> to vector<8x128xf32>
    %cst_55 = arith.constant dense<0.000000e+00> : vector<256x128xf32>
    %55 = tpu.matmul %52, %54, %cst_55 {dimension_numbers = #tpu.dot_dimension_numbers<[1], [0], [0], [1], [0, 0, 1, 1], [], []>} : vector<256x8xf32>, vector<8x128xf32>, vector<256x128xf32> -> vector<256x128xf32>
    %56 = arith.addf %49, %55 : vector<256x128xf32>
    %c0_56 = arith.constant 0 : index
    %c2_57 = arith.constant 2 : index
    %c2_58 = arith.constant 2 : index
    %c0_59 = arith.constant 0 : index
    %57 = vector.load %arg2[%c0_56, %c2_57, %c2_58, %c0_59] : memref<1x18x18x8xf32, #tpu.memory_space<vmem>>, vector<1x16x16x8xf32>
    %58 = vector.shape_cast %57 : vector<1x16x16x8xf32> to vector<16x16x8xf32>
    %59 = vector.shape_cast %58 : vector<16x16x8xf32> to vector<256x8xf32>
    %c8 = arith.constant 8 : index
    %c0_60 = arith.constant 0 : index
    %c0_61 = arith.constant 0 : index
    %60 = vector.load %arg5[%c8, %c0_60, %c0_61] : memref<27x8x128xf32, #tpu.memory_space<vmem>>, vector<1x8x128xf32>
    %61 = vector.shape_cast %60 : vector<1x8x128xf32> to vector<8x128xf32>
    %cst_62 = arith.constant dense<0.000000e+00> : vector<256x128xf32>
    %62 = tpu.matmul %59, %61, %cst_62 {dimension_numbers = #tpu.dot_dimension_numbers<[1], [0], [0], [1], [0, 0, 1, 1], [], []>} : vector<256x8xf32>, vector<8x128xf32>, vector<256x128xf32> -> vector<256x128xf32>
    %63 = arith.addf %56, %62 : vector<256x128xf32>
    %c0_63 = arith.constant 0 : index
    %c0_64 = arith.constant 0 : index
    %c0_65 = arith.constant 0 : index
    %c0_66 = arith.constant 0 : index
    %64 = vector.load %arg3[%c0_63, %c0_64, %c0_65, %c0_66] : memref<1x18x18x8xf32, #tpu.memory_space<vmem>>, vector<1x16x16x8xf32>
    %65 = vector.shape_cast %64 : vector<1x16x16x8xf32> to vector<16x16x8xf32>
    %66 = vector.shape_cast %65 : vector<16x16x8xf32> to vector<256x8xf32>
    %c9 = arith.constant 9 : index
    %c0_67 = arith.constant 0 : index
    %c0_68 = arith.constant 0 : index
    %67 = vector.load %arg5[%c9, %c0_67, %c0_68] : memref<27x8x128xf32, #tpu.memory_space<vmem>>, vector<1x8x128xf32>
    %68 = vector.shape_cast %67 : vector<1x8x128xf32> to vector<8x128xf32>
    %cst_69 = arith.constant dense<0.000000e+00> : vector<256x128xf32>
    %69 = tpu.matmul %66, %68, %cst_69 {dimension_numbers = #tpu.dot_dimension_numbers<[1], [0], [0], [1], [0, 0, 1, 1], [], []>} : vector<256x8xf32>, vector<8x128xf32>, vector<256x128xf32> -> vector<256x128xf32>
    %70 = arith.addf %63, %69 : vector<256x128xf32>
    %c0_70 = arith.constant 0 : index
    %c0_71 = arith.constant 0 : index
    %c1_72 = arith.constant 1 : index
    %c0_73 = arith.constant 0 : index
    %71 = vector.load %arg3[%c0_70, %c0_71, %c1_72, %c0_73] : memref<1x18x18x8xf32, #tpu.memory_space<vmem>>, vector<1x16x16x8xf32>
    %72 = vector.shape_cast %71 : vector<1x16x16x8xf32> to vector<16x16x8xf32>
    %73 = vector.shape_cast %72 : vector<16x16x8xf32> to vector<256x8xf32>
    %c10 = arith.constant 10 : index
    %c0_74 = arith.constant 0 : index
    %c0_75 = arith.constant 0 : index
    %74 = vector.load %arg5[%c10, %c0_74, %c0_75] : memref<27x8x128xf32, #tpu.memory_space<vmem>>, vector<1x8x128xf32>
    %75 = vector.shape_cast %74 : vector<1x8x128xf32> to vector<8x128xf32>
    %cst_76 = arith.constant dense<0.000000e+00> : vector<256x128xf32>
    %76 = tpu.matmul %73, %75, %cst_76 {dimension_numbers = #tpu.dot_dimension_numbers<[1], [0], [0], [1], [0, 0, 1, 1], [], []>} : vector<256x8xf32>, vector<8x128xf32>, vector<256x128xf32> -> vector<256x128xf32>
    %77 = arith.addf %70, %76 : vector<256x128xf32>
    %c0_77 = arith.constant 0 : index
    %c0_78 = arith.constant 0 : index
    %c2_79 = arith.constant 2 : index
    %c0_80 = arith.constant 0 : index
    %78 = vector.load %arg3[%c0_77, %c0_78, %c2_79, %c0_80] : memref<1x18x18x8xf32, #tpu.memory_space<vmem>>, vector<1x16x16x8xf32>
    %79 = vector.shape_cast %78 : vector<1x16x16x8xf32> to vector<16x16x8xf32>
    %80 = vector.shape_cast %79 : vector<16x16x8xf32> to vector<256x8xf32>
    %c11 = arith.constant 11 : index
    %c0_81 = arith.constant 0 : index
    %c0_82 = arith.constant 0 : index
    %81 = vector.load %arg5[%c11, %c0_81, %c0_82] : memref<27x8x128xf32, #tpu.memory_space<vmem>>, vector<1x8x128xf32>
    %82 = vector.shape_cast %81 : vector<1x8x128xf32> to vector<8x128xf32>
    %cst_83 = arith.constant dense<0.000000e+00> : vector<256x128xf32>
    %83 = tpu.matmul %80, %82, %cst_83 {dimension_numbers = #tpu.dot_dimension_numbers<[1], [0], [0], [1], [0, 0, 1, 1], [], []>} : vector<256x8xf32>, vector<8x128xf32>, vector<256x128xf32> -> vector<256x128xf32>
    %84 = arith.addf %77, %83 : vector<256x128xf32>
    %c0_84 = arith.constant 0 : index
    %c1_85 = arith.constant 1 : index
    %c0_86 = arith.constant 0 : index
    %c0_87 = arith.constant 0 : index
    %85 = vector.load %arg3[%c0_84, %c1_85, %c0_86, %c0_87] : memref<1x18x18x8xf32, #tpu.memory_space<vmem>>, vector<1x16x16x8xf32>
    %86 = vector.shape_cast %85 : vector<1x16x16x8xf32> to vector<16x16x8xf32>
    %87 = vector.shape_cast %86 : vector<16x16x8xf32> to vector<256x8xf32>
    %c12 = arith.constant 12 : index
    %c0_88 = arith.constant 0 : index
    %c0_89 = arith.constant 0 : index
    %88 = vector.load %arg5[%c12, %c0_88, %c0_89] : memref<27x8x128xf32, #tpu.memory_space<vmem>>, vector<1x8x128xf32>
    %89 = vector.shape_cast %88 : vector<1x8x128xf32> to vector<8x128xf32>
    %cst_90 = arith.constant dense<0.000000e+00> : vector<256x128xf32>
    %90 = tpu.matmul %87, %89, %cst_90 {dimension_numbers = #tpu.dot_dimension_numbers<[1], [0], [0], [1], [0, 0, 1, 1], [], []>} : vector<256x8xf32>, vector<8x128xf32>, vector<256x128xf32> -> vector<256x128xf32>
    %91 = arith.addf %84, %90 : vector<256x128xf32>
    %c0_91 = arith.constant 0 : index
    %c1_92 = arith.constant 1 : index
    %c1_93 = arith.constant 1 : index
    %c0_94 = arith.constant 0 : index
    %92 = vector.load %arg3[%c0_91, %c1_92, %c1_93, %c0_94] : memref<1x18x18x8xf32, #tpu.memory_space<vmem>>, vector<1x16x16x8xf32>
    %93 = vector.shape_cast %92 : vector<1x16x16x8xf32> to vector<16x16x8xf32>
    %94 = vector.shape_cast %93 : vector<16x16x8xf32> to vector<256x8xf32>
    %c13 = arith.constant 13 : index
    %c0_95 = arith.constant 0 : index
    %c0_96 = arith.constant 0 : index
    %95 = vector.load %arg5[%c13, %c0_95, %c0_96] : memref<27x8x128xf32, #tpu.memory_space<vmem>>, vector<1x8x128xf32>
    %96 = vector.shape_cast %95 : vector<1x8x128xf32> to vector<8x128xf32>
    %cst_97 = arith.constant dense<0.000000e+00> : vector<256x128xf32>
    %97 = tpu.matmul %94, %96, %cst_97 {dimension_numbers = #tpu.dot_dimension_numbers<[1], [0], [0], [1], [0, 0, 1, 1], [], []>} : vector<256x8xf32>, vector<8x128xf32>, vector<256x128xf32> -> vector<256x128xf32>
    %98 = arith.addf %91, %97 : vector<256x128xf32>
    %c0_98 = arith.constant 0 : index
    %c1_99 = arith.constant 1 : index
    %c2_100 = arith.constant 2 : index
    %c0_101 = arith.constant 0 : index
    %99 = vector.load %arg3[%c0_98, %c1_99, %c2_100, %c0_101] : memref<1x18x18x8xf32, #tpu.memory_space<vmem>>, vector<1x16x16x8xf32>
    %100 = vector.shape_cast %99 : vector<1x16x16x8xf32> to vector<16x16x8xf32>
    %101 = vector.shape_cast %100 : vector<16x16x8xf32> to vector<256x8xf32>
    %c14 = arith.constant 14 : index
    %c0_102 = arith.constant 0 : index
    %c0_103 = arith.constant 0 : index
    %102 = vector.load %arg5[%c14, %c0_102, %c0_103] : memref<27x8x128xf32, #tpu.memory_space<vmem>>, vector<1x8x128xf32>
    %103 = vector.shape_cast %102 : vector<1x8x128xf32> to vector<8x128xf32>
    %cst_104 = arith.constant dense<0.000000e+00> : vector<256x128xf32>
    %104 = tpu.matmul %101, %103, %cst_104 {dimension_numbers = #tpu.dot_dimension_numbers<[1], [0], [0], [1], [0, 0, 1, 1], [], []>} : vector<256x8xf32>, vector<8x128xf32>, vector<256x128xf32> -> vector<256x128xf32>
    %105 = arith.addf %98, %104 : vector<256x128xf32>
    %c0_105 = arith.constant 0 : index
    %c2_106 = arith.constant 2 : index
    %c0_107 = arith.constant 0 : index
    %c0_108 = arith.constant 0 : index
    %106 = vector.load %arg3[%c0_105, %c2_106, %c0_107, %c0_108] : memref<1x18x18x8xf32, #tpu.memory_space<vmem>>, vector<1x16x16x8xf32>
    %107 = vector.shape_cast %106 : vector<1x16x16x8xf32> to vector<16x16x8xf32>
    %108 = vector.shape_cast %107 : vector<16x16x8xf32> to vector<256x8xf32>
    %c15 = arith.constant 15 : index
    %c0_109 = arith.constant 0 : index
    %c0_110 = arith.constant 0 : index
    %109 = vector.load %arg5[%c15, %c0_109, %c0_110] : memref<27x8x128xf32, #tpu.memory_space<vmem>>, vector<1x8x128xf32>
    %110 = vector.shape_cast %109 : vector<1x8x128xf32> to vector<8x128xf32>
    %cst_111 = arith.constant dense<0.000000e+00> : vector<256x128xf32>
    %111 = tpu.matmul %108, %110, %cst_111 {dimension_numbers = #tpu.dot_dimension_numbers<[1], [0], [0], [1], [0, 0, 1, 1], [], []>} : vector<256x8xf32>, vector<8x128xf32>, vector<256x128xf32> -> vector<256x128xf32>
    %112 = arith.addf %105, %111 : vector<256x128xf32>
    %c0_112 = arith.constant 0 : index
    %c2_113 = arith.constant 2 : index
    %c1_114 = arith.constant 1 : index
    %c0_115 = arith.constant 0 : index
    %113 = vector.load %arg3[%c0_112, %c2_113, %c1_114, %c0_115] : memref<1x18x18x8xf32, #tpu.memory_space<vmem>>, vector<1x16x16x8xf32>
    %114 = vector.shape_cast %113 : vector<1x16x16x8xf32> to vector<16x16x8xf32>
    %115 = vector.shape_cast %114 : vector<16x16x8xf32> to vector<256x8xf32>
    %c16 = arith.constant 16 : index
    %c0_116 = arith.constant 0 : index
    %c0_117 = arith.constant 0 : index
    %116 = vector.load %arg5[%c16, %c0_116, %c0_117] : memref<27x8x128xf32, #tpu.memory_space<vmem>>, vector<1x8x128xf32>
    %117 = vector.shape_cast %116 : vector<1x8x128xf32> to vector<8x128xf32>
    %cst_118 = arith.constant dense<0.000000e+00> : vector<256x128xf32>
    %118 = tpu.matmul %115, %117, %cst_118 {dimension_numbers = #tpu.dot_dimension_numbers<[1], [0], [0], [1], [0, 0, 1, 1], [], []>} : vector<256x8xf32>, vector<8x128xf32>, vector<256x128xf32> -> vector<256x128xf32>
    %119 = arith.addf %112, %118 : vector<256x128xf32>
    %c0_119 = arith.constant 0 : index
    %c2_120 = arith.constant 2 : index
    %c2_121 = arith.constant 2 : index
    %c0_122 = arith.constant 0 : index
    %120 = vector.load %arg3[%c0_119, %c2_120, %c2_121, %c0_122] : memref<1x18x18x8xf32, #tpu.memory_space<vmem>>, vector<1x16x16x8xf32>
    %121 = vector.shape_cast %120 : vector<1x16x16x8xf32> to vector<16x16x8xf32>
    %122 = vector.shape_cast %121 : vector<16x16x8xf32> to vector<256x8xf32>
    %c17 = arith.constant 17 : index
    %c0_123 = arith.constant 0 : index
    %c0_124 = arith.constant 0 : index
    %123 = vector.load %arg5[%c17, %c0_123, %c0_124] : memref<27x8x128xf32, #tpu.memory_space<vmem>>, vector<1x8x128xf32>
    %124 = vector.shape_cast %123 : vector<1x8x128xf32> to vector<8x128xf32>
    %cst_125 = arith.constant dense<0.000000e+00> : vector<256x128xf32>
    %125 = tpu.matmul %122, %124, %cst_125 {dimension_numbers = #tpu.dot_dimension_numbers<[1], [0], [0], [1], [0, 0, 1, 1], [], []>} : vector<256x8xf32>, vector<8x128xf32>, vector<256x128xf32> -> vector<256x128xf32>
    %126 = arith.addf %119, %125 : vector<256x128xf32>
    %c0_126 = arith.constant 0 : index
    %c0_127 = arith.constant 0 : index
    %c0_128 = arith.constant 0 : index
    %c0_129 = arith.constant 0 : index
    %127 = vector.load %arg4[%c0_126, %c0_127, %c0_128, %c0_129] : memref<1x18x18x8xf32, #tpu.memory_space<vmem>>, vector<1x16x16x8xf32>
    %128 = vector.shape_cast %127 : vector<1x16x16x8xf32> to vector<16x16x8xf32>
    %129 = vector.shape_cast %128 : vector<16x16x8xf32> to vector<256x8xf32>
    %c18 = arith.constant 18 : index
    %c0_130 = arith.constant 0 : index
    %c0_131 = arith.constant 0 : index
    %130 = vector.load %arg5[%c18, %c0_130, %c0_131] : memref<27x8x128xf32, #tpu.memory_space<vmem>>, vector<1x8x128xf32>
    %131 = vector.shape_cast %130 : vector<1x8x128xf32> to vector<8x128xf32>
    %cst_132 = arith.constant dense<0.000000e+00> : vector<256x128xf32>
    %132 = tpu.matmul %129, %131, %cst_132 {dimension_numbers = #tpu.dot_dimension_numbers<[1], [0], [0], [1], [0, 0, 1, 1], [], []>} : vector<256x8xf32>, vector<8x128xf32>, vector<256x128xf32> -> vector<256x128xf32>
    %133 = arith.addf %126, %132 : vector<256x128xf32>
    %c0_133 = arith.constant 0 : index
    %c0_134 = arith.constant 0 : index
    %c1_135 = arith.constant 1 : index
    %c0_136 = arith.constant 0 : index
    %134 = vector.load %arg4[%c0_133, %c0_134, %c1_135, %c0_136] : memref<1x18x18x8xf32, #tpu.memory_space<vmem>>, vector<1x16x16x8xf32>
    %135 = vector.shape_cast %134 : vector<1x16x16x8xf32> to vector<16x16x8xf32>
    %136 = vector.shape_cast %135 : vector<16x16x8xf32> to vector<256x8xf32>
    %c19 = arith.constant 19 : index
    %c0_137 = arith.constant 0 : index
    %c0_138 = arith.constant 0 : index
    %137 = vector.load %arg5[%c19, %c0_137, %c0_138] : memref<27x8x128xf32, #tpu.memory_space<vmem>>, vector<1x8x128xf32>
    %138 = vector.shape_cast %137 : vector<1x8x128xf32> to vector<8x128xf32>
    %cst_139 = arith.constant dense<0.000000e+00> : vector<256x128xf32>
    %139 = tpu.matmul %136, %138, %cst_139 {dimension_numbers = #tpu.dot_dimension_numbers<[1], [0], [0], [1], [0, 0, 1, 1], [], []>} : vector<256x8xf32>, vector<8x128xf32>, vector<256x128xf32> -> vector<256x128xf32>
    %140 = arith.addf %133, %139 : vector<256x128xf32>
    %c0_140 = arith.constant 0 : index
    %c0_141 = arith.constant 0 : index
    %c2_142 = arith.constant 2 : index
    %c0_143 = arith.constant 0 : index
    %141 = vector.load %arg4[%c0_140, %c0_141, %c2_142, %c0_143] : memref<1x18x18x8xf32, #tpu.memory_space<vmem>>, vector<1x16x16x8xf32>
    %142 = vector.shape_cast %141 : vector<1x16x16x8xf32> to vector<16x16x8xf32>
    %143 = vector.shape_cast %142 : vector<16x16x8xf32> to vector<256x8xf32>
    %c20 = arith.constant 20 : index
    %c0_144 = arith.constant 0 : index
    %c0_145 = arith.constant 0 : index
    %144 = vector.load %arg5[%c20, %c0_144, %c0_145] : memref<27x8x128xf32, #tpu.memory_space<vmem>>, vector<1x8x128xf32>
    %145 = vector.shape_cast %144 : vector<1x8x128xf32> to vector<8x128xf32>
    %cst_146 = arith.constant dense<0.000000e+00> : vector<256x128xf32>
    %146 = tpu.matmul %143, %145, %cst_146 {dimension_numbers = #tpu.dot_dimension_numbers<[1], [0], [0], [1], [0, 0, 1, 1], [], []>} : vector<256x8xf32>, vector<8x128xf32>, vector<256x128xf32> -> vector<256x128xf32>
    %147 = arith.addf %140, %146 : vector<256x128xf32>
    %c0_147 = arith.constant 0 : index
    %c1_148 = arith.constant 1 : index
    %c0_149 = arith.constant 0 : index
    %c0_150 = arith.constant 0 : index
    %148 = vector.load %arg4[%c0_147, %c1_148, %c0_149, %c0_150] : memref<1x18x18x8xf32, #tpu.memory_space<vmem>>, vector<1x16x16x8xf32>
    %149 = vector.shape_cast %148 : vector<1x16x16x8xf32> to vector<16x16x8xf32>
    %150 = vector.shape_cast %149 : vector<16x16x8xf32> to vector<256x8xf32>
    %c21 = arith.constant 21 : index
    %c0_151 = arith.constant 0 : index
    %c0_152 = arith.constant 0 : index
    %151 = vector.load %arg5[%c21, %c0_151, %c0_152] : memref<27x8x128xf32, #tpu.memory_space<vmem>>, vector<1x8x128xf32>
    %152 = vector.shape_cast %151 : vector<1x8x128xf32> to vector<8x128xf32>
    %cst_153 = arith.constant dense<0.000000e+00> : vector<256x128xf32>
    %153 = tpu.matmul %150, %152, %cst_153 {dimension_numbers = #tpu.dot_dimension_numbers<[1], [0], [0], [1], [0, 0, 1, 1], [], []>} : vector<256x8xf32>, vector<8x128xf32>, vector<256x128xf32> -> vector<256x128xf32>
    %154 = arith.addf %147, %153 : vector<256x128xf32>
    %c0_154 = arith.constant 0 : index
    %c1_155 = arith.constant 1 : index
    %c1_156 = arith.constant 1 : index
    %c0_157 = arith.constant 0 : index
    %155 = vector.load %arg4[%c0_154, %c1_155, %c1_156, %c0_157] : memref<1x18x18x8xf32, #tpu.memory_space<vmem>>, vector<1x16x16x8xf32>
    %156 = vector.shape_cast %155 : vector<1x16x16x8xf32> to vector<16x16x8xf32>
    %157 = vector.shape_cast %156 : vector<16x16x8xf32> to vector<256x8xf32>
    %c22 = arith.constant 22 : index
    %c0_158 = arith.constant 0 : index
    %c0_159 = arith.constant 0 : index
    %158 = vector.load %arg5[%c22, %c0_158, %c0_159] : memref<27x8x128xf32, #tpu.memory_space<vmem>>, vector<1x8x128xf32>
    %159 = vector.shape_cast %158 : vector<1x8x128xf32> to vector<8x128xf32>
    %cst_160 = arith.constant dense<0.000000e+00> : vector<256x128xf32>
    %160 = tpu.matmul %157, %159, %cst_160 {dimension_numbers = #tpu.dot_dimension_numbers<[1], [0], [0], [1], [0, 0, 1, 1], [], []>} : vector<256x8xf32>, vector<8x128xf32>, vector<256x128xf32> -> vector<256x128xf32>
    %161 = arith.addf %154, %160 : vector<256x128xf32>
    %c0_161 = arith.constant 0 : index
    %c1_162 = arith.constant 1 : index
    %c2_163 = arith.constant 2 : index
    %c0_164 = arith.constant 0 : index
    %162 = vector.load %arg4[%c0_161, %c1_162, %c2_163, %c0_164] : memref<1x18x18x8xf32, #tpu.memory_space<vmem>>, vector<1x16x16x8xf32>
    %163 = vector.shape_cast %162 : vector<1x16x16x8xf32> to vector<16x16x8xf32>
    %164 = vector.shape_cast %163 : vector<16x16x8xf32> to vector<256x8xf32>
    %c23 = arith.constant 23 : index
    %c0_165 = arith.constant 0 : index
    %c0_166 = arith.constant 0 : index
    %165 = vector.load %arg5[%c23, %c0_165, %c0_166] : memref<27x8x128xf32, #tpu.memory_space<vmem>>, vector<1x8x128xf32>
    %166 = vector.shape_cast %165 : vector<1x8x128xf32> to vector<8x128xf32>
    %cst_167 = arith.constant dense<0.000000e+00> : vector<256x128xf32>
    %167 = tpu.matmul %164, %166, %cst_167 {dimension_numbers = #tpu.dot_dimension_numbers<[1], [0], [0], [1], [0, 0, 1, 1], [], []>} : vector<256x8xf32>, vector<8x128xf32>, vector<256x128xf32> -> vector<256x128xf32>
    %168 = arith.addf %161, %167 : vector<256x128xf32>
    %c0_168 = arith.constant 0 : index
    %c2_169 = arith.constant 2 : index
    %c0_170 = arith.constant 0 : index
    %c0_171 = arith.constant 0 : index
    %169 = vector.load %arg4[%c0_168, %c2_169, %c0_170, %c0_171] : memref<1x18x18x8xf32, #tpu.memory_space<vmem>>, vector<1x16x16x8xf32>
    %170 = vector.shape_cast %169 : vector<1x16x16x8xf32> to vector<16x16x8xf32>
    %171 = vector.shape_cast %170 : vector<16x16x8xf32> to vector<256x8xf32>
    %c24 = arith.constant 24 : index
    %c0_172 = arith.constant 0 : index
    %c0_173 = arith.constant 0 : index
    %172 = vector.load %arg5[%c24, %c0_172, %c0_173] : memref<27x8x128xf32, #tpu.memory_space<vmem>>, vector<1x8x128xf32>
    %173 = vector.shape_cast %172 : vector<1x8x128xf32> to vector<8x128xf32>
    %cst_174 = arith.constant dense<0.000000e+00> : vector<256x128xf32>
    %174 = tpu.matmul %171, %173, %cst_174 {dimension_numbers = #tpu.dot_dimension_numbers<[1], [0], [0], [1], [0, 0, 1, 1], [], []>} : vector<256x8xf32>, vector<8x128xf32>, vector<256x128xf32> -> vector<256x128xf32>
    %175 = arith.addf %168, %174 : vector<256x128xf32>
    %c0_175 = arith.constant 0 : index
    %c2_176 = arith.constant 2 : index
    %c1_177 = arith.constant 1 : index
    %c0_178 = arith.constant 0 : index
    %176 = vector.load %arg4[%c0_175, %c2_176, %c1_177, %c0_178] : memref<1x18x18x8xf32, #tpu.memory_space<vmem>>, vector<1x16x16x8xf32>
    %177 = vector.shape_cast %176 : vector<1x16x16x8xf32> to vector<16x16x8xf32>
    %178 = vector.shape_cast %177 : vector<16x16x8xf32> to vector<256x8xf32>
    %c25 = arith.constant 25 : index
    %c0_179 = arith.constant 0 : index
    %c0_180 = arith.constant 0 : index
    %179 = vector.load %arg5[%c25, %c0_179, %c0_180] : memref<27x8x128xf32, #tpu.memory_space<vmem>>, vector<1x8x128xf32>
    %180 = vector.shape_cast %179 : vector<1x8x128xf32> to vector<8x128xf32>
    %cst_181 = arith.constant dense<0.000000e+00> : vector<256x128xf32>
    %181 = tpu.matmul %178, %180, %cst_181 {dimension_numbers = #tpu.dot_dimension_numbers<[1], [0], [0], [1], [0, 0, 1, 1], [], []>} : vector<256x8xf32>, vector<8x128xf32>, vector<256x128xf32> -> vector<256x128xf32>
    %182 = arith.addf %175, %181 : vector<256x128xf32>
    %c0_182 = arith.constant 0 : index
    %c2_183 = arith.constant 2 : index
    %c2_184 = arith.constant 2 : index
    %c0_185 = arith.constant 0 : index
    %183 = vector.load %arg4[%c0_182, %c2_183, %c2_184, %c0_185] : memref<1x18x18x8xf32, #tpu.memory_space<vmem>>, vector<1x16x16x8xf32>
    %184 = vector.shape_cast %183 : vector<1x16x16x8xf32> to vector<16x16x8xf32>
    %185 = vector.shape_cast %184 : vector<16x16x8xf32> to vector<256x8xf32>
    %c26 = arith.constant 26 : index
    %c0_186 = arith.constant 0 : index
    %c0_187 = arith.constant 0 : index
    %186 = vector.load %arg5[%c26, %c0_186, %c0_187] : memref<27x8x128xf32, #tpu.memory_space<vmem>>, vector<1x8x128xf32>
    %187 = vector.shape_cast %186 : vector<1x8x128xf32> to vector<8x128xf32>
    %cst_188 = arith.constant dense<0.000000e+00> : vector<256x128xf32>
    %188 = tpu.matmul %185, %187, %cst_188 {dimension_numbers = #tpu.dot_dimension_numbers<[1], [0], [0], [1], [0, 0, 1, 1], [], []>} : vector<256x8xf32>, vector<8x128xf32>, vector<256x128xf32> -> vector<256x128xf32>
    %189 = arith.addf %182, %188 : vector<256x128xf32>
    %190 = vector.shape_cast %189 : vector<256x128xf32> to vector<16x16x128xf32>
    %191 = vector.extract_strided_slice %190 {offsets = [0, 0, 0], sizes = [2, 16, 128], strides = [1, 1, 1]} : vector<16x16x128xf32> to vector<2x16x128xf32>
    %cst_189 = arith.constant dense<0xFF800000> : vector<16x128xf32>
    %192 = vector.multi_reduction <maximumf>, %191, %cst_189 [0] : vector<2x16x128xf32> to vector<16x128xf32>
    %193 = vector.extract_strided_slice %190 {offsets = [1, 0, 0], sizes = [3, 16, 128], strides = [1, 1, 1]} : vector<16x16x128xf32> to vector<3x16x128xf32>
    %cst_190 = arith.constant dense<0xFF800000> : vector<16x128xf32>
    %194 = vector.multi_reduction <maximumf>, %193, %cst_190 [0] : vector<3x16x128xf32> to vector<16x128xf32>
    %195 = vector.extract_strided_slice %190 {offsets = [3, 0, 0], sizes = [3, 16, 128], strides = [1, 1, 1]} : vector<16x16x128xf32> to vector<3x16x128xf32>
    %cst_191 = arith.constant dense<0xFF800000> : vector<16x128xf32>
    %196 = vector.multi_reduction <maximumf>, %195, %cst_191 [0] : vector<3x16x128xf32> to vector<16x128xf32>
    %197 = vector.extract_strided_slice %190 {offsets = [5, 0, 0], sizes = [3, 16, 128], strides = [1, 1, 1]} : vector<16x16x128xf32> to vector<3x16x128xf32>
    %cst_192 = arith.constant dense<0xFF800000> : vector<16x128xf32>
    %198 = vector.multi_reduction <maximumf>, %197, %cst_192 [0] : vector<3x16x128xf32> to vector<16x128xf32>
    %199 = vector.extract_strided_slice %190 {offsets = [7, 0, 0], sizes = [3, 16, 128], strides = [1, 1, 1]} : vector<16x16x128xf32> to vector<3x16x128xf32>
    %cst_193 = arith.constant dense<0xFF800000> : vector<16x128xf32>
    %200 = vector.multi_reduction <maximumf>, %199, %cst_193 [0] : vector<3x16x128xf32> to vector<16x128xf32>
    %201 = vector.extract_strided_slice %190 {offsets = [9, 0, 0], sizes = [3, 16, 128], strides = [1, 1, 1]} : vector<16x16x128xf32> to vector<3x16x128xf32>
    %cst_194 = arith.constant dense<0xFF800000> : vector<16x128xf32>
    %202 = vector.multi_reduction <maximumf>, %201, %cst_194 [0] : vector<3x16x128xf32> to vector<16x128xf32>
    %203 = vector.extract_strided_slice %190 {offsets = [11, 0, 0], sizes = [3, 16, 128], strides = [1, 1, 1]} : vector<16x16x128xf32> to vector<3x16x128xf32>
    %cst_195 = arith.constant dense<0xFF800000> : vector<16x128xf32>
    %204 = vector.multi_reduction <maximumf>, %203, %cst_195 [0] : vector<3x16x128xf32> to vector<16x128xf32>
    %205 = vector.extract_strided_slice %190 {offsets = [13, 0, 0], sizes = [3, 16, 128], strides = [1, 1, 1]} : vector<16x16x128xf32> to vector<3x16x128xf32>
    %cst_196 = arith.constant dense<0xFF800000> : vector<16x128xf32>
    %206 = vector.multi_reduction <maximumf>, %205, %cst_196 [0] : vector<3x16x128xf32> to vector<16x128xf32>
    %207 = vector.shape_cast %192 : vector<16x128xf32> to vector<1x16x128xf32>
    %208 = vector.shape_cast %194 : vector<16x128xf32> to vector<1x16x128xf32>
    %209 = vector.shape_cast %196 : vector<16x128xf32> to vector<1x16x128xf32>
    %210 = vector.shape_cast %198 : vector<16x128xf32> to vector<1x16x128xf32>
    %211 = vector.shape_cast %200 : vector<16x128xf32> to vector<1x16x128xf32>
    %212 = vector.shape_cast %202 : vector<16x128xf32> to vector<1x16x128xf32>
    %213 = vector.shape_cast %204 : vector<16x128xf32> to vector<1x16x128xf32>
    %214 = vector.shape_cast %206 : vector<16x128xf32> to vector<1x16x128xf32>
    %215 = tpu.concatenate %207, %208, %209, %210, %211, %212, %213, %214 in 0 : vector<1x16x128xf32>, vector<1x16x128xf32>, vector<1x16x128xf32>, vector<1x16x128xf32>, vector<1x16x128xf32>, vector<1x16x128xf32>, vector<1x16x128xf32>, vector<1x16x128xf32> -> vector<8x16x128xf32>
    %216 = vector.extract_strided_slice %215 {offsets = [0, 0, 0], sizes = [8, 2, 128], strides = [1, 1, 1]} : vector<8x16x128xf32> to vector<8x2x128xf32>
    %cst_197 = arith.constant dense<0xFF800000> : vector<8x128xf32>
    %217 = vector.multi_reduction <maximumf>, %216, %cst_197 [1] : vector<8x2x128xf32> to vector<8x128xf32>
    %c0_198 = arith.constant 0 : index
    %c0_199 = arith.constant 0 : index
    %c0_200 = arith.constant 0 : index
    %c0_201 = arith.constant 0 : index
    %218 = vector.load %arg6[%c0_198, %c0_199, %c0_200, %c0_201] : memref<1x8x8x128xf32, #tpu.memory_space<vmem>>, vector<1x8x1x128xf32>
    %219 = vector.shape_cast %218 : vector<1x8x1x128xf32> to vector<8x128xf32>
    %220 = vector.shape_cast %217 : vector<8x128xf32> to vector<1x8x1x128xf32>
    tpu.vector_store %arg6[%c0_198, %c0_199, %c0_200, %c0_201], %220 {strides = array<i32>} : memref<1x8x8x128xf32, #tpu.memory_space<vmem>>, vector<1x8x1x128xf32>,
    %221 = vector.extract_strided_slice %215 {offsets = [0, 1, 0], sizes = [8, 3, 128], strides = [1, 1, 1]} : vector<8x16x128xf32> to vector<8x3x128xf32>
    %cst_202 = arith.constant dense<0xFF800000> : vector<8x128xf32>
    %222 = vector.multi_reduction <maximumf>, %221, %cst_202 [1] : vector<8x3x128xf32> to vector<8x128xf32>
    %c0_203 = arith.constant 0 : index
    %c0_204 = arith.constant 0 : index
    %c1_205 = arith.constant 1 : index
    %c0_206 = arith.constant 0 : index
    %223 = vector.load %arg6[%c0_203, %c0_204, %c1_205, %c0_206] : memref<1x8x8x128xf32, #tpu.memory_space<vmem>>, vector<1x8x1x128xf32>
    %224 = vector.shape_cast %223 : vector<1x8x1x128xf32> to vector<8x128xf32>
    %225 = vector.shape_cast %222 : vector<8x128xf32> to vector<1x8x1x128xf32>
    tpu.vector_store %arg6[%c0_203, %c0_204, %c1_205, %c0_206], %225 {strides = array<i32>} : memref<1x8x8x128xf32, #tpu.memory_space<vmem>>, vector<1x8x1x128xf32>,
    %226 = vector.extract_strided_slice %215 {offsets = [0, 3, 0], sizes = [8, 3, 128], strides = [1, 1, 1]} : vector<8x16x128xf32> to vector<8x3x128xf32>
    %cst_207 = arith.constant dense<0xFF800000> : vector<8x128xf32>
    %227 = vector.multi_reduction <maximumf>, %226, %cst_207 [1] : vector<8x3x128xf32> to vector<8x128xf32>
    %c0_208 = arith.constant 0 : index
    %c0_209 = arith.constant 0 : index
    %c2_210 = arith.constant 2 : index
    %c0_211 = arith.constant 0 : index
    %228 = vector.load %arg6[%c0_208, %c0_209, %c2_210, %c0_211] : memref<1x8x8x128xf32, #tpu.memory_space<vmem>>, vector<1x8x1x128xf32>
    %229 = vector.shape_cast %228 : vector<1x8x1x128xf32> to vector<8x128xf32>
    %230 = vector.shape_cast %227 : vector<8x128xf32> to vector<1x8x1x128xf32>
    tpu.vector_store %arg6[%c0_208, %c0_209, %c2_210, %c0_211], %230 {strides = array<i32>} : memref<1x8x8x128xf32, #tpu.memory_space<vmem>>, vector<1x8x1x128xf32>,
    %231 = vector.extract_strided_slice %215 {offsets = [0, 5, 0], sizes = [8, 3, 128], strides = [1, 1, 1]} : vector<8x16x128xf32> to vector<8x3x128xf32>
    %cst_212 = arith.constant dense<0xFF800000> : vector<8x128xf32>
    %232 = vector.multi_reduction <maximumf>, %231, %cst_212 [1] : vector<8x3x128xf32> to vector<8x128xf32>
    %c0_213 = arith.constant 0 : index
    %c0_214 = arith.constant 0 : index
    %c3_215 = arith.constant 3 : index
    %c0_216 = arith.constant 0 : index
    %233 = vector.load %arg6[%c0_213, %c0_214, %c3_215, %c0_216] : memref<1x8x8x128xf32, #tpu.memory_space<vmem>>, vector<1x8x1x128xf32>
    %234 = vector.shape_cast %233 : vector<1x8x1x128xf32> to vector<8x128xf32>
    %235 = vector.shape_cast %232 : vector<8x128xf32> to vector<1x8x1x128xf32>
    tpu.vector_store %arg6[%c0_213, %c0_214, %c3_215, %c0_216], %235 {strides = array<i32>} : memref<1x8x8x128xf32, #tpu.memory_space<vmem>>, vector<1x8x1x128xf32>,
    %236 = vector.extract_strided_slice %215 {offsets = [0, 7, 0], sizes = [8, 3, 128], strides = [1, 1, 1]} : vector<8x16x128xf32> to vector<8x3x128xf32>
    %cst_217 = arith.constant dense<0xFF800000> : vector<8x128xf32>
    %237 = vector.multi_reduction <maximumf>, %236, %cst_217 [1] : vector<8x3x128xf32> to vector<8x128xf32>
    %c0_218 = arith.constant 0 : index
    %c0_219 = arith.constant 0 : index
    %c4_220 = arith.constant 4 : index
    %c0_221 = arith.constant 0 : index
    %238 = vector.load %arg6[%c0_218, %c0_219, %c4_220, %c0_221] : memref<1x8x8x128xf32, #tpu.memory_space<vmem>>, vector<1x8x1x128xf32>
    %239 = vector.shape_cast %238 : vector<1x8x1x128xf32> to vector<8x128xf32>
    %240 = vector.shape_cast %237 : vector<8x128xf32> to vector<1x8x1x128xf32>
    tpu.vector_store %arg6[%c0_218, %c0_219, %c4_220, %c0_221], %240 {strides = array<i32>} : memref<1x8x8x128xf32, #tpu.memory_space<vmem>>, vector<1x8x1x128xf32>,
    %241 = vector.extract_strided_slice %215 {offsets = [0, 9, 0], sizes = [8, 3, 128], strides = [1, 1, 1]} : vector<8x16x128xf32> to vector<8x3x128xf32>
    %cst_222 = arith.constant dense<0xFF800000> : vector<8x128xf32>
    %242 = vector.multi_reduction <maximumf>, %241, %cst_222 [1] : vector<8x3x128xf32> to vector<8x128xf32>
    %c0_223 = arith.constant 0 : index
    %c0_224 = arith.constant 0 : index
    %c5_225 = arith.constant 5 : index
    %c0_226 = arith.constant 0 : index
    %243 = vector.load %arg6[%c0_223, %c0_224, %c5_225, %c0_226] : memref<1x8x8x128xf32, #tpu.memory_space<vmem>>, vector<1x8x1x128xf32>
    %244 = vector.shape_cast %243 : vector<1x8x1x128xf32> to vector<8x128xf32>
    %245 = vector.shape_cast %242 : vector<8x128xf32> to vector<1x8x1x128xf32>
    tpu.vector_store %arg6[%c0_223, %c0_224, %c5_225, %c0_226], %245 {strides = array<i32>} : memref<1x8x8x128xf32, #tpu.memory_space<vmem>>, vector<1x8x1x128xf32>,
    %246 = vector.extract_strided_slice %215 {offsets = [0, 11, 0], sizes = [8, 3, 128], strides = [1, 1, 1]} : vector<8x16x128xf32> to vector<8x3x128xf32>
    %cst_227 = arith.constant dense<0xFF800000> : vector<8x128xf32>
    %247 = vector.multi_reduction <maximumf>, %246, %cst_227 [1] : vector<8x3x128xf32> to vector<8x128xf32>
    %c0_228 = arith.constant 0 : index
    %c0_229 = arith.constant 0 : index
    %c6_230 = arith.constant 6 : index
    %c0_231 = arith.constant 0 : index
    %248 = vector.load %arg6[%c0_228, %c0_229, %c6_230, %c0_231] : memref<1x8x8x128xf32, #tpu.memory_space<vmem>>, vector<1x8x1x128xf32>
    %249 = vector.shape_cast %248 : vector<1x8x1x128xf32> to vector<8x128xf32>
    %250 = vector.shape_cast %247 : vector<8x128xf32> to vector<1x8x1x128xf32>
    tpu.vector_store %arg6[%c0_228, %c0_229, %c6_230, %c0_231], %250 {strides = array<i32>} : memref<1x8x8x128xf32, #tpu.memory_space<vmem>>, vector<1x8x1x128xf32>,
    %251 = vector.extract_strided_slice %215 {offsets = [0, 13, 0], sizes = [8, 3, 128], strides = [1, 1, 1]} : vector<8x16x128xf32> to vector<8x3x128xf32>
    %cst_232 = arith.constant dense<0xFF800000> : vector<8x128xf32>
    %252 = vector.multi_reduction <maximumf>, %251, %cst_232 [1] : vector<8x3x128xf32> to vector<8x128xf32>
    %c0_233 = arith.constant 0 : index
    %c0_234 = arith.constant 0 : index
    %c7_235 = arith.constant 7 : index
    %c0_236 = arith.constant 0 : index
    %253 = vector.load %arg6[%c0_233, %c0_234, %c7_235, %c0_236] : memref<1x8x8x128xf32, #tpu.memory_space<vmem>>, vector<1x8x1x128xf32>
    %254 = vector.shape_cast %253 : vector<1x8x1x128xf32> to vector<8x128xf32>
    %255 = vector.shape_cast %252 : vector<8x128xf32> to vector<1x8x1x128xf32>
    tpu.vector_store %arg6[%c0_233, %c0_234, %c7_235, %c0_236], %255 {strides = array<i32>} : memref<1x8x8x128xf32, #tpu.memory_space<vmem>>, vector<1x8x1x128xf32>,
    return
  }
  func.func @transform_0(%arg0: i32, %arg1: i32) -> (i32, i32, i32, i32) {
    %c6_i32 = arith.constant 6 : i32
    %0 = arith.muli %arg0, %c6_i32 : i32
    %c1_i32 = arith.constant 1 : i32
    %1 = arith.muli %arg1, %c1_i32 : i32
    %2 = arith.addi %0, %1 : i32
    %c0_i32 = arith.constant 0 : i32
    %3 = arith.addi %2, %c0_i32 : i32
    %c0_i32_0 = arith.constant 0 : i32
    %c0_i32_1 = arith.constant 0 : i32
    %c0_i32_2 = arith.constant 0 : i32
    %c0_i32_3 = arith.constant 0 : i32
    return %3, %c0_i32_0, %c0_i32_1, %c0_i32_2 : i32, i32, i32, i32
  }
  func.func @transform_1(%arg0: i32, %arg1: i32) -> (i32, i32, i32, i32) {
    %c6_i32 = arith.constant 6 : i32
    %0 = arith.muli %arg0, %c6_i32 : i32
    %c1_i32 = arith.constant 1 : i32
    %1 = arith.muli %arg1, %c1_i32 : i32
    %2 = arith.addi %0, %1 : i32
    %c1_i32_0 = arith.constant 1 : i32
    %3 = arith.addi %2, %c1_i32_0 : i32
    %c0_i32 = arith.constant 0 : i32
    %c0_i32_1 = arith.constant 0 : i32
    %c0_i32_2 = arith.constant 0 : i32
    %c0_i32_3 = arith.constant 0 : i32
    return %3, %c0_i32, %c0_i32_1, %c0_i32_2 : i32, i32, i32, i32
  }
  func.func @transform_2(%arg0: i32, %arg1: i32) -> (i32, i32, i32, i32) {
    %c6_i32 = arith.constant 6 : i32
    %0 = arith.muli %arg0, %c6_i32 : i32
    %c1_i32 = arith.constant 1 : i32
    %1 = arith.muli %arg1, %c1_i32 : i32
    %2 = arith.addi %0, %1 : i32
    %c2_i32 = arith.constant 2 : i32
    %3 = arith.addi %2, %c2_i32 : i32
    %c0_i32 = arith.constant 0 : i32
    %c0_i32_0 = arith.constant 0 : i32
    %c0_i32_1 = arith.constant 0 : i32
    %c0_i32_2 = arith.constant 0 : i32
    return %3, %c0_i32, %c0_i32_0, %c0_i32_1 : i32, i32, i32, i32
  }
  func.func @transform_3(%arg0: i32, %arg1: i32) -> (i32, i32, i32) {
    %c0_i32 = arith.constant 0 : i32
    %c0_i32_0 = arith.constant 0 : i32
    %c0_i32_1 = arith.constant 0 : i32
    %c0_i32_2 = arith.constant 0 : i32
    return %c0_i32, %c0_i32_0, %c0_i32_1 : i32, i32, i32
  }
  func.func @transform_4(%arg0: i32, %arg1: i32) -> (i32, i32, i32, i32) {
    %c4_i32 = arith.constant 4 : i32
    %0 = arith.muli %arg0, %c4_i32 : i32
    %1 = arith.addi %0, %arg1 : i32
    %c0_i32 = arith.constant 0 : i32
    %c0_i32_0 = arith.constant 0 : i32
    %c0_i32_1 = arith.constant 0 : i32
    %c0_i32_2 = arith.constant 0 : i32
    return %1, %c0_i32, %c0_i32_0, %c0_i32_1 : i32, i32, i32, i32
  }
}

</mosaic_0001>

<bundles_post_ra>
// kernel: a_call__.1
= control target key start
LH: loop header
LB: loop body
LE: loop exit
PB: predicated region body
PF: predicated region fallthrough
CT: control target
= control target key end

     0   :  { %s16033_s15 = smov 0   ;;  %s16035_s16 = smov 0   ;;  %s19239_s0 = inlined_call_operand.vmem [shape: f32[12,18,18,8], index: 0, kind: input, shape index: {}, may-alias: {0,1,2}]   ;;  %s19240_s1 = inlined_call_operand.vmem [shape: f32[12,18,18,8], index: 1, kind: input, shape index: {}, may-alias: {0,1,2}]   ;;  %s19241_s2 = inlined_call_operand.vmem [shape: f32[12,18,18,8], index: 2, kind: input, shape index: {}, may-alias: {0,1,2}]   ;;  %s19242_s3 = inlined_call_operand.vmem [shape: f32[27,8,128], index: 3, kind: input, shape index: {}]   ;;  %s19243_s4 = inlined_call_operand.vmem [shape: f32[8,8,8,128], index: 4, kind: output, shape index: {}]  }
   0x1   :  { %s16037_s17 = smov 0   ;;  %s16039_s18 = smov 0  }
   0x2   :  { %s16041_s19 = smov 0  }
   0x3 LB: > { %s23_s20 = sadd.s32 1, %s15998_s17  ;;  %s26_s21 = sadd.s32 1, %s16002_s18  ;;  %s16006_s19 = sphi %s16041_s19, %s14_s19   ;;  %s16002_s18 = sphi %s16039_s18, %s19490_s18   ;;  %s15998_s17 = sphi %s16037_s17, %s19489_s17   ;;  %s15994_s16 = sphi %s16035_s16, %s19488_s16   ;;  %s15990_s15 = sphi %s16033_s15, %s19487_s15  }
   0x4   : > { %p24_p0 = scmp.ge.s32.totalorder %s23_s20, 4  ;;  %p11373_p1 = scmp.ge.s32.totalorder %s16006_s19, 1 }
   0x5   : > { %p230_p2 = scmp.lt.s32.totalorder %s16006_s19, 9 }
   0x6   : > { %s19492_s20 = smov (%p24_p0, %s23_s20), 0  ;;  %s19494_s21 = smov (!%p24_p0, %s26_s21), %s16002_s18 }
   0x7   : > { %p231_p3 = pnand %p11373_p1, %p230_p2  ;;  %p28_p4 = scmp.ge.s32.totalorder %s19494_s21, 2 }
   0x9   : > { %s19496_s21 = smov (%p28_p4, %s19494_s21), 0  ;;  %234 = sbr.rel (%p231_p3) target bundleno = 1193 (0x4a9), region = 36 }
  0x10   : > { %v11380_v0 = vld [vmem:[%s19242_s3 + $0x8] sm:$0xff]  ;;  %s276_s26 = smul.u32 6, %s15994_s16  ;;  %v348_v2 = vld [vmem:[%s19242_s3] sm:$0xff]  ;;  %v12129_v3 = vld [vmem:[%s19242_s3 + $0x70] sm:$0xff]  ;;  %vm383_vm0 = vcmask 64512   ;;  %vm10737_vm1 = vcmask 1041408  }
  0x11   : > { %v12064_v1 = vld [vmem:[%s19242_s3 + $0x68] sm:$0xff]  ;;  %13740 = vmatprep.subr.mxu1 %v11380_v0  ;;  %v16110_v10 = vld [vmem:[%s19242_s3 + $0x78] sm:$0xff]  ;;  %v16117_v12 = vld [vmem:[%s19242_s3 + $0x10] sm:$0xff]  ;;  %vm10802_vm2 = vcmask 1043457   ;;  %vm10867_vm3 = vcmask 1045507   ;;  %vm10932_vm4 = vcmask 1047557  }
  0x12   : > { %14390 = vmatprep.subr.mxu0 %v12064_v1  ;;  %13741 = vmatpush3.msra.mxu1 %v11380_v0  ;;  %s16081_s5 = sadd.s32 %s15990_s15, %s276_s26  ;;  %v16228_v44 = vld [vmem:[%s19242_s3 + $0x80] sm:$0xff]  ;;  %vm10997_vm5 = vcmask 1047559  }
  0x13   : > { %14391 = vmatpush3.msra.mxu0 %v12064_v1  ;;  %p278_p5 = scmp.lt.s32.totalorder %s16081_s5, 11  ;;  %13790 = vmatprep.subr.mxu1 %v348_v2  ;;  %s287_s6 = sadd.s32 1, %s16081_s5 }
  0x14   : > { %14440 = vmatprep.subr.mxu0 %v12129_v3  ;;  %p288_p6 = scmp.lt.s32.totalorder %s287_s6, 11  ;;  %s298_s27 = sadd.s32 2, %s16081_s5 }
  0x15   : > { %s279_s7 = scalar_select %p278_p5, %s16081_s5, 11 }
  0x16   : > { %s19498_s6 = smov (!%p288_p6, %s287_s6), 11  ;;  %p299_p7 = scmp.lt.s32.totalorder %s298_s27, 11 }
  0x17   : > { %s15924_s8 = smul.u32 432, %s279_s7 }
  0x18   : > { %s15925_s9 = smul.u32 432, %s19498_s6  ;;  %s19500_s27 = smov (!%p299_p7, %s298_s27), 11 }
  0x19   : > { %s16089_s12 = scalar_lea.vmem %s19239_s0, %s15924_s8  ;;  %s15926_s5 = smul.u32 432, %s19500_s27 }
  0x1a   : > { %v349_v4 = vld [vmem:[%s16089_s12 + $0x1] sm:$0xff]  ;;  %v350_v5 = vld [vmem:[%s16089_s12 + $0x9] sm:$0xff]  ;;  %s16096_s22 = scalar_lea.vmem %s19240_s1, %s15925_s9  ;;  %v351_v8 = vld [vmem:[%s16089_s12 + $0x19] sm:$0xff] }
  0x1b   : > { %13742 = vmatprep.mubr.msk.f32.mxu1 %vm383_vm0, %v349_v4  ;;  %v12032_v6 = vld [vmem:[%s16096_s22 + $0x19] sm:$0xff]  ;;  %v12033_v7 = vld [vmem:[%s16096_s22 + $0x21] sm:$0xff]  ;;  %v16105_v9 = vld [vmem:[%s16096_s22 + $0x31] sm:$0xff]  ;;  %s17092_s30 = scalar_lea.vmem %s19241_s2, %s15926_s5 }
  0x1c   : > { %13743 = vmatmul.mubr.msk.f32.vlgmr.msra.gmra.mrb[0].mxu1 %vm383_vm0, %v350_v5  ;;  %14392 = vmatprep.mubr.msk.f32.mxu0 %vm383_vm0, %v12032_v6  ;;  %v352_v11 = vld [vmem:[%s16089_s12 + $0x21] sm:$0xff]  ;;  %v16121_v13 = vld [vmem:[%s16096_s22 + $0x39] sm:$0xff]  ;;  %v353_v14 = vld [vmem:[%s16089_s12 + $0x31] sm:$0xff] }
  0x1d   : > { %13791 = vmatpush3.msra.mxu1 %v348_v2  ;;  %14393 = vmatmul.mubr.msk.f32.vlgmr.msra.gmra.mrb[0].mxu0 %vm383_vm0, %v12033_v7  ;;  %v16127_v15 = vld [vmem:[%s16096_s22 + $0x49] sm:$0xff]  ;;  %v354_v16 = vld [vmem:[%s16089_s12 + $0x39] sm:$0xff]  ;;  %v16139_v17 = vld [vmem:[%s16096_s22 + $0x51] sm:$0xff] }
  0x1e   : > { %14441 = vmatpush3.msra.mxu0 %v12129_v3  ;;  %13745 = vmatprep.mubr.msk.f32.mxu1 %vm383_vm0, %v351_v8  ;;  %v355_v18 = vld [vmem:[%s16089_s12 + $0x49] sm:$0xff]  ;;  %v16143_v19 = vld [vmem:[%s16096_s22 + $0x61] sm:$0xff]  ;;  %v356_v20 = vld [vmem:[%s16089_s12 + $0x51] sm:$0xff] }
  0x1f   : > { %14395 = vmatprep.mubr.msk.f32.mxu0 %vm383_vm0, %v16105_v9  ;;  %14490 = vmatprep.subr.mxu0 %v16110_v10  ;;  %v16153_v21 = vld [vmem:[%s16096_s22 + $0x69] sm:$0xff]  ;;  %v357_v22 = vld [vmem:[%s16089_s12 + $0x61] sm:$0xff]  ;;  %v16157_v23 = vld [vmem:[%s16096_s22 + $0x79] sm:$0xff] }
  0x20   : > { %13746 = vmatmul.mubr.msk.f32.gmra.mrb[2].mxu1 %vm383_vm0, %v352_v11  ;;  %13840 = vmatprep.subr.mxu1 %v16117_v12  ;;  %v358_v24 = vld [vmem:[%s16089_s12 + $0x69] sm:$0xff]  ;;  %v16167_v25 = vld [vmem:[%s16096_s22 + $0x81] sm:$0xff]  ;;  %v359_v26 = vld [vmem:[%s16089_s12 + $0x79] sm:$0xff] }
  0x21   : > { %14396 = vmatmul.mubr.msk.f32.gmra.mrb[2].mxu0 %vm383_vm0, %v16121_v13  ;;  %13748 = vmatprep.mubr.msk.f32.mxu1 %vm383_vm0, %v353_v14  ;;  %v16171_v27 = vld [vmem:[%s16096_s22 + $0x91] sm:$0xff]  ;;  %v360_v28 = vld [vmem:[%s16089_s12 + $0x81] sm:$0xff]  ;;  %v16181_v29 = vld [vmem:[%s16096_s22 + $0x99] sm:$0xff] }
  0x22   : > { %14398 = vmatprep.mubr.msk.f32.mxu0 %vm383_vm0, %v16127_v15  ;;  %v361_v30 = vld [vmem:[%s16089_s12 + $0x91] sm:$0xff]  ;;  %v16185_v31 = vld [vmem:[%s16096_s22 + $0xa9] sm:$0xff]  ;;  %v362_v32 = vld [vmem:[%s16089_s12 + $0x99] sm:$0xff] }
  0x23   : > { %v16195_v33 = vld [vmem:[%s16096_s22 + $0xb1] sm:$0xff]  ;;  %v363_v34 = vld [vmem:[%s16089_s12 + $0xa9] sm:$0xff]  ;;  %v16199_v35 = vld [vmem:[%s16096_s22 + $0xc1] sm:$0xff] }
  0x24   : > { %13749 = vmatmul.mubr.msk.f32.gmra.mrb[4].mxu1 %vm383_vm0, %v354_v16  ;;  %v364_v36 = vld [vmem:[%s16089_s12 + $0xb1] sm:$0xff]  ;;  %v16209_v37 = vld [vmem:[%s16096_s22 + $0xc9] sm:$0xff]  ;;  %v365_v38 = vld [vmem:[%s16089_s12 + $0xc1] sm:$0xff] }
  0x25   : > { %14399 = vmatmul.mubr.msk.f32.gmra.mrb[4].mxu0 %vm383_vm0, %v16139_v17  ;;  %13751 = vmatprep.mubr.msk.f32.mxu1 %vm383_vm0, %v355_v18  ;;  %v12097_v39 = vld [vmem:[%s16096_s22 + $0x1a] sm:$0xff]  ;;  %v366_v40 = vld [vmem:[%s16089_s12 + $0xc9] sm:$0xff]  ;;  %v16222_v43 = vld [vmem:[%s16096_s22 + $0x32] sm:$0xff] }
  0x26   : > { %14401 = vmatprep.mubr.msk.f32.mxu0 %vm383_vm0, %v16143_v19  ;;  %v12098_v41 = vld [vmem:[%s16096_s22 + $0x22] sm:$0xff]  ;;  %v367_v42 = vld [vmem:[%s16089_s12 + $0xd9] sm:$0xff]  ;;  %v369_v47 = vld [vmem:[%s16089_s12 + $0xf1] sm:$0xff] }
  0x27   : > { %v368_v45 = vld [vmem:[%s16089_s12 + $0xe1] sm:$0xff]  ;;  %v16241_v48 = vld [vmem:[%s16096_s22 + $0x4a] sm:$0xff]  ;;  %v370_v49 = vld [vmem:[%s16089_s12 + $0xf9] sm:$0xff] }
  0x28   : > { %13752 = vmatmul.mubr.msk.f32.gmra.mrb[6].mxu1 %vm383_vm0, %v356_v20  ;;  %v16237_v46 = vld [vmem:[%s16096_s22 + $0x3a] sm:$0xff]  ;;  %v16252_v50 = vld [vmem:[%s16096_s22 + $0x52] sm:$0xff]  ;;  %v371_v51 = vld [vmem:[%s16089_s12 + $0x109] sm:$0xff] }
  0x29   : > { %14402 = vmatmul.mubr.msk.f32.gmra.mrb[6].mxu0 %vm383_vm0, %v16153_v21  ;;  %13754 = vmatprep.mubr.msk.f32.mxu1 %vm383_vm0, %v357_v22  ;;  %v16256_v52 = vld [vmem:[%s16096_s22 + $0x62] sm:$0xff]  ;;  %v372_v53 = vld [vmem:[%s16089_s12 + $0x111] sm:$0xff]  ;;  %v16270_v56 = vld [vmem:[%s16096_s22 + $0x7a] sm:$0xff] }
  0x2a   : > { %14404 = vmatprep.mubr.msk.f32.mxu0 %vm383_vm0, %v16157_v23  ;;  %v16266_v54 = vld [vmem:[%s16096_s22 + $0x6a] sm:$0xff]  ;;  %v373_v55 = vld [vmem:[%s16089_s12 + $0x121] sm:$0xff]  ;;  %v375_v59 = vld [vmem:[%s16089_s12 + $0x139] sm:$0xff] }
  0x2b   : > { %v374_v57 = vld [vmem:[%s16089_s12 + $0x129] sm:$0xff]  ;;  %v16284_v60 = vld [vmem:[%s16096_s22 + $0x92] sm:$0xff]  ;;  %v376_v61 = vld [vmem:[%s16089_s12 + $0x141] sm:$0xff] }
  0x2c   : > { %13755 = vmatmul.mubr.msk.f32.gmra.mrb[8].mxu1 %vm383_vm0, %v358_v24  ;;  %v16280_v58 = vld [vmem:[%s16096_s22 + $0x82] sm:$0xff]  ;;  %v16294_v62 = vld [vmem:[%s16096_s22 + $0x9a] sm:$0xff]  ;;  %v377_v63 = vld [vmem:[%s16089_s12 + $0x151] sm:$0xff] }
  0x2d   : > { %14405 = vmatmul.mubr.msk.f32.gmra.mrb[8].mxu0 %vm383_vm0, %v16167_v25  ;;  %13757 = vmatprep.mubr.msk.f32.mxu1 %vm383_vm0, %v359_v26  ;;  %v16298_v0 = vld [vmem:[%s16096_s22 + $0xaa] sm:$0xff]  ;;  %v378_v1 = vld [vmem:[%s16089_s12 + $0x159] sm:$0xff]  ;;  %v16312_v4 = vld [vmem:[%s16096_s22 + $0xc2] sm:$0xff] }
  0x2e   : > { %14407 = vmatprep.mubr.msk.f32.mxu0 %vm383_vm0, %v16171_v27  ;;  %v16308_v2 = vld [vmem:[%s16096_s22 + $0xb2] sm:$0xff]  ;;  %v379_v3 = vld [vmem:[%s16089_s12 + $0x169] sm:$0xff]  ;;  %19325 = vst [vmem:[#allocation2_spill] sm:$0xff] %v16312_v4  ;;  %v316_v7 = vld [vmem:[%s16089_s12] sm:$0xff] }
  0x2f   : > { %v380_v5 = vld [vmem:[%s16089_s12 + $0x171] sm:$0xff]  ;;  %v16326_v8 = vld [vmem:[%s16096_s22 + $0xda] sm:$0xff]  ;;  %v16336_v11 = vld [vmem:[%s16096_s22 + $0xe2] sm:$0xff] }
  0x30   : > { %13758 = vmatmul.mubr.msk.f32.gmra.mrb[10].mxu1 %vm383_vm0, %v360_v28  ;;  %v16322_v6 = vld [vmem:[%s16096_s22 + $0xca] sm:$0xff]  ;;  %19327 = vst [vmem:[#allocation4_spill] sm:$0xff] %v16326_v8  ;;  %19328 = vst [vmem:[#allocation5_spill] sm:$0xff] %v16336_v11  ;;  %v16339_v14 = vld [vmem:[%s16089_s12 + $0x18] sm:$0xff] }
  0x31   : > { %14408 = vmatmul.mubr.msk.f32.gmra.mrb[10].mxu0 %vm383_vm0, %v16181_v29  ;;  %13760 = vmatprep.mubr.msk.f32.mxu1 %vm383_vm0, %v361_v30  ;;  %19326 = vst [vmem:[#allocation3_spill] sm:$0xff] %v16322_v6  ;;  %v16342_v16 = vld [vmem:[%s16096_s22 + $0xf2] sm:$0xff]  ;;  %v16354_v20 = vld [vmem:[%s16089_s12 + $0x20] sm:$0xff]  ;;  %v16367_v26 = vld [vmem:[%s16096_s22 + $0x10a] sm:$0xff] }
  0x32   : > { %14410 = vmatprep.mubr.msk.f32.mxu0 %vm383_vm0, %v16185_v31  ;;  %19329 = vst [vmem:[#allocation6_spill] sm:$0xff] %v16342_v16  ;;  %v16348_v18 = vld [vmem:[%s19242_s3 + $0x18] sm:$0xff]  ;;  %v16364_v24 = vld [vmem:[%s16089_s12 + $0x30] sm:$0xff]  ;;  %19331 = vst [vmem:[#allocation8_spill] sm:$0xff] %v16367_v26 }
  0x33   : > { %v16361_v22 = vld [vmem:[%s16096_s22 + $0xfa] sm:$0xff]  ;;  %v16382_v28 = vld [vmem:[%s16096_s22 + $0x112] sm:$0xff]  ;;  %v16385_v30 = vld [vmem:[%s16089_s12 + $0x48] sm:$0xff] }
  0x34   : > { %13761 = vmatmul.mubr.msk.f32.gmra.mrb[12].mxu1 %vm383_vm0, %v362_v32  ;;  %19330 = vst [vmem:[#allocation7_spill] sm:$0xff] %v16361_v22  ;;  %19332 = vst [vmem:[#allocation9_spill] sm:$0xff] %v16382_v28  ;;  %v16388_v32 = vld [vmem:[%s16096_s22 + $0x122] sm:$0xff] }
  0x35   : > { %14411 = vmatmul.mubr.msk.f32.gmra.mrb[12].mxu0 %vm383_vm0, %v16195_v33  ;;  %13763 = vmatprep.mubr.msk.f32.mxu1 %vm383_vm0, %v363_v34  ;;  %19333 = vst [vmem:[#allocation10_spill] sm:$0xff] %v16388_v32  ;;  %v16397_v34 = vld [vmem:[%s16089_s12 + $0x50] sm:$0xff] }
  0x36   : > { %14413 = vmatprep.mubr.msk.f32.mxu0 %vm383_vm0, %v16199_v35 }
  0x38   : > { %13764 = vmatmul.mubr.msk.f32.gmra.mrb[14].mxu1 %vm383_vm0, %v364_v36  ;;  %v16402_v36 = vld [vmem:[%s16096_s22 + $0x12a] sm:$0xff] }
  0x39   : > { %14414 = vmatmul.mubr.msk.f32.gmra.mrb[14].mxu0 %vm383_vm0, %v16209_v37  ;;  %13766 = vmatprep.mubr.msk.f32.mxu1 %vm383_vm0, %v365_v38  ;;  %19334 = vst [vmem:[#allocation11_spill] sm:$0xff] %v16402_v36  ;;  %v16405_v38 = vld [vmem:[%s16089_s12 + $0x60] sm:$0xff] }
  0x3a   : > { %14442 = vmatprep.mubr.msk.f32.mxu0 %vm383_vm0, %v12097_v39  ;;  %v16408_v39 = vld [vmem:[%s16096_s22 + $0x13a] sm:$0xff] }
  0x3b   : > { %19335 = vst [vmem:[#allocation12_spill] sm:$0xff] %v16408_v39 }
  0x3c   : > { %13767 = vmatmul.mubr.msk.f32.gmra.mrb[16].mxu1 %vm383_vm0, %v366_v40  ;;  %v16417_v40 = vld [vmem:[%s16089_s12 + $0x68] sm:$0xff] }
  0x3d   : > { %14443 = vmatmul.mubr.msk.f32.vlgmr.msra.gmra.mrb[0].mxu0 %vm383_vm0, %v12098_v41  ;;  %13769 = vmatprep.mubr.msk.f32.mxu1 %vm383_vm0, %v367_v42  ;;  %v16422_v41 = vld [vmem:[%s16096_s22 + $0x142] sm:$0xff]  ;;  %v16425_v42 = vld [vmem:[%s16089_s12 + $0x78] sm:$0xff] }
  0x3e   : > { %14491 = vmatpush3.msra.mxu0 %v16110_v10  ;;  %14445 = vmatprep.mubr.msk.f32.mxu0 %vm383_vm0, %v16222_v43  ;;  %v317_v10 = vld [vmem:[%s16089_s12 + $0x8] sm:$0xff]  ;;  %19336 = vst [vmem:[#allocation13_spill] sm:$0xff] %v16422_v41 }
  0x3f   : > { %14540 = vmatprep.subr.mxu0 %v16228_v44 }
  0x40   : > { %13770 = vmatmul.mubr.msk.f32.gmra.mrb[18].mxu1 %vm383_vm0, %v368_v45  ;;  %v16428_v45 = vld [vmem:[%s16096_s22 + $0x152] sm:$0xff] }
  0x41   : > { %14446 = vmatmul.mubr.msk.f32.gmra.mrb[2].mxu0 %vm383_vm0, %v16237_v46  ;;  %13772 = vmatprep.mubr.msk.f32.mxu1 %vm383_vm0, %v369_v47  ;;  %19337 = vst [vmem:[#allocation14_spill] sm:$0xff] %v16428_v45  ;;  %v16437_v47 = vld [vmem:[%s16089_s12 + $0x80] sm:$0xff] }
  0x42   : > { %14448 = vmatprep.mubr.msk.f32.mxu0 %vm383_vm0, %v16241_v48 }
  0x44   : > { %13773 = vmatmul.mubr.msk.f32.gmra.mrb[20].mxu1 %vm383_vm0, %v370_v49  ;;  %v16442_v49 = vld [vmem:[%s16096_s22 + $0x15a] sm:$0xff] }
  0x45   : > { %14449 = vmatmul.mubr.msk.f32.gmra.mrb[4].mxu0 %vm383_vm0, %v16252_v50  ;;  %13775 = vmatprep.mubr.msk.f32.mxu1 %vm383_vm0, %v371_v51  ;;  %19338 = vst [vmem:[#allocation15_spill] sm:$0xff] %v16442_v49  ;;  %v16445_v51 = vld [vmem:[%s16089_s12 + $0x90] sm:$0xff] }
  0x46   : > { %14451 = vmatprep.mubr.msk.f32.mxu0 %vm383_vm0, %v16256_v52 }
  0x48   : > { %13776 = vmatmul.mubr.msk.f32.gmra.mrb[22].mxu1 %vm383_vm0, %v372_v53  ;;  %v16448_v53 = vld [vmem:[%s16096_s22 + $0x16a] sm:$0xff] }
  0x49   : > { %14452 = vmatmul.mubr.msk.f32.gmra.mrb[6].mxu0 %vm383_vm0, %v16266_v54  ;;  %13778 = vmatprep.mubr.msk.f32.mxu1 %vm383_vm0, %v373_v55  ;;  %19339 = vst [vmem:[#allocation16_spill] sm:$0xff] %v16448_v53  ;;  %v16457_v55 = vld [vmem:[%s16089_s12 + $0x98] sm:$0xff] }
  0x4a   : > { %14454 = vmatprep.mubr.msk.f32.mxu0 %vm383_vm0, %v16270_v56 }
  0x4c   : > { %13779 = vmatmul.mubr.msk.f32.gmra.mrb[24].mxu1 %vm383_vm0, %v374_v57  ;;  %v16462_v57 = vld [vmem:[%s16096_s22 + $0x172] sm:$0xff] }
  0x4d   : > { %14455 = vmatmul.mubr.msk.f32.gmra.mrb[8].mxu0 %vm383_vm0, %v16280_v58  ;;  %13781 = vmatprep.mubr.msk.f32.mxu1 %vm383_vm0, %v375_v59  ;;  %19340 = vst [vmem:[#allocation17_spill] sm:$0xff] %v16462_v57  ;;  %v16465_v59 = vld [vmem:[%s16089_s12 + $0xa8] sm:$0xff] }
  0x4e   : > { %14457 = vmatprep.mubr.msk.f32.mxu0 %vm383_vm0, %v16284_v60 }
  0x50   : > { %13782 = vmatmul.mubr.msk.f32.gmra.mrb[26].mxu1 %vm383_vm0, %v376_v61  ;;  %v16468_v61 = vld [vmem:[%s16096_s22 + $0x182] sm:$0xff] }
  0x51   : > { %14458 = vmatmul.mubr.msk.f32.gmra.mrb[10].mxu0 %vm383_vm0, %v16294_v62  ;;  %13784 = vmatprep.mubr.msk.f32.mxu1 %vm383_vm0, %v377_v63  ;;  %19341 = vst [vmem:[#allocation18_spill] sm:$0xff] %v16468_v61  ;;  %v16477_v63 = vld [vmem:[%s16089_s12 + $0xb0] sm:$0xff] }
  0x52   : > { %14460 = vmatprep.mubr.msk.f32.mxu0 %vm383_vm0, %v16298_v0 }
  0x54   : > { %13785 = vmatmul.mubr.msk.f32.gmra.mrb[28].mxu1 %vm383_vm0, %v378_v1  ;;  %v16482_v1 = vld [vmem:[%s16096_s22 + $0x18a] sm:$0xff] }
  0x55   : > { %14461 = vmatmul.mubr.msk.f32.gmra.mrb[12].mxu0 %vm383_vm0, %v16308_v2  ;;  %13787 = vmatprep.mubr.msk.f32.mxu1 %vm383_vm0, %v379_v3  ;;  %19342 = vst [vmem:[#allocation19_spill] sm:$0xff] %v16482_v1  ;;  %v16485_v3 = vld [vmem:[%s16089_s12 + $0xc0] sm:$0xff] }
  0x56   : > { %14463 = vmatprep.mubr.msk.f32.mxu0 %vm383_vm0, %v16312_v4  ;;  %v12179_v4 = vld [vmem:[%s16096_s22 + $0xf8] sm:$0xff] }
  0x58   : > { %13788 = vmatmul.mubr.msk.f32.gmra.mrb[30].mxu1 %vm383_vm0, %v380_v5  ;;  %v12162_v5 = vld [vmem:[%s16096_s22 + $0x30] sm:$0xff] }
  0x59   : > { %14464 = vmatmul.mubr.msk.f32.gmra.mrb[14].mxu0 %vm383_vm0, %v16322_v6  ;;  %13792 = vmatprep.mubr.msk.f32.mxu1 %vm383_vm0, %v316_v7  ;;  %v16495_v7 = vld [vmem:[%s16089_s12 + $0xc8] sm:$0xff]  ;;  %v12178_v6 = vld [vmem:[%s16096_s22 + $0xf0] sm:$0xff] }
  0x5a   : > { %14466 = vmatprep.mubr.msk.f32.mxu0 %vm383_vm0, %v16326_v8  ;;  %v1026_v8 = vld [vmem:[%s16089_s12 + $0x2] sm:$0xff] }
  0x5c   : > { %13793 = vmatmul.mubr.msk.f32.vlgmr.msra.gmra.mrb[0].mxu1 %vm383_vm0, %v317_v10  ;;  %v12163_v10 = vld [vmem:[%s16096_s22 + $0x38] sm:$0xff] }
  0x5d   : > { %13841 = vmatpush3.msra.mxu1 %v16117_v12  ;;  %14467 = vmatmul.mubr.msk.f32.gmra.mrb[16].mxu0 %vm383_vm0, %v16336_v11  ;;  %v16377_v12 = vld [vmem:[%s16089_s12 + $0x38] sm:$0xff] }
  0x5e   : > { %13795 = vmatprep.mubr.msk.f32.mxu1 %vm383_vm0, %v16339_v14  ;;  %14469 = vmatprep.mubr.msk.f32.mxu0 %vm383_vm0, %v16342_v16  ;;  %v16591_v16 = vld [vmem:[%s16089_s12 + $0x168] sm:$0xff]  ;;  %v12176_v11 = vld [vmem:[%s16096_s22 + $0xd8] sm:$0xff] }
  0x5f   : > { %13890 = vmatprep.subr.mxu1 %v16348_v18  ;;  %19343 = vst [vmem:[#allocation20_spill] sm:$0xff] %v16591_v16 }
  0x60   : > { %13796 = vmatmul.mubr.msk.f32.gmra.mrb[2].mxu1 %vm383_vm0, %v16354_v20 }
  0x61   : > { %14470 = vmatmul.mubr.msk.f32.gmra.mrb[18].mxu0 %vm383_vm0, %v16361_v22  ;;  %13798 = vmatprep.mubr.msk.f32.mxu1 %vm383_vm0, %v16364_v24  ;;  %v12174_v22 = vld [vmem:[%s16096_s22 + $0xc0] sm:$0xff] }
  0x62   : > { %14472 = vmatprep.mubr.msk.f32.mxu0 %vm383_vm0, %v16367_v26  ;;  %v16577_v26 = vld [vmem:[%s16089_s12 + $0x150] sm:$0xff] }
  0x64   : > { %13799 = vmatmul.mubr.msk.f32.gmra.mrb[4].mxu1 %vm383_vm0, %v16377_v12 }
  0x65   : > { %14473 = vmatmul.mubr.msk.f32.gmra.mrb[20].mxu0 %vm383_vm0, %v16382_v28  ;;  %13801 = vmatprep.mubr.msk.f32.mxu1 %vm383_vm0, %v16385_v30  ;;  %v12172_v28 = vld [vmem:[%s16096_s22 + $0xa8] sm:$0xff] }
  0x66   : > { %14475 = vmatprep.mubr.msk.f32.mxu0 %vm383_vm0, %v16388_v32  ;;  %v16563_v32 = vld [vmem:[%s16089_s12 + $0x138] sm:$0xff] }
  0x68   : > { %13802 = vmatmul.mubr.msk.f32.gmra.mrb[6].mxu1 %vm383_vm0, %v16397_v34 }
  0x69   : > { %14476 = vmatmul.mubr.msk.f32.gmra.mrb[22].mxu0 %vm383_vm0, %v16402_v36  ;;  %13804 = vmatprep.mubr.msk.f32.mxu1 %vm383_vm0, %v16405_v38  ;;  %v12170_v36 = vld [vmem:[%s16096_s22 + $0x90] sm:$0xff] }
  0x6a   : > { %14478 = vmatprep.mubr.msk.f32.mxu0 %vm383_vm0, %v16408_v39  ;;  %v16549_v39 = vld [vmem:[%s16089_s12 + $0x120] sm:$0xff] }
  0x6c   : > { %13805 = vmatmul.mubr.msk.f32.gmra.mrb[8].mxu1 %vm383_vm0, %v16417_v40 }
  0x6d   : > { %14479 = vmatmul.mubr.msk.f32.gmra.mrb[24].mxu0 %vm383_vm0, %v16422_v41  ;;  %13807 = vmatprep.mubr.msk.f32.mxu1 %vm383_vm0, %v16425_v42  ;;  %v12168_v41 = vld [vmem:[%s16096_s22 + $0x78] sm:$0xff] }
  0x6e   : > { %14481 = vmatprep.mubr.msk.f32.mxu0 %vm383_vm0, %v16428_v45  ;;  %v12166_v45 = vld [vmem:[%s16096_s22 + $0x60] sm:$0xff] }
  0x70   : > { %13808 = vmatmul.mubr.msk.f32.gmra.mrb[10].mxu1 %vm383_vm0, %v16437_v47 }
  0x71   : > { %14482 = vmatmul.mubr.msk.f32.gmra.mrb[26].mxu0 %vm383_vm0, %v16442_v49  ;;  %13810 = vmatprep.mubr.msk.f32.mxu1 %vm383_vm0, %v16445_v51  ;;  %v16520_v49 = vld [vmem:[%s16089_s12 + $0xf0] sm:$0xff] }
  0x72   : > { %14484 = vmatprep.mubr.msk.f32.mxu0 %vm383_vm0, %v16448_v53  ;;  %v12165_v53 = vld [vmem:[%s16096_s22 + $0x50] sm:$0xff] }
  0x74   : > { %13811 = vmatmul.mubr.msk.f32.gmra.mrb[12].mxu1 %vm383_vm0, %v16457_v55 }
  0x75   : > { %14485 = vmatmul.mubr.msk.f32.gmra.mrb[28].mxu0 %vm383_vm0, %v16462_v57  ;;  %13813 = vmatprep.mubr.msk.f32.mxu1 %vm383_vm0, %v16465_v59  ;;  %v12164_v57 = vld [vmem:[%s16096_s22 + $0x48] sm:$0xff] }
  0x76   : > { %14487 = vmatprep.mubr.msk.f32.mxu0 %vm383_vm0, %v16468_v61  ;;  %v16500_v61 = vld [vmem:[%s16089_s12 + $0xd8] sm:$0xff] }
  0x78   : > { %13814 = vmatmul.mubr.msk.f32.gmra.mrb[14].mxu1 %vm383_vm0, %v16477_v63 }
  0x79   : > { %14488 = vmatmul.mubr.msk.f32.gmra.mrb[30].mxu0 %vm383_vm0, %v16482_v1  ;;  %13816 = vmatprep.mubr.msk.f32.mxu1 %vm383_vm0, %v16485_v3  ;;  %v16508_v1 = vld [vmem:[%s19242_s3 + $0x88] sm:$0xff] }
  0x7a   : > { %14492 = vmatprep.mubr.msk.f32.mxu0 %vm383_vm0, %v12162_v5  ;;  %v16514_v5 = vld [vmem:[%s16089_s12 + $0xe0] sm:$0xff] }
  0x7c   : > { %13817 = vmatmul.mubr.msk.f32.gmra.mrb[16].mxu1 %vm383_vm0, %v16495_v7 }
  0x7d   : > { %14493 = vmatmul.mubr.msk.f32.vlgmr.msra.gmra.mrb[0].mxu0 %vm383_vm0, %v12163_v10  ;;  %13819 = vmatprep.mubr.msk.f32.mxu1 %vm383_vm0, %v16500_v61  ;;  %v16535_v10 = vld [vmem:[%s16089_s12 + $0x108] sm:$0xff] }
  0x7e   : > { %14541 = vmatpush3.msra.mxu0 %v16228_v44  ;;  %14495 = vmatprep.mubr.msk.f32.mxu0 %vm383_vm0, %v12164_v57  ;;  %v16530_v44 = vld [vmem:[%s16089_s12 + $0xf8] sm:$0xff]  ;;  %v12167_v57 = vld [vmem:[%s16096_s22 + $0x68] sm:$0xff] }
  0x7f   : > { %14590 = vmatprep.subr.mxu0 %v16508_v1 }
  0x80   : > { %13820 = vmatmul.mubr.msk.f32.gmra.mrb[18].mxu1 %vm383_vm0, %v16514_v5 }
  0x81   : > { %14496 = vmatmul.mubr.msk.f32.gmra.mrb[2].mxu0 %vm383_vm0, %v12165_v53  ;;  %13822 = vmatprep.mubr.msk.f32.mxu1 %vm383_vm0, %v16520_v49  ;;  %v16544_v53 = vld [vmem:[%s16089_s12 + $0x110] sm:$0xff] }
  0x82   : > { %14498 = vmatprep.mubr.msk.f32.mxu0 %vm383_vm0, %v12166_v45  ;;  %v12169_v45 = vld [vmem:[%s16096_s22 + $0x80] sm:$0xff] }
  0x84   : > { %13823 = vmatmul.mubr.msk.f32.gmra.mrb[20].mxu1 %vm383_vm0, %v16530_v44 }
  0x85   : > { %14499 = vmatmul.mubr.msk.f32.gmra.mrb[4].mxu0 %vm383_vm0, %v12167_v57  ;;  %13825 = vmatprep.mubr.msk.f32.mxu1 %vm383_vm0, %v16535_v10  ;;  %v16558_v57 = vld [vmem:[%s16089_s12 + $0x128] sm:$0xff] }
  0x86   : > { %14501 = vmatprep.mubr.msk.f32.mxu0 %vm383_vm0, %v12168_v41  ;;  %v12171_v41 = vld [vmem:[%s16096_s22 + $0x98] sm:$0xff] }
  0x88   : > { %13826 = vmatmul.mubr.msk.f32.gmra.mrb[22].mxu1 %vm383_vm0, %v16544_v53 }
  0x89   : > { %14502 = vmatmul.mubr.msk.f32.gmra.mrb[6].mxu0 %vm383_vm0, %v12169_v45  ;;  %13828 = vmatprep.mubr.msk.f32.mxu1 %vm383_vm0, %v16549_v39  ;;  %v16572_v45 = vld [vmem:[%s16089_s12 + $0x140] sm:$0xff] }
  0x8a   : > { %14504 = vmatprep.mubr.msk.f32.mxu0 %vm383_vm0, %v12170_v36  ;;  %v12173_v36 = vld [vmem:[%s16096_s22 + $0xb0] sm:$0xff] }
  0x8c   : > { %13829 = vmatmul.mubr.msk.f32.gmra.mrb[24].mxu1 %vm383_vm0, %v16558_v57 }
  0x8d   : > { %14505 = vmatmul.mubr.msk.f32.gmra.mrb[8].mxu0 %vm383_vm0, %v12171_v41  ;;  %13831 = vmatprep.mubr.msk.f32.mxu1 %vm383_vm0, %v16563_v32  ;;  %v16586_v41 = vld [vmem:[%s16089_s12 + $0x158] sm:$0xff] }
  0x8e   : > { %14507 = vmatprep.mubr.msk.f32.mxu0 %vm383_vm0, %v12172_v28  ;;  %v12175_v28 = vld [vmem:[%s16096_s22 + $0xc8] sm:$0xff] }
  0x90   : > { %13832 = vmatmul.mubr.msk.f32.gmra.mrb[26].mxu1 %vm383_vm0, %v16572_v45 }
  0x91   : > { %14508 = vmatmul.mubr.msk.f32.gmra.mrb[10].mxu0 %vm383_vm0, %v12173_v36  ;;  %13834 = vmatprep.mubr.msk.f32.mxu1 %vm383_vm0, %v16577_v26  ;;  %v16600_v36 = vld [vmem:[%s16089_s12 + $0x170] sm:$0xff] }
  0x92   : > { %14510 = vmatprep.mubr.msk.f32.mxu0 %vm383_vm0, %v12174_v22  ;;  %19344 = vst [vmem:[#allocation21_spill] sm:$0xff] %v16600_v36  ;;  %v12177_v22 = vld [vmem:[%s16096_s22 + $0xe0] sm:$0xff] }
  0x94   : > { %13835 = vmatmul.mubr.msk.f32.gmra.mrb[28].mxu1 %vm383_vm0, %v16586_v41 }
  0x95   : > { %14511 = vmatmul.mubr.msk.f32.gmra.mrb[12].mxu0 %vm383_vm0, %v12175_v28  ;;  %13837 = vmatprep.mubr.msk.f32.mxu1 %vm383_vm0, %v16591_v16  ;;  %v1027_v28 = vld [vmem:[%s16089_s12 + $0xa] sm:$0xff]  ;;  %v16614_v16 = vld [vmem:[%s16089_s12 + $0x1a] sm:$0xff] }
  0x96   : > { %14513 = vmatprep.mubr.msk.f32.mxu0 %vm383_vm0, %v12176_v11  ;;  %19345 = vst [vmem:[#allocation22_spill] sm:$0xff] %v16614_v16  ;;  %v12180_v11 = vld [vmem:[%s16096_s22 + $0x108] sm:$0xff] }
  0x98   : > { %13838 = vmatmul.mubr.msk.f32.gmra.mrb[30].mxu1 %vm383_vm0, %v16600_v36  ;;  %v16621_v36 = vld [vmem:[%s19242_s3 + $0x20] sm:$0xff] }
  0x99   : > { %14514 = vmatmul.mubr.msk.f32.gmra.mrb[14].mxu0 %vm383_vm0, %v12177_v22  ;;  %13842 = vmatprep.mubr.msk.f32.mxu1 %vm383_vm0, %v1026_v8  ;;  %v12181_v8 = vld [vmem:[%s16096_s22 + $0x110] sm:$0xff] }
  0x9a   : > { %14516 = vmatprep.mubr.msk.f32.mxu0 %vm383_vm0, %v12178_v6  ;;  %v16626_v6 = vld [vmem:[%s16089_s12 + $0x22] sm:$0xff]  ;;  %v16633_v22 = vld [vmem:[%s16089_s12 + $0x32] sm:$0xff] }
  0x9b   : > { %19346 = vst [vmem:[#allocation23_spill] sm:$0xff] %v16626_v6  ;;  %19347 = vst [vmem:[#allocation24_spill] sm:$0xff] %v16633_v22 }
  0x9c   : > { %13843 = vmatmul.mubr.msk.f32.vlgmr.msra.gmra.mrb[0].mxu1 %vm383_vm0, %v1027_v28  ;;  %v12182_v28 = vld [vmem:[%s16096_s22 + $0x120] sm:$0xff] }
  0x9d   : > { %13891 = vmatpush3.msra.mxu1 %v16348_v18  ;;  %14517 = vmatmul.mubr.msk.f32.gmra.mrb[16].mxu0 %vm383_vm0, %v12179_v4  ;;  %v16643_v4 = vld [vmem:[%s16089_s12 + $0x3a] sm:$0xff]  ;;  %v12183_v18 = vld [vmem:[%s16096_s22 + $0x128] sm:$0xff] }
  0x9e   : > { %13845 = vmatprep.mubr.msk.f32.mxu1 %vm383_vm0, %v16614_v16  ;;  %14519 = vmatprep.mubr.msk.f32.mxu0 %vm383_vm0, %v12180_v11  ;;  %19348 = vst [vmem:[#allocation25_spill] sm:$0xff] %v16643_v4  ;;  %v16648_v11 = vld [vmem:[%s16089_s12 + $0x4a] sm:$0xff]  ;;  %v12184_v16 = vld [vmem:[%s16096_s22 + $0x138] sm:$0xff] }
  0x9f   : > { %13940 = vmatprep.subr.mxu1 %v16621_v36  ;;  %19349 = vst [vmem:[#allocation26_spill] sm:$0xff] %v16648_v11 }
  0xa0   : > { %13846 = vmatmul.mubr.msk.f32.gmra.mrb[2].mxu1 %vm383_vm0, %v16626_v6  ;;  %v12186_v6 = vld [vmem:[%s16096_s22 + $0x150] sm:$0xff] }
  0xa1   : > { %14520 = vmatmul.mubr.msk.f32.gmra.mrb[18].mxu0 %vm383_vm0, %v12181_v8  ;;  %13848 = vmatprep.mubr.msk.f32.mxu1 %vm383_vm0, %v16633_v22  ;;  %v16657_v8 = vld [vmem:[%s16089_s12 + $0x52] sm:$0xff]  ;;  %v16662_v22 = vld [vmem:[%s16089_s12 + $0x62] sm:$0xff] }
  0xa2   : > { %14522 = vmatprep.mubr.msk.f32.mxu0 %vm383_vm0, %v12182_v28  ;;  %19350 = vst [vmem:[#allocation27_spill] sm:$0xff] %v16657_v8  ;;  %v12185_v28 = vld [vmem:[%s16096_s22 + $0x140] sm:$0xff]  ;;  %19351 = vst [vmem:[#allocation28_spill] sm:$0xff] %v16662_v22 }
  0xa4   : > { %13849 = vmatmul.mubr.msk.f32.gmra.mrb[4].mxu1 %vm383_vm0, %v16643_v4  ;;  %v12188_v4 = vld [vmem:[%s16096_s22 + $0x168] sm:$0xff] }
  0xa5   : > { %14523 = vmatmul.mubr.msk.f32.gmra.mrb[20].mxu0 %vm383_vm0, %v12183_v18  ;;  %13851 = vmatprep.mubr.msk.f32.mxu1 %vm383_vm0, %v16648_v11  ;;  %v16671_v18 = vld [vmem:[%s16089_s12 + $0x6a] sm:$0xff]  ;;  %v16676_v11 = vld [vmem:[%s16089_s12 + $0x7a] sm:$0xff] }
  0xa6   : > { %14525 = vmatprep.mubr.msk.f32.mxu0 %vm383_vm0, %v12184_v16  ;;  %19352 = vst [vmem:[#allocation29_spill] sm:$0xff] %v16671_v18  ;;  %v12187_v16 = vld [vmem:[%s16096_s22 + $0x158] sm:$0xff]  ;;  %19353 = vst [vmem:[#allocation30_spill] sm:$0xff] %v16676_v11 }
  0xa8   : > { %13852 = vmatmul.mubr.msk.f32.gmra.mrb[6].mxu1 %vm383_vm0, %v16657_v8  ;;  %v12190_v8 = vld [vmem:[%s16096_s22 + $0x180] sm:$0xff] }
  0xa9   : > { %14526 = vmatmul.mubr.msk.f32.gmra.mrb[22].mxu0 %vm383_vm0, %v12185_v28  ;;  %13854 = vmatprep.mubr.msk.f32.mxu1 %vm383_vm0, %v16662_v22  ;;  %v16685_v28 = vld [vmem:[%s16089_s12 + $0x82] sm:$0xff]  ;;  %v16690_v22 = vld [vmem:[%s16089_s12 + $0x92] sm:$0xff] }
  0xaa   : > { %14528 = vmatprep.mubr.msk.f32.mxu0 %vm383_vm0, %v12186_v6  ;;  %v12189_v6 = vld [vmem:[%s16096_s22 + $0x170] sm:$0xff]  ;;  %19354 = vst [vmem:[#allocation31_spill] sm:$0xff] %v16690_v22 }
  0xac   : > { %13855 = vmatmul.mubr.msk.f32.gmra.mrb[8].mxu1 %vm383_vm0, %v16671_v18  ;;  %v12192_v18 = vld [vmem:[%s16096_s22 + $0x198] sm:$0xff] }
  0xad   : > { %14529 = vmatmul.mubr.msk.f32.gmra.mrb[24].mxu0 %vm383_vm0, %v12187_v16  ;;  %13857 = vmatprep.mubr.msk.f32.mxu1 %vm383_vm0, %v16676_v11  ;;  %v16699_v16 = vld [vmem:[%s16089_s12 + $0x9a] sm:$0xff]  ;;  %v16704_v11 = vld [vmem:[%s16089_s12 + $0xaa] sm:$0xff] }
  0xae   : > { %14531 = vmatprep.mubr.msk.f32.mxu0 %vm383_vm0, %v12188_v4  ;;  %v12191_v4 = vld [vmem:[%s16096_s22 + $0x188] sm:$0xff] }
  0xb0   : > { %13858 = vmatmul.mubr.msk.f32.gmra.mrb[10].mxu1 %vm383_vm0, %v16685_v28 }
  0xb1   : > { %14532 = vmatmul.mubr.msk.f32.gmra.mrb[26].mxu0 %vm383_vm0, %v12189_v6  ;;  %13860 = vmatprep.mubr.msk.f32.mxu1 %vm383_vm0, %v16690_v22  ;;  %v16713_v6 = vld [vmem:[%s16089_s12 + $0xb2] sm:$0xff]  ;;  %v16718_v22 = vld [vmem:[%s16089_s12 + $0xc2] sm:$0xff] }
  0xb2   : > { %14534 = vmatprep.mubr.msk.f32.mxu0 %vm383_vm0, %v12190_v8  ;;  %19355 = vst [vmem:[#allocation32_spill] sm:$0xff] %v16713_v6  ;;  %v12193_v8 = vld [vmem:[%s16096_s22 + $0x1a0] sm:$0xff] }
  0xb4   : > { %13861 = vmatmul.mubr.msk.f32.gmra.mrb[12].mxu1 %vm383_vm0, %v16699_v16 }
  0xb5   : > { %14535 = vmatmul.mubr.msk.f32.gmra.mrb[28].mxu0 %vm383_vm0, %v12191_v4  ;;  %13863 = vmatprep.mubr.msk.f32.mxu1 %vm383_vm0, %v16704_v11  ;;  %v16726_v4 = vld [vmem:[%s16089_s12 + $0xca] sm:$0xff] }
  0xb6   : > { %14537 = vmatprep.mubr.msk.f32.mxu0 %vm383_vm0, %v12192_v18  ;;  %v16731_v18 = vld [vmem:[%s16089_s12 + $0xda] sm:$0xff] }
  0xb8   : > { %13864 = vmatmul.mubr.msk.f32.gmra.mrb[14].mxu1 %vm383_vm0, %v16713_v6  ;;  %v16738_v6 = vld [vmem:[%s19242_s3 + $0x90] sm:$0xff] }
  0xb9   : > { %14538 = vmatmul.mubr.msk.f32.gmra.mrb[30].mxu0 %vm383_vm0, %v12193_v8  ;;  %13866 = vmatprep.mubr.msk.f32.mxu1 %vm383_vm0, %v16718_v22  ;;  %v16745_v8 = vld [vmem:[%s16089_s12 + $0xe2] sm:$0xff] }
  0xba   : > { %14542 = vmatprep.mubr.msk.f32.mxu0 %vm383_vm0, %v16105_v9  ;;  %v16751_v9 = vld [vmem:[%s16089_s12 + $0xf2] sm:$0xff] }
  0xbc   : > { %13867 = vmatmul.mubr.msk.f32.gmra.mrb[16].mxu1 %vm383_vm0, %v16726_v4 }
  0xbd   : > { %14543 = vmatmul.mubr.msk.f32.vlgmr.msra.gmra.mrb[0].mxu0 %vm383_vm0, %v16121_v13  ;;  %13869 = vmatprep.mubr.msk.f32.mxu1 %vm383_vm0, %v16731_v18  ;;  %v16761_v13 = vld [vmem:[%s16089_s12 + $0xfa] sm:$0xff] }
  0xbe   : > { %14591 = vmatpush3.msra.mxu0 %v16508_v1  ;;  %14545 = vmatprep.mubr.msk.f32.mxu0 %vm383_vm0, %v16127_v15  ;;  %v16766_v15 = vld [vmem:[%s16089_s12 + $0x10a] sm:$0xff]  ;;  %v16780_v1 = vld [vmem:[%s16089_s12 + $0x122] sm:$0xff] }
  0xbf   : > { %14640 = vmatprep.subr.mxu0 %v16738_v6 }
  0xc0   : > { %13870 = vmatmul.mubr.msk.f32.gmra.mrb[18].mxu1 %vm383_vm0, %v16745_v8 }
  0xc1   : > { %14546 = vmatmul.mubr.msk.f32.gmra.mrb[2].mxu0 %vm383_vm0, %v16139_v17  ;;  %13872 = vmatprep.mubr.msk.f32.mxu1 %vm383_vm0, %v16751_v9  ;;  %v16775_v17 = vld [vmem:[%s16089_s12 + $0x112] sm:$0xff] }
  0xc2   : > { %14548 = vmatprep.mubr.msk.f32.mxu0 %vm383_vm0, %v16143_v19  ;;  %v16789_v19 = vld [vmem:[%s16089_s12 + $0x12a] sm:$0xff] }
  0xc4   : > { %13873 = vmatmul.mubr.msk.f32.gmra.mrb[20].mxu1 %vm383_vm0, %v16761_v13 }
  0xc5   : > { %14549 = vmatmul.mubr.msk.f32.gmra.mrb[4].mxu0 %vm383_vm0, %v16153_v21  ;;  %13875 = vmatprep.mubr.msk.f32.mxu1 %vm383_vm0, %v16766_v15  ;;  %v16794_v21 = vld [vmem:[%s16089_s12 + $0x13a] sm:$0xff] }
  0xc6   : > { %14551 = vmatprep.mubr.msk.f32.mxu0 %vm383_vm0, %v16157_v23  ;;  %v16803_v23 = vld [vmem:[%s16089_s12 + $0x142] sm:$0xff] }
  0xc8   : > { %13876 = vmatmul.mubr.msk.f32.gmra.mrb[22].mxu1 %vm383_vm0, %v16775_v17 }
  0xc9   : > { %14552 = vmatmul.mubr.msk.f32.gmra.mrb[6].mxu0 %vm383_vm0, %v16167_v25  ;;  %13878 = vmatprep.mubr.msk.f32.mxu1 %vm383_vm0, %v16780_v1  ;;  %v16808_v25 = vld [vmem:[%s16089_s12 + $0x152] sm:$0xff] }
  0xca   : > { %14554 = vmatprep.mubr.msk.f32.mxu0 %vm383_vm0, %v16171_v27  ;;  %19356 = vst [vmem:[#allocation33_spill] sm:$0xff] %v16808_v25  ;;  %v16817_v27 = vld [vmem:[%s16089_s12 + $0x15a] sm:$0xff] }
  0xcc   : > { %13879 = vmatmul.mubr.msk.f32.gmra.mrb[24].mxu1 %vm383_vm0, %v16789_v19 }
  0xcd   : > { %14555 = vmatmul.mubr.msk.f32.gmra.mrb[8].mxu0 %vm383_vm0, %v16181_v29  ;;  %13881 = vmatprep.mubr.msk.f32.mxu1 %vm383_vm0, %v16794_v21  ;;  %v16822_v29 = vld [vmem:[%s16089_s12 + $0x16a] sm:$0xff] }
  0xce   : > { %14557 = vmatprep.mubr.msk.f32.mxu0 %vm383_vm0, %v16185_v31  ;;  %19357 = vst [vmem:[#allocation34_spill] sm:$0xff] %v16822_v29  ;;  %v12241_v31 = vld [vmem:[%s16096_s22 + $0xd9] sm:$0xff] }
  0xd0   : > { %13882 = vmatmul.mubr.msk.f32.gmra.mrb[26].mxu1 %vm383_vm0, %v16803_v23 }
  0xd1   : > { %14558 = vmatmul.mubr.msk.f32.gmra.mrb[10].mxu0 %vm383_vm0, %v16195_v33  ;;  %13884 = vmatprep.mubr.msk.f32.mxu1 %vm383_vm0, %v16808_v25  ;;  %v16832_v33 = vld [vmem:[%s16089_s12 + $0x172] sm:$0xff]  ;;  %v12242_v25 = vld [vmem:[%s16096_s22 + $0xe1] sm:$0xff] }
  0xd2   : > { %14560 = vmatprep.mubr.msk.f32.mxu0 %vm383_vm0, %v16199_v35  ;;  %v12243_v35 = vld [vmem:[%s16096_s22 + $0xf1] sm:$0xff] }
  0xd4   : > { %13885 = vmatmul.mubr.msk.f32.gmra.mrb[28].mxu1 %vm383_vm0, %v16817_v27 }
  0xd5   : > { %14561 = vmatmul.mubr.msk.f32.gmra.mrb[12].mxu0 %vm383_vm0, %v16209_v37  ;;  %13887 = vmatprep.mubr.msk.f32.mxu1 %vm383_vm0, %v16822_v29  ;;  %v12244_v37 = vld [vmem:[%s16096_s22 + $0xf9] sm:$0xff]  ;;  %v12245_v29 = vld [vmem:[%s16096_s22 + $0x109] sm:$0xff] }
  0xd6   : > { %14563 = vmatprep.mubr.msk.f32.mxu0 %vm383_vm0, %v12241_v31  ;;  %v16850_v31 = vld [vmem:[%s19242_s3 + $0x28] sm:$0xff] }
  0xd8   : > { %13888 = vmatmul.mubr.msk.f32.gmra.mrb[30].mxu1 %vm383_vm0, %v16832_v33 }
  0xd9   : > { %14564 = vmatmul.mubr.msk.f32.gmra.mrb[14].mxu0 %vm383_vm0, %v12242_v25  ;;  %13892 = vmatprep.mubr.msk.f32.mxu1 %vm383_vm0, %v16339_v14  ;;  %v12246_v14 = vld [vmem:[%s16096_s22 + $0x111] sm:$0xff]  ;;  %v12247_v25 = vld [vmem:[%s16096_s22 + $0x121] sm:$0xff] }
  0xda   : > { %14566 = vmatprep.mubr.msk.f32.mxu0 %vm383_vm0, %v12243_v35  ;;  %v17065_v35 = vld [vmem:[%s16089_s12 + $0x99] sm:$0xff] }
  0xdc   : > { %13893 = vmatmul.mubr.msk.f32.vlgmr.msra.gmra.mrb[0].mxu1 %vm383_vm0, %v16354_v20  ;;  %v12248_v20 = vld [vmem:[%s16096_s22 + $0x129] sm:$0xff] }
  0xdd   : > { %13941 = vmatpush3.msra.mxu1 %v16621_v36  ;;  %14567 = vmatmul.mubr.msk.f32.gmra.mrb[16].mxu0 %vm383_vm0, %v12244_v37  ;;  %v12251_v36 = vld [vmem:[%s16096_s22 + $0x151] sm:$0xff] }
  0xde   : > { %13895 = vmatprep.mubr.msk.f32.mxu1 %vm383_vm0, %v16364_v24  ;;  %14569 = vmatprep.mubr.msk.f32.mxu0 %vm383_vm0, %v12245_v29  ;;  %v12249_v24 = vld [vmem:[%s16096_s22 + $0x139] sm:$0xff]  ;;  %v19373_v29 = vld [vmem:[#allocation15_spill] sm:$0xff]  ;;  %v19374_v37 = vld [vmem:[#allocation16_spill] sm:$0xff] }
  0xdf   : > { %13990 = vmatprep.subr.mxu1 %v16850_v31 }
  0xe0   : > { %13896 = vmatmul.mubr.msk.f32.gmra.mrb[2].mxu1 %vm383_vm0, %v16377_v12  ;;  %v12250_v12 = vld [vmem:[%s16096_s22 + $0x141] sm:$0xff] }
  0xe1   : > { %14570 = vmatmul.mubr.msk.f32.gmra.mrb[18].mxu0 %vm383_vm0, %v12246_v14  ;;  %13898 = vmatprep.mubr.msk.f32.mxu1 %vm383_vm0, %v16385_v30  ;;  %v12252_v30 = vld [vmem:[%s16096_s22 + $0x159] sm:$0xff] }
  0xe2   : > { %14572 = vmatprep.mubr.msk.f32.mxu0 %vm383_vm0, %v12247_v25  ;;  %v19375_v14 = vld [vmem:[#allocation17_spill] sm:$0xff] }
  0xe3   : > { %v17079_v25 = vld [vmem:[%s16089_s12 + $0xb1] sm:$0xff] }
  0xe4   : > { %13899 = vmatmul.mubr.msk.f32.gmra.mrb[4].mxu1 %vm383_vm0, %v16397_v34  ;;  %v12253_v34 = vld [vmem:[%s16096_s22 + $0x169] sm:$0xff] }
  0xe5   : > { %14573 = vmatmul.mubr.msk.f32.gmra.mrb[20].mxu0 %vm383_vm0, %v12248_v20  ;;  %13901 = vmatprep.mubr.msk.f32.mxu1 %vm383_vm0, %v16405_v38  ;;  %v12254_v38 = vld [vmem:[%s16096_s22 + $0x171] sm:$0xff]  ;;  %v19376_v20 = vld [vmem:[#allocation18_spill] sm:$0xff] }
  0xe6   : > { %14575 = vmatprep.mubr.msk.f32.mxu0 %vm383_vm0, %v12249_v24  ;;  %v17084_v24 = vld [vmem:[%s16089_s12 + $0xc1] sm:$0xff] }
  0xe8   : > { %13902 = vmatmul.mubr.msk.f32.gmra.mrb[6].mxu1 %vm383_vm0, %v16417_v40  ;;  %v12255_v40 = vld [vmem:[%s16096_s22 + $0x181] sm:$0xff] }
  0xe9   : > { %14576 = vmatmul.mubr.msk.f32.gmra.mrb[22].mxu0 %vm383_vm0, %v12250_v12  ;;  %13904 = vmatprep.mubr.msk.f32.mxu1 %vm383_vm0, %v16425_v42  ;;  %v12256_v42 = vld [vmem:[%s16096_s22 + $0x189] sm:$0xff]  ;;  %v12322_v12 = vld [vmem:[%s16096_s22 + $0x19a] sm:$0xff] }
  0xea   : > { %14578 = vmatprep.mubr.msk.f32.mxu0 %vm383_vm0, %v12251_v36  ;;  %v19377_v36 = vld [vmem:[#allocation19_spill] sm:$0xff] }
  0xec   : > { %13905 = vmatmul.mubr.msk.f32.gmra.mrb[8].mxu1 %vm383_vm0, %v16437_v47  ;;  %v12257_v47 = vld [vmem:[%s16096_s22 + $0x199] sm:$0xff] }
  0xed   : > { %14579 = vmatmul.mubr.msk.f32.gmra.mrb[24].mxu0 %vm383_vm0, %v12252_v30  ;;  %13907 = vmatprep.mubr.msk.f32.mxu1 %vm383_vm0, %v16445_v51  ;;  %v12258_v51 = vld [vmem:[%s16096_s22 + $0x1a1] sm:$0xff]  ;;  %v17099_v30 = vld [vmem:[%s16089_s12 + $0xc9] sm:$0xff] }
  0xee   : > { %14581 = vmatprep.mubr.msk.f32.mxu0 %vm383_vm0, %v12253_v34  ;;  %v12323_v34 = vld [vmem:[%s16096_s22 + $0x1a2] sm:$0xff] }
  0xf0   : > { %13908 = vmatmul.mubr.msk.f32.gmra.mrb[10].mxu1 %vm383_vm0, %v16457_v55  ;;  %v16919_v55 = vld [vmem:[%s19242_s3 + $0x98] sm:$0xff] }
  0xf1   : > { %14582 = vmatmul.mubr.msk.f32.gmra.mrb[26].mxu0 %vm383_vm0, %v12254_v38  ;;  %13910 = vmatprep.mubr.msk.f32.mxu1 %vm383_vm0, %v16465_v59  ;;  %v17012_v59 = vld [vmem:[%s16089_s12 + $0x49] sm:$0xff]  ;;  %v17104_v38 = vld [vmem:[%s16089_s12 + $0xd9] sm:$0xff] }
  0xf2   : > { %14584 = vmatprep.mubr.msk.f32.mxu0 %vm383_vm0, %v12255_v40  ;;  %v7222_v40 = vld [vmem:[%s17092_s30] sm:$0xff] }
  0xf4   : > { %13911 = vmatmul.mubr.msk.f32.gmra.mrb[12].mxu1 %vm383_vm0, %v16477_v63  ;;  %v17022_v63 = vld [vmem:[%s16089_s12 + $0x51] sm:$0xff] }
  0xf5   : > { %14585 = vmatmul.mubr.msk.f32.gmra.mrb[28].mxu0 %vm383_vm0, %v12256_v42  ;;  %13913 = vmatprep.mubr.msk.f32.mxu1 %vm383_vm0, %v16485_v3  ;;  %v19368_v3 = vld [vmem:[#allocation10_spill] sm:$0xff] }
  0xf6   : > { %14587 = vmatprep.mubr.msk.f32.mxu0 %vm383_vm0, %v12257_v47  ;;  %v17113_v42 = vld [vmem:[%s16089_s12 + $0xe1] sm:$0xff] }
  0xf7   : > { %v7223_v47 = vld [vmem:[%s17092_s30 + $0x8] sm:$0xff] }
  0xf8   : > { %13914 = vmatmul.mubr.msk.f32.gmra.mrb[14].mxu1 %vm383_vm0, %v16495_v7  ;;  %v17027_v7 = vld [vmem:[%s16089_s12 + $0x61] sm:$0xff] }
  0xf9   : > { %14588 = vmatmul.mubr.msk.f32.gmra.mrb[30].mxu0 %vm383_vm0, %v12258_v51  ;;  %13916 = vmatprep.mubr.msk.f32.mxu1 %vm383_vm0, %v16500_v61  ;;  %v19367_v61 = vld [vmem:[#allocation9_spill] sm:$0xff] }
  0xfa   : > { %14592 = vmatprep.mubr.msk.f32.mxu0 %vm383_vm0, %v16222_v43  ;;  %v19358_v43 = vld [vmem:[#allocation20_spill] sm:$0xff] }
  0xfb   : > { %v17118_v51 = vld [vmem:[%s16089_s12 + $0xf1] sm:$0xff] }
  0xfc   : > { %13917 = vmatmul.mubr.msk.f32.gmra.mrb[16].mxu1 %vm383_vm0, %v16514_v5  ;;  %v19369_v5 = vld [vmem:[#allocation11_spill] sm:$0xff] }
  0xfd   : > { %14593 = vmatmul.mubr.msk.f32.vlgmr.msra.gmra.mrb[0].mxu0 %vm383_vm0, %v16237_v46  ;;  %13919 = vmatprep.mubr.msk.f32.mxu1 %vm383_vm0, %v16520_v49  ;;  %v19359_v46 = vld [vmem:[#allocation2_spill] sm:$0xff]  ;;  %v19366_v49 = vld [vmem:[#allocation8_spill] sm:$0xff] }
  0xfe   : > { %14641 = vmatpush3.msra.mxu0 %v16738_v6  ;;  %14595 = vmatprep.mubr.msk.f32.mxu0 %vm383_vm0, %v16241_v48  ;;  %v16970_v48 = vld [vmem:[%s16089_s12 + $0x180] sm:$0xff]  ;;  %v17056_v6 = vld [vmem:[%s16089_s12 + $0x91] sm:$0xff] }
  0xff   : > { %14690 = vmatprep.subr.mxu0 %v16919_v55 }
 0x100   : > { %13920 = vmatmul.mubr.msk.f32.gmra.mrb[18].mxu1 %vm383_vm0, %v16530_v44  ;;  %v17036_v44 = vld [vmem:[%s16089_s12 + $0x69] sm:$0xff] }
 0x101   : > { %14596 = vmatmul.mubr.msk.f32.gmra.mrb[2].mxu0 %vm383_vm0, %v16252_v50  ;;  %13922 = vmatprep.mubr.msk.f32.mxu1 %vm383_vm0, %v16535_v10  ;;  %v19360_v50 = vld [vmem:[#allocation21_spill] sm:$0xff]  ;;  %v19370_v10 = vld [vmem:[#allocation12_spill] sm:$0xff] }
 0x102   : > { %14598 = vmatprep.mubr.msk.f32.mxu0 %vm383_vm0, %v16256_v52  ;;  %v19361_v52 = vld [vmem:[#allocation3_spill] sm:$0xff] }
 0x104   : > { %13923 = vmatmul.mubr.msk.f32.gmra.mrb[20].mxu1 %vm383_vm0, %v16544_v53  ;;  %v17042_v53 = vld [vmem:[%s16089_s12 + $0x79] sm:$0xff] }
 0x105   : > { %14599 = vmatmul.mubr.msk.f32.gmra.mrb[4].mxu0 %vm383_vm0, %v16266_v54  ;;  %13925 = vmatprep.mubr.msk.f32.mxu1 %vm383_vm0, %v16549_v39  ;;  %v16979_v54 = vld [vmem:[%s16089_s12 + $0x188] sm:$0xff]  ;;  %v17005_v39 = vld [vmem:[%s16089_s12 + $0x39] sm:$0xff] }
 0x106   : > { %14601 = vmatprep.mubr.msk.f32.mxu0 %vm383_vm0, %v16270_v56  ;;  %v19362_v56 = vld [vmem:[#allocation4_spill] sm:$0xff] }
 0x108   : > { %13926 = vmatmul.mubr.msk.f32.gmra.mrb[22].mxu1 %vm383_vm0, %v16558_v57  ;;  %v19371_v57 = vld [vmem:[#allocation13_spill] sm:$0xff] }
 0x109   : > { %14602 = vmatmul.mubr.msk.f32.gmra.mrb[6].mxu0 %vm383_vm0, %v16280_v58  ;;  %13928 = vmatprep.mubr.msk.f32.mxu1 %vm383_vm0, %v16563_v32  ;;  %v11543_v58 = vld [vmem:[%s16089_s12 + $0x19] sm:$0xff]  ;;  %v19365_v32 = vld [vmem:[#allocation7_spill] sm:$0xff] }
 0x10a   : > { %14604 = vmatprep.mubr.msk.f32.mxu0 %vm383_vm0, %v16284_v60  ;;  %v19363_v60 = vld [vmem:[#allocation5_spill] sm:$0xff] }
 0x10c   : > { %13929 = vmatmul.mubr.msk.f32.gmra.mrb[24].mxu1 %vm383_vm0, %v16572_v45  ;;  %v17051_v45 = vld [vmem:[%s16089_s12 + $0x81] sm:$0xff] }
 0x10d   : > { %14605 = vmatmul.mubr.msk.f32.gmra.mrb[8].mxu0 %vm383_vm0, %v16294_v62  ;;  %13931 = vmatprep.mubr.msk.f32.mxu1 %vm383_vm0, %v16577_v26  ;;  %v11544_v62 = vld [vmem:[%s16089_s12 + $0x21] sm:$0xff]  ;;  %v16999_v26 = vld [vmem:[%s19242_s3 + $0x30] sm:$0xff] }
 0x10e   : > { %14607 = vmatprep.mubr.msk.f32.mxu0 %vm383_vm0, %v16298_v0  ;;  %v19364_v0 = vld [vmem:[#allocation6_spill] sm:$0xff] }
 0x110   : > { %13932 = vmatmul.mubr.msk.f32.gmra.mrb[26].mxu1 %vm383_vm0, %v16586_v41  ;;  %v19372_v41 = vld [vmem:[#allocation14_spill] sm:$0xff] }
 0x111   : > { %14608 = vmatmul.mubr.msk.f32.gmra.mrb[10].mxu0 %vm383_vm0, %v16308_v2  ;;  %13934 = vmatprep.mubr.msk.f32.mxu1 %vm383_vm0, %v19358_v43  ;;  %v16993_v2 = vld [vmem:[%s16089_s12 + $0x31] sm:$0xff] }
 0x112   : > { %14610 = vmatprep.mubr.msk.f32.mxu0 %vm383_vm0, %v19359_v46  ;;  %v17121_v43 = vld [vmem:[%s17092_s30 + $0x18] sm:$0xff]  ;;  %v17128_v46 = vld [vmem:[%s19242_s3 + $0xa0] sm:$0xff] }
 0x114   : > { %13935 = vmatmul.mubr.msk.f32.gmra.mrb[28].mxu1 %vm383_vm0, %v19360_v50  ;;  %v17134_v50 = vld [vmem:[%s16089_s12 + $0xf9] sm:$0xff] }
 0x115   : > { %14611 = vmatmul.mubr.msk.f32.gmra.mrb[12].mxu0 %vm383_vm0, %v19361_v52  ;;  %13937 = vmatprep.mubr.msk.f32.mxu1 %vm383_vm0, %v16970_v48  ;;  %v17140_v52 = vld [vmem:[%s17092_s30 + $0x20] sm:$0xff] }
 0x116   : > { %14613 = vmatprep.mubr.msk.f32.mxu0 %vm383_vm0, %v19362_v56  ;;  %v17143_v56 = vld [vmem:[%s16089_s12 + $0x109] sm:$0xff] }
 0x118   : > { %13938 = vmatmul.mubr.msk.f32.gmra.mrb[30].mxu1 %vm383_vm0, %v16979_v54 }
 0x119   : > { %14614 = vmatmul.mubr.msk.f32.gmra.mrb[14].mxu0 %vm383_vm0, %v19363_v60  ;;  %13942 = vmatprep.mubr.msk.f32.mxu1 %vm383_vm0, %v11543_v58  ;;  %v17146_v58 = vld [vmem:[%s17092_s30 + $0x30] sm:$0xff]  ;;  %v17161_v60 = vld [vmem:[%s17092_s30 + $0x38] sm:$0xff] }
 0x11a   : > { %14616 = vmatprep.mubr.msk.f32.mxu0 %vm383_vm0, %v19364_v0  ;;  %v17167_v0 = vld [vmem:[%s17092_s30 + $0x48] sm:$0xff] }
 0x11c   : > { %13943 = vmatmul.mubr.msk.f32.vlgmr.msra.gmra.mrb[0].mxu1 %vm383_vm0, %v11544_v62  ;;  %v17164_v62 = vld [vmem:[%s16089_s12 + $0x121] sm:$0xff] }
 0x11d   : > { %13991 = vmatpush3.msra.mxu1 %v16850_v31  ;;  %14617 = vmatmul.mubr.msk.f32.gmra.mrb[16].mxu0 %vm383_vm0, %v19365_v32  ;;  %v17070_v31 = vld [vmem:[%s16089_s12 + $0xa9] sm:$0xff] }
 0x11e   : > { %13945 = vmatprep.mubr.msk.f32.mxu1 %vm383_vm0, %v16993_v2  ;;  %14619 = vmatprep.mubr.msk.f32.mxu0 %vm383_vm0, %v19366_v49  ;;  %v17176_v32 = vld [vmem:[%s16089_s12 + $0x129] sm:$0xff] }
 0x11f   : > { %14040 = vmatprep.subr.mxu1 %v16999_v26  ;;  %v17181_v49 = vld [vmem:[%s17092_s30 + $0x50] sm:$0xff] }
 0x120   : > { %13946 = vmatmul.mubr.msk.f32.gmra.mrb[2].mxu1 %vm383_vm0, %v17005_v39 }
 0x121   : > { %14620 = vmatmul.mubr.msk.f32.gmra.mrb[18].mxu0 %vm383_vm0, %v19367_v61  ;;  %13948 = vmatprep.mubr.msk.f32.mxu1 %vm383_vm0, %v17012_v59  ;;  %v17184_v61 = vld [vmem:[%s16089_s12 + $0x139] sm:$0xff] }
 0x122   : > { %14622 = vmatprep.mubr.msk.f32.mxu0 %vm383_vm0, %v19368_v3  ;;  %v17187_v3 = vld [vmem:[%s17092_s30 + $0x60] sm:$0xff] }
 0x124   : > { %13949 = vmatmul.mubr.msk.f32.gmra.mrb[4].mxu1 %vm383_vm0, %v17022_v63 }
 0x125   : > { %14623 = vmatmul.mubr.msk.f32.gmra.mrb[20].mxu0 %vm383_vm0, %v19369_v5  ;;  %13951 = vmatprep.mubr.msk.f32.mxu1 %vm383_vm0, %v17027_v7  ;;  %v17196_v5 = vld [vmem:[%s16089_s12 + $0x141] sm:$0xff] }
 0x126   : > { %14625 = vmatprep.mubr.msk.f32.mxu0 %vm383_vm0, %v19370_v10  ;;  %v17201_v10 = vld [vmem:[%s17092_s30 + $0x68] sm:$0xff] }
 0x128   : > { %13952 = vmatmul.mubr.msk.f32.gmra.mrb[6].mxu1 %vm383_vm0, %v17036_v44 }
 0x129   : > { %14626 = vmatmul.mubr.msk.f32.gmra.mrb[22].mxu0 %vm383_vm0, %v19371_v57  ;;  %13954 = vmatprep.mubr.msk.f32.mxu1 %vm383_vm0, %v17042_v53  ;;  %v17204_v57 = vld [vmem:[%s16089_s12 + $0x151] sm:$0xff] }
 0x12a   : > { %14628 = vmatprep.mubr.msk.f32.mxu0 %vm383_vm0, %v19372_v41  ;;  %v17207_v41 = vld [vmem:[%s17092_s30 + $0x78] sm:$0xff] }
 0x12c   : > { %13955 = vmatmul.mubr.msk.f32.gmra.mrb[8].mxu1 %vm383_vm0, %v17051_v45 }
 0x12d   : > { %14629 = vmatmul.mubr.msk.f32.gmra.mrb[24].mxu0 %vm383_vm0, %v19373_v29  ;;  %13957 = vmatprep.mubr.msk.f32.mxu1 %vm383_vm0, %v17056_v6  ;;  %v17216_v29 = vld [vmem:[%s16089_s12 + $0x159] sm:$0xff] }
 0x12e   : > { %14631 = vmatprep.mubr.msk.f32.mxu0 %vm383_vm0, %v19374_v37  ;;  %v17221_v37 = vld [vmem:[%s17092_s30 + $0x80] sm:$0xff] }
 0x130   : > { %13958 = vmatmul.mubr.msk.f32.gmra.mrb[10].mxu1 %vm383_vm0, %v17065_v35 }
 0x131   : > { %14632 = vmatmul.mubr.msk.f32.gmra.mrb[26].mxu0 %vm383_vm0, %v19375_v14  ;;  %13960 = vmatprep.mubr.msk.f32.mxu1 %vm383_vm0, %v17070_v31  ;;  %v17224_v14 = vld [vmem:[%s16089_s12 + $0x169] sm:$0xff] }
 0x132   : > { %14634 = vmatprep.mubr.msk.f32.mxu0 %vm383_vm0, %v19376_v20  ;;  %19378 = vst [vmem:[#allocation20_spill] sm:$0xff] %v17224_v14  ;;  %v17227_v20 = vld [vmem:[%s17092_s30 + $0x90] sm:$0xff] }
 0x133   : > { %19379 = vst [vmem:[#allocation2_spill] sm:$0xff] %v17227_v20 }
 0x134   : > { %13961 = vmatmul.mubr.msk.f32.gmra.mrb[12].mxu1 %vm383_vm0, %v17079_v25 }
 0x135   : > { %14635 = vmatmul.mubr.msk.f32.gmra.mrb[28].mxu0 %vm383_vm0, %v19377_v36  ;;  %13963 = vmatprep.mubr.msk.f32.mxu1 %vm383_vm0, %v17084_v24  ;;  %v17241_v36 = vld [vmem:[%s17092_s30 + $0x98] sm:$0xff] }
 0x136   : > { %14637 = vmatprep.mubr.msk.f32.mxu0 %vm383_vm0, %v12322_v12  ;;  %v17236_v12 = vld [vmem:[%s16089_s12 + $0x171] sm:$0xff]  ;;  %19381 = vst [vmem:[#allocation3_spill] sm:$0xff] %v17241_v36 }
 0x137   : > { %19380 = vst [vmem:[#allocation21_spill] sm:$0xff] %v17236_v12 }
 0x138   : > { %13964 = vmatmul.mubr.msk.f32.gmra.mrb[14].mxu1 %vm383_vm0, %v17099_v30 }
 0x139   : > { %14638 = vmatmul.mubr.msk.f32.gmra.mrb[30].mxu0 %vm383_vm0, %v12323_v34  ;;  %13966 = vmatprep.mubr.msk.f32.mxu1 %vm383_vm0, %v17104_v38  ;;  %v17244_v34 = vld [vmem:[%s16089_s12 + $0x181] sm:$0xff] }
 0x13a   : > { %14642 = vmatprep.mubr.msk.f32.mxu0 %vm383_vm0, %v7222_v40  ;;  %19382 = vst [vmem:[#allocation4_spill] sm:$0xff] %v17244_v34  ;;  %v17247_v40 = vld [vmem:[%s17092_s30 + $0xa8] sm:$0xff] }
 0x13b   : > { %19383 = vst [vmem:[#allocation5_spill] sm:$0xff] %v17247_v40 }
 0x13c   : > { %13967 = vmatmul.mubr.msk.f32.gmra.mrb[16].mxu1 %vm383_vm0, %v17113_v42 }
 0x13d   : > { %14643 = vmatmul.mubr.msk.f32.vlgmr.msra.gmra.mrb[0].mxu0 %vm383_vm0, %v7223_v47  ;;  %13969 = vmatprep.mubr.msk.f32.mxu1 %vm383_vm0, %v17118_v51  ;;  %v17256_v47 = vld [vmem:[%s16089_s12 + $0x189] sm:$0xff] }
 0x13e   : > { %14691 = vmatpush3.msra.mxu0 %v16919_v55  ;;  %14645 = vmatprep.mubr.msk.f32.mxu0 %vm383_vm0, %v17121_v43  ;;  %v17156_v55 = vld [vmem:[%s16089_s12 + $0x111] sm:$0xff]  ;;  %19384 = vst [vmem:[#allocation6_spill] sm:$0xff] %v17256_v47 }
 0x13f   : > { %14740 = vmatprep.subr.mxu0 %v17128_v46 }
 0x140   : > { %13970 = vmatmul.mubr.msk.f32.gmra.mrb[18].mxu1 %vm383_vm0, %v17134_v50 }
 0x141   : > { %14646 = vmatmul.mubr.msk.f32.gmra.mrb[2].mxu0 %vm383_vm0, %v17140_v52  ;;  %13972 = vmatprep.mubr.msk.f32.mxu1 %vm383_vm0, %v17143_v56 }
 0x142   : > { %14648 = vmatprep.mubr.msk.f32.mxu0 %vm383_vm0, %v17146_v58 }
 0x144   : > { %13973 = vmatmul.mubr.msk.f32.gmra.mrb[20].mxu1 %vm383_vm0, %v17156_v55 }
 0x145   : > { %14649 = vmatmul.mubr.msk.f32.gmra.mrb[4].mxu0 %vm383_vm0, %v17161_v60  ;;  %13975 = vmatprep.mubr.msk.f32.mxu1 %vm383_vm0, %v17164_v62 }
 0x146   : > { %14651 = vmatprep.mubr.msk.f32.mxu0 %vm383_vm0, %v17167_v0 }
 0x148   : > { %13976 = vmatmul.mubr.msk.f32.gmra.mrb[22].mxu1 %vm383_vm0, %v17176_v32 }
 0x149   : > { %14652 = vmatmul.mubr.msk.f32.gmra.mrb[6].mxu0 %vm383_vm0, %v17181_v49  ;;  %13978 = vmatprep.mubr.msk.f32.mxu1 %vm383_vm0, %v17184_v61 }
 0x14a   : > { %14654 = vmatprep.mubr.msk.f32.mxu0 %vm383_vm0, %v17187_v3 }
 0x14c   : > { %13979 = vmatmul.mubr.msk.f32.gmra.mrb[24].mxu1 %vm383_vm0, %v17196_v5 }
 0x14d   : > { %14655 = vmatmul.mubr.msk.f32.gmra.mrb[8].mxu0 %vm383_vm0, %v17201_v10  ;;  %13981 = vmatprep.mubr.msk.f32.mxu1 %vm383_vm0, %v17204_v57 }
 0x14e   : > { %14657 = vmatprep.mubr.msk.f32.mxu0 %vm383_vm0, %v17207_v41 }
 0x150   : > { %13982 = vmatmul.mubr.msk.f32.gmra.mrb[26].mxu1 %vm383_vm0, %v17216_v29 }
 0x151   : > { %14658 = vmatmul.mubr.msk.f32.gmra.mrb[10].mxu0 %vm383_vm0, %v17221_v37  ;;  %13984 = vmatprep.mubr.msk.f32.mxu1 %vm383_vm0, %v17224_v14  ;;  %v17264_v14 = vld [vmem:[%s17092_s30 + $0xc0] sm:$0xff] }
 0x152   : > { %14660 = vmatprep.mubr.msk.f32.mxu0 %vm383_vm0, %v17227_v20  ;;  %v17261_v20 = vld [vmem:[%s17092_s30 + $0xb0] sm:$0xff]  ;;  %19386 = vst [vmem:[#allocation8_spill] sm:$0xff] %v17264_v14 }
 0x153   : > { %19385 = vst [vmem:[#allocation7_spill] sm:$0xff] %v17261_v20 }
 0x154   : > { %13985 = vmatmul.mubr.msk.f32.gmra.mrb[28].mxu1 %vm383_vm0, %v17236_v12  ;;  %v19390_v12 = vld [vmem:[#allocation23_spill] sm:$0xff] }
 0x155   : > { %14661 = vmatmul.mubr.msk.f32.gmra.mrb[12].mxu0 %vm383_vm0, %v17241_v36  ;;  %13987 = vmatprep.mubr.msk.f32.mxu1 %vm383_vm0, %v17244_v34  ;;  %v19387_v36 = vld [vmem:[#allocation22_spill] sm:$0xff]  ;;  %v17275_v34 = vld [vmem:[%s17092_s30 + $0xc8] sm:$0xff] }
 0x156   : > { %14663 = vmatprep.mubr.msk.f32.mxu0 %vm383_vm0, %v17247_v40  ;;  %19388 = vst [vmem:[#allocation9_spill] sm:$0xff] %v17275_v34  ;;  %v17278_v40 = vld [vmem:[%s17092_s30 + $0xd8] sm:$0xff] }
 0x157   : > { %19389 = vst [vmem:[#allocation10_spill] sm:$0xff] %v17278_v40 }
 0x158   : > { %13988 = vmatmul.mubr.msk.f32.gmra.mrb[30].mxu1 %vm383_vm0, %v17256_v47  ;;  %v17285_v47 = vld [vmem:[%s19242_s3 + $0x38] sm:$0xff] }
 0x159   : > { %14664 = vmatmul.mubr.msk.f32.gmra.mrb[14].mxu0 %vm383_vm0, %v17261_v20  ;;  %13992 = vmatprep.mubr.msk.f32.mxu1 %vm383_vm0, %v19387_v36  ;;  %v19391_v36 = vld [vmem:[#allocation24_spill] sm:$0xff]  ;;  %v19394_v20 = vld [vmem:[#allocation25_spill] sm:$0xff] }
 0x15a   : > { %14666 = vmatprep.mubr.msk.f32.mxu0 %vm383_vm0, %v17264_v14  ;;  %v17295_v14 = vld [vmem:[%s17092_s30 + $0xe0] sm:$0xff] }
 0x15b   : > { %19392 = vst [vmem:[#allocation11_spill] sm:$0xff] %v17295_v14 }
 0x15c   : > { %13993 = vmatmul.mubr.msk.f32.vlgmr.msra.gmra.mrb[0].mxu1 %vm383_vm0, %v19390_v12  ;;  %v17298_v12 = vld [vmem:[%s17092_s30 + $0xf0] sm:$0xff] }
 0x15d   : > { %14041 = vmatpush3.msra.mxu1 %v16999_v26  ;;  %14667 = vmatmul.mubr.msk.f32.gmra.mrb[16].mxu0 %vm383_vm0, %v17275_v34  ;;  %19393 = vst [vmem:[#allocation12_spill] sm:$0xff] %v17298_v12  ;;  %v19395_v26 = vld [vmem:[#allocation26_spill] sm:$0xff]  ;;  %v19397_v34 = vld [vmem:[#allocation27_spill] sm:$0xff] }
 0x15e   : > { %13995 = vmatprep.mubr.msk.f32.mxu1 %vm383_vm0, %v19391_v36  ;;  %14669 = vmatprep.mubr.msk.f32.mxu0 %vm383_vm0, %v17278_v40  ;;  %v17310_v36 = vld [vmem:[%s17092_s30 + $0xf8] sm:$0xff]  ;;  %v17313_v40 = vld [vmem:[%s17092_s30 + $0x108] sm:$0xff] }
 0x15f   : > { %14090 = vmatprep.subr.mxu1 %v17285_v47  ;;  %19396 = vst [vmem:[#allocation13_spill] sm:$0xff] %v17313_v40 }
 0x160   : > { %13996 = vmatmul.mubr.msk.f32.gmra.mrb[2].mxu1 %vm383_vm0, %v19394_v20  ;;  %v19398_v20 = vld [vmem:[#allocation28_spill] sm:$0xff] }
 0x161   : > { %14670 = vmatmul.mubr.msk.f32.gmra.mrb[18].mxu0 %vm383_vm0, %v17295_v14  ;;  %13998 = vmatprep.mubr.msk.f32.mxu1 %vm383_vm0, %v19395_v26  ;;  %v17324_v26 = vld [vmem:[%s17092_s30 + $0x110] sm:$0xff]  ;;  %v19400_v14 = vld [vmem:[#allocation29_spill] sm:$0xff] }
 0x162   : > { %14672 = vmatprep.mubr.msk.f32.mxu0 %vm383_vm0, %v17298_v12  ;;  %v17327_v12 = vld [vmem:[%s17092_s30 + $0x120] sm:$0xff] }
 0x163   : > { %19399 = vst [vmem:[#allocation14_spill] sm:$0xff] %v17327_v12 }
 0x164   : > { %13999 = vmatmul.mubr.msk.f32.gmra.mrb[4].mxu1 %vm383_vm0, %v19397_v34  ;;  %v19401_v34 = vld [vmem:[#allocation30_spill] sm:$0xff] }
 0x165   : > { %14673 = vmatmul.mubr.msk.f32.gmra.mrb[20].mxu0 %vm383_vm0, %v17310_v36  ;;  %14001 = vmatprep.mubr.msk.f32.mxu1 %vm383_vm0, %v19398_v20  ;;  %v17338_v20 = vld [vmem:[%s17092_s30 + $0x128] sm:$0xff] }
 0x166   : > { %14675 = vmatprep.mubr.msk.f32.mxu0 %vm383_vm0, %v17313_v40  ;;  %v17341_v40 = vld [vmem:[%s17092_s30 + $0x138] sm:$0xff] }
 0x167   : > { %19402 = vst [vmem:[#allocation15_spill] sm:$0xff] %v17341_v40 }
 0x168   : > { %14002 = vmatmul.mubr.msk.f32.gmra.mrb[6].mxu1 %vm383_vm0, %v19400_v14  ;;  %v19403_v14 = vld [vmem:[#allocation31_spill] sm:$0xff] }
 0x169   : > { %14676 = vmatmul.mubr.msk.f32.gmra.mrb[22].mxu0 %vm383_vm0, %v17324_v26  ;;  %14004 = vmatprep.mubr.msk.f32.mxu1 %vm383_vm0, %v19401_v34  ;;  %v17352_v34 = vld [vmem:[%s17092_s30 + $0x140] sm:$0xff] }
 0x16a   : > { %14678 = vmatprep.mubr.msk.f32.mxu0 %vm383_vm0, %v17327_v12  ;;  %v17355_v12 = vld [vmem:[%s17092_s30 + $0x150] sm:$0xff] }
 0x16c   : > { %14005 = vmatmul.mubr.msk.f32.gmra.mrb[8].mxu1 %vm383_vm0, %v16685_v28  ;;  %v17366_v28 = vld [vmem:[%s17092_s30 + $0x158] sm:$0xff] }
 0x16d   : > { %14679 = vmatmul.mubr.msk.f32.gmra.mrb[24].mxu0 %vm383_vm0, %v17338_v20  ;;  %14007 = vmatprep.mubr.msk.f32.mxu1 %vm383_vm0, %v19403_v14  ;;  %v17369_v14 = vld [vmem:[%s17092_s30 + $0x168] sm:$0xff] }
 0x16e   : > { %14681 = vmatprep.mubr.msk.f32.mxu0 %vm383_vm0, %v17341_v40  ;;  %v19404_v40 = vld [vmem:[#allocation32_spill] sm:$0xff] }
 0x170   : > { %14008 = vmatmul.mubr.msk.f32.gmra.mrb[10].mxu1 %vm383_vm0, %v16699_v16  ;;  %v7609_v16 = vld [vmem:[%s17092_s30 + $0x1] sm:$0xff] }
 0x171   : > { %14682 = vmatmul.mubr.msk.f32.gmra.mrb[26].mxu0 %vm383_vm0, %v17352_v34  ;;  %14010 = vmatprep.mubr.msk.f32.mxu1 %vm383_vm0, %v16704_v11  ;;  %v17380_v11 = vld [vmem:[%s17092_s30 + $0x170] sm:$0xff] }
 0x172   : > { %14684 = vmatprep.mubr.msk.f32.mxu0 %vm383_vm0, %v17355_v12 }
 0x174   : > { %14011 = vmatmul.mubr.msk.f32.gmra.mrb[12].mxu1 %vm383_vm0, %v19404_v40  ;;  %v17392_v40 = vld [vmem:[%s17092_s30 + $0x19] sm:$0xff] }
 0x175   : > { %14685 = vmatmul.mubr.msk.f32.gmra.mrb[28].mxu0 %vm383_vm0, %v17366_v28  ;;  %14013 = vmatprep.mubr.msk.f32.mxu1 %vm383_vm0, %v16718_v22  ;;  %v7610_v22 = vld [vmem:[%s17092_s30 + $0x9] sm:$0xff] }
 0x176   : > { %14687 = vmatprep.mubr.msk.f32.mxu0 %vm383_vm0, %v17369_v14 }
 0x178   : > { %14014 = vmatmul.mubr.msk.f32.gmra.mrb[14].mxu1 %vm383_vm0, %v16726_v4  ;;  %v17399_v4 = vld [vmem:[%s19242_s3 + $0xa8] sm:$0xff] }
 0x179   : > { %14688 = vmatmul.mubr.msk.f32.gmra.mrb[30].mxu0 %vm383_vm0, %v17380_v11  ;;  %14016 = vmatprep.mubr.msk.f32.mxu1 %vm383_vm0, %v16731_v18  ;;  %v17408_v18 = vld [vmem:[%s17092_s30 + $0x21] sm:$0xff] }
 0x17a   : > { %14692 = vmatprep.mubr.msk.f32.mxu0 %vm383_vm0, %v7609_v16  ;;  %v17468_v16 = vld [vmem:[%s17092_s30 + $0x91] sm:$0xff] }
 0x17b   : > { %19408 = vst [vmem:[#allocation18_spill] sm:$0xff] %v17468_v16 }
 0x17c   : > { %14017 = vmatmul.mubr.msk.f32.gmra.mrb[16].mxu1 %vm383_vm0, %v16745_v8  ;;  %v17411_v8 = vld [vmem:[%s17092_s30 + $0x31] sm:$0xff] }
 0x17d   : > { %14693 = vmatmul.mubr.msk.f32.vlgmr.msra.gmra.mrb[0].mxu0 %vm383_vm0, %v7610_v22  ;;  %14019 = vmatprep.mubr.msk.f32.mxu1 %vm383_vm0, %v16751_v9  ;;  %v17423_v9 = vld [vmem:[%s17092_s30 + $0x39] sm:$0xff] }
 0x17e   : > { %14741 = vmatpush3.msra.mxu0 %v17128_v46  ;;  %14695 = vmatprep.mubr.msk.f32.mxu0 %vm383_vm0, %v17392_v40  ;;  %v17426_v46 = vld [vmem:[%s17092_s30 + $0x49] sm:$0xff]  ;;  %v17479_v22 = vld [vmem:[%s17092_s30 + $0x99] sm:$0xff] }
 0x17f   : > { %14790 = vmatprep.subr.mxu0 %v17399_v4  ;;  %19410 = vst [vmem:[#allocation19_spill] sm:$0xff] %v17479_v22 }
 0x180   : > { %14020 = vmatmul.mubr.msk.f32.gmra.mrb[18].mxu1 %vm383_vm0, %v16761_v13  ;;  %v17437_v13 = vld [vmem:[%s17092_s30 + $0x51] sm:$0xff] }
 0x181   : > { %14696 = vmatmul.mubr.msk.f32.gmra.mrb[2].mxu0 %vm383_vm0, %v17408_v18  ;;  %14022 = vmatprep.mubr.msk.f32.mxu1 %vm383_vm0, %v16766_v15  ;;  %v17440_v15 = vld [vmem:[%s17092_s30 + $0x61] sm:$0xff] }
 0x182   : > { %14698 = vmatprep.mubr.msk.f32.mxu0 %vm383_vm0, %v17411_v8 }
 0x184   : > { %14023 = vmatmul.mubr.msk.f32.gmra.mrb[20].mxu1 %vm383_vm0, %v16775_v17  ;;  %v17451_v17 = vld [vmem:[%s17092_s30 + $0x69] sm:$0xff] }
 0x185   : > { %14699 = vmatmul.mubr.msk.f32.gmra.mrb[4].mxu0 %vm383_vm0, %v17423_v9  ;;  %14025 = vmatprep.mubr.msk.f32.mxu1 %vm383_vm0, %v16780_v1  ;;  %v17454_v1 = vld [vmem:[%s17092_s30 + $0x79] sm:$0xff] }
 0x186   : > { %14701 = vmatprep.mubr.msk.f32.mxu0 %vm383_vm0, %v17426_v46  ;;  %19405 = vst [vmem:[#allocation16_spill] sm:$0xff] %v17454_v1 }
 0x188   : > { %14026 = vmatmul.mubr.msk.f32.gmra.mrb[22].mxu1 %vm383_vm0, %v16789_v19  ;;  %v19406_v19 = vld [vmem:[#allocation33_spill] sm:$0xff] }
 0x189   : > { %14702 = vmatmul.mubr.msk.f32.gmra.mrb[6].mxu0 %vm383_vm0, %v17437_v13  ;;  %14028 = vmatprep.mubr.msk.f32.mxu1 %vm383_vm0, %v16794_v21  ;;  %v17465_v21 = vld [vmem:[%s17092_s30 + $0x81] sm:$0xff] }
 0x18a   : > { %14704 = vmatprep.mubr.msk.f32.mxu0 %vm383_vm0, %v17440_v15  ;;  %19407 = vst [vmem:[#allocation17_spill] sm:$0xff] %v17465_v21 }
 0x18c   : > { %14029 = vmatmul.mubr.msk.f32.gmra.mrb[24].mxu1 %vm383_vm0, %v16803_v23  ;;  %v19409_v23 = vld [vmem:[#allocation34_spill] sm:$0xff] }
 0x18d   : > { %14705 = vmatmul.mubr.msk.f32.gmra.mrb[8].mxu0 %vm383_vm0, %v17451_v17  ;;  %14031 = vmatprep.mubr.msk.f32.mxu1 %vm383_vm0, %v19406_v19  ;;  %v17482_v19 = vld [vmem:[%s16089_s12 + $0x182] sm:$0xff] }
 0x18e   : > { %14707 = vmatprep.mubr.msk.f32.mxu0 %vm383_vm0, %v17454_v1  ;;  %19411 = vst [vmem:[#allocation22_spill] sm:$0xff] %v17482_v19  ;;  %v17485_v1 = vld [vmem:[%s17092_s30 + $0xa9] sm:$0xff] }
 0x18f   : > { %19412 = vst [vmem:[#allocation23_spill] sm:$0xff] %v17485_v1 }
 0x190   : > { %14032 = vmatmul.mubr.msk.f32.gmra.mrb[26].mxu1 %vm383_vm0, %v16817_v27  ;;  %v17494_v27 = vld [vmem:[%s16089_s12 + $0x18a] sm:$0xff] }
 0x191   : > { %14708 = vmatmul.mubr.msk.f32.gmra.mrb[10].mxu0 %vm383_vm0, %v17465_v21  ;;  %14034 = vmatprep.mubr.msk.f32.mxu1 %vm383_vm0, %v19409_v23  ;;  %19413 = vst [vmem:[#allocation24_spill] sm:$0xff] %v17494_v27  ;;  %v17499_v23 = vld [vmem:[%s17092_s30 + $0xb1] sm:$0xff]  ;;  %v17503_v21 = vld [vmem:[%s17092_s30 + $0xc1] sm:$0xff] }
 0x192   : > { %14710 = vmatprep.mubr.msk.f32.mxu0 %vm383_vm0, %v17468_v16  ;;  %19414 = vst [vmem:[#allocation25_spill] sm:$0xff] %v17499_v23  ;;  %v11673_v16 = vld [vmem:[%s16089_s12 + $0x30] sm:$0xff]  ;;  %19415 = vst [vmem:[#allocation26_spill] sm:$0xff] %v17503_v21 }
 0x194   : > { %14035 = vmatmul.mubr.msk.f32.gmra.mrb[28].mxu1 %vm383_vm0, %v16832_v33  ;;  %v11674_v33 = vld [vmem:[%s16089_s12 + $0x38] sm:$0xff] }
 0x195   : > { %14711 = vmatmul.mubr.msk.f32.gmra.mrb[12].mxu0 %vm383_vm0, %v17479_v22  ;;  %14037 = vmatprep.mubr.msk.f32.mxu1 %vm383_vm0, %v17482_v19  ;;  %v11675_v19 = vld [vmem:[%s16089_s12 + $0x48] sm:$0xff]  ;;  %v17518_v22 = vld [vmem:[%s17092_s30 + $0xd9] sm:$0xff] }
 0x196   : > { %14713 = vmatprep.mubr.msk.f32.mxu0 %vm383_vm0, %v17485_v1  ;;  %v17514_v1 = vld [vmem:[%s17092_s30 + $0xc9] sm:$0xff]  ;;  %19417 = vst [vmem:[#allocation28_spill] sm:$0xff] %v17518_v22 }
 0x197   : > { %19416 = vst [vmem:[#allocation27_spill] sm:$0xff] %v17514_v1 }
 0x198   : > { %14038 = vmatmul.mubr.msk.f32.gmra.mrb[30].mxu1 %vm383_vm0, %v17494_v27  ;;  %v17538_v27 = vld [vmem:[%s17092_s30 + $0xf1] sm:$0xff] }
 0x199   : > { %14714 = vmatmul.mubr.msk.f32.gmra.mrb[14].mxu0 %vm383_vm0, %v17499_v23  ;;  %14042 = vmatprep.mubr.msk.f32.mxu1 %vm383_vm0, %v11673_v16  ;;  %v17524_v23 = vld [vmem:[%s19242_s3 + $0x40] sm:$0xff]  ;;  %v11676_v16 = vld [vmem:[%s16089_s12 + $0x50] sm:$0xff]  ;;  %19419 = vst [vmem:[#allocation30_spill] sm:$0xff] %v17538_v27 }
 0x19a   : > { %14716 = vmatprep.mubr.msk.f32.mxu0 %vm383_vm0, %v17503_v21  ;;  %v11677_v21 = vld [vmem:[%s16089_s12 + $0x60] sm:$0xff] }
 0x19c   : > { %14043 = vmatmul.mubr.msk.f32.vlgmr.msra.gmra.mrb[0].mxu1 %vm383_vm0, %v11674_v33  ;;  %v17534_v33 = vld [vmem:[%s17092_s30 + $0xe1] sm:$0xff] }
 0x19d   : > { %14091 = vmatpush3.msra.mxu1 %v17285_v47  ;;  %14717 = vmatmul.mubr.msk.f32.gmra.mrb[16].mxu0 %vm383_vm0, %v17514_v1  ;;  %19418 = vst [vmem:[#allocation29_spill] sm:$0xff] %v17534_v33  ;;  %v11678_v47 = vld [vmem:[%s16089_s12 + $0x68] sm:$0xff] }
 0x19e   : > { %14045 = vmatprep.mubr.msk.f32.mxu1 %vm383_vm0, %v11675_v19  ;;  %14719 = vmatprep.mubr.msk.f32.mxu0 %vm383_vm0, %v17518_v22  ;;  %v17549_v19 = vld [vmem:[%s17092_s30 + $0xf9] sm:$0xff]  ;;  %v17553_v1 = vld [vmem:[%s17092_s30 + $0x109] sm:$0xff] }
 0x19f   : > { %14140 = vmatprep.subr.mxu1 %v17524_v23  ;;  %19420 = vst [vmem:[#allocation31_spill] sm:$0xff] %v17549_v19  ;;  %v11679_v22 = vld [vmem:[%s16089_s12 + $0x78] sm:$0xff]  ;;  %19421 = vst [vmem:[#allocation32_spill] sm:$0xff] %v17553_v1 }
 0x1a0   : > { %14046 = vmatmul.mubr.msk.f32.gmra.mrb[2].mxu1 %vm383_vm0, %v11676_v16  ;;  %v17563_v16 = vld [vmem:[%s17092_s30 + $0x111] sm:$0xff] }
 0x1a1   : > { %14720 = vmatmul.mubr.msk.f32.gmra.mrb[18].mxu0 %vm383_vm0, %v17534_v33  ;;  %14048 = vmatprep.mubr.msk.f32.mxu1 %vm383_vm0, %v11677_v21  ;;  %v11680_v21 = vld [vmem:[%s16089_s12 + $0x80] sm:$0xff]  ;;  %19422 = vst [vmem:[#allocation33_spill] sm:$0xff] %v17563_v16 }
 0x1a2   : > { %14722 = vmatprep.mubr.msk.f32.mxu0 %vm383_vm0, %v17538_v27  ;;  %v11681_v27 = vld [vmem:[%s16089_s12 + $0x90] sm:$0xff]  ;;  %v17567_v33 = vld [vmem:[%s17092_s30 + $0x121] sm:$0xff] }
 0x1a3   : > { %19423 = vst [vmem:[#allocation34_spill] sm:$0xff] %v17567_v33 }
 0x1a4   : > { %14049 = vmatmul.mubr.msk.f32.gmra.mrb[4].mxu1 %vm383_vm0, %v11678_v47  ;;  %v17577_v47 = vld [vmem:[%s17092_s30 + $0x129] sm:$0xff] }
 0x1a5   : > { %14723 = vmatmul.mubr.msk.f32.gmra.mrb[20].mxu0 %vm383_vm0, %v17549_v19  ;;  %14051 = vmatprep.mubr.msk.f32.mxu1 %vm383_vm0, %v11679_v22  ;;  %v11682_v22 = vld [vmem:[%s16089_s12 + $0x98] sm:$0xff]  ;;  %19424 = vst [vmem:[#allocation35_spill] sm:$0xff] %v17577_v47 }
 0x1a6   : > { %14725 = vmatprep.mubr.msk.f32.mxu0 %vm383_vm0, %v17553_v1  ;;  %v11683_v1 = vld [vmem:[%s16089_s12 + $0xa8] sm:$0xff]  ;;  %v17581_v19 = vld [vmem:[%s17092_s30 + $0x139] sm:$0xff] }
 0x1a7   : > { %19425 = vst [vmem:[#allocation36_spill] sm:$0xff] %v17581_v19 }
 0x1a8   : > { %14052 = vmatmul.mubr.msk.f32.gmra.mrb[6].mxu1 %vm383_vm0, %v11680_v21  ;;  %v17591_v21 = vld [vmem:[%s17092_s30 + $0x141] sm:$0xff] }
 0x1a9   : > { %14726 = vmatmul.mubr.msk.f32.gmra.mrb[22].mxu0 %vm383_vm0, %v17563_v16  ;;  %14054 = vmatprep.mubr.msk.f32.mxu1 %vm383_vm0, %v11681_v27  ;;  %v11684_v27 = vld [vmem:[%s16089_s12 + $0xb0] sm:$0xff]  ;;  %19426 = vst [vmem:[#allocation37_spill] sm:$0xff] %v17591_v21 }
 0x1aa   : > { %14728 = vmatprep.mubr.msk.f32.mxu0 %vm383_vm0, %v17567_v33  ;;  %v11685_v33 = vld [vmem:[%s16089_s12 + $0xc0] sm:$0xff]  ;;  %v17595_v16 = vld [vmem:[%s17092_s30 + $0x151] sm:$0xff] }
 0x1ab   : > { %19427 = vst [vmem:[#allocation38_spill] sm:$0xff] %v17595_v16 }
 0x1ac   : > { %14055 = vmatmul.mubr.msk.f32.gmra.mrb[8].mxu1 %vm383_vm0, %v11682_v22  ;;  %v17605_v22 = vld [vmem:[%s17092_s30 + $0x159] sm:$0xff] }
 0x1ad   : > { %14729 = vmatmul.mubr.msk.f32.gmra.mrb[24].mxu0 %vm383_vm0, %v17577_v47  ;;  %14057 = vmatprep.mubr.msk.f32.mxu1 %vm383_vm0, %v11683_v1  ;;  %v11686_v1 = vld [vmem:[%s16089_s12 + $0xc8] sm:$0xff]  ;;  %19428 = vst [vmem:[#allocation39_spill] sm:$0xff] %v17605_v22 }
 0x1ae   : > { %14731 = vmatprep.mubr.msk.f32.mxu0 %vm383_vm0, %v17581_v19  ;;  %v11687_v19 = vld [vmem:[%s16089_s12 + $0xd8] sm:$0xff]  ;;  %v17609_v47 = vld [vmem:[%s17092_s30 + $0x169] sm:$0xff] }
 0x1af   : > { %19429 = vst [vmem:[#allocation40_spill] sm:$0xff] %v17609_v47 }
 0x1b0   : > { %14058 = vmatmul.mubr.msk.f32.gmra.mrb[10].mxu1 %vm383_vm0, %v11684_v27  ;;  %v17619_v27 = vld [vmem:[%s17092_s30 + $0x171] sm:$0xff] }
 0x1b1   : > { %14732 = vmatmul.mubr.msk.f32.gmra.mrb[26].mxu0 %vm383_vm0, %v17591_v21  ;;  %14060 = vmatprep.mubr.msk.f32.mxu1 %vm383_vm0, %v11685_v33  ;;  %v11688_v33 = vld [vmem:[%s16089_s12 + $0xe0] sm:$0xff]  ;;  %19430 = vst [vmem:[#allocation41_spill] sm:$0xff] %v17619_v27 }
 0x1b2   : > { %14734 = vmatprep.mubr.msk.f32.mxu0 %vm383_vm0, %v17595_v16  ;;  %v11689_v16 = vld [vmem:[%s16089_s12 + $0xf0] sm:$0xff]  ;;  %v7996_v21 = vld [vmem:[%s17092_s30 + $0x2] sm:$0xff] }
 0x1b4   : > { %14061 = vmatmul.mubr.msk.f32.gmra.mrb[12].mxu1 %vm383_vm0, %v11686_v1  ;;  %v7997_v1 = vld [vmem:[%s17092_s30 + $0xa] sm:$0xff] }
 0x1b5   : > { %14735 = vmatmul.mubr.msk.f32.gmra.mrb[28].mxu0 %vm383_vm0, %v17605_v22  ;;  %14063 = vmatprep.mubr.msk.f32.mxu1 %vm383_vm0, %v11687_v19  ;;  %v11690_v19 = vld [vmem:[%s16089_s12 + $0xf8] sm:$0xff] }
 0x1b6   : > { %14737 = vmatprep.mubr.msk.f32.mxu0 %vm383_vm0, %v17609_v47  ;;  %v11691_v47 = vld [vmem:[%s16089_s12 + $0x108] sm:$0xff]  ;;  %v17632_v22 = vld [vmem:[%s17092_s30 + $0x1a] sm:$0xff] }
 0x1b7   : > { %19431 = vst [vmem:[#allocation42_spill] sm:$0xff] %v17632_v22 }
 0x1b8   : > { %14064 = vmatmul.mubr.msk.f32.gmra.mrb[14].mxu1 %vm383_vm0, %v11688_v33  ;;  %v17638_v33 = vld [vmem:[%s19242_s3 + $0xb0] sm:$0xff] }
 0x1b9   : > { %14738 = vmatmul.mubr.msk.f32.gmra.mrb[30].mxu0 %vm383_vm0, %v17619_v27  ;;  %14066 = vmatprep.mubr.msk.f32.mxu1 %vm383_vm0, %v11689_v16  ;;  %v11692_v16 = vld [vmem:[%s16089_s12 + $0x110] sm:$0xff] }
 0x1ba   : > { %14742 = vmatprep.mubr.msk.f32.mxu0 %vm383_vm0, %v7996_v21  ;;  %v17647_v21 = vld [vmem:[%s17092_s30 + $0x22] sm:$0xff]  ;;  %v17651_v27 = vld [vmem:[%s17092_s30 + $0x32] sm:$0xff] }
 0x1bb   : > { %19432 = vst [vmem:[#allocation43_spill] sm:$0xff] %v17647_v21  ;;  %19433 = vst [vmem:[#allocation44_spill] sm:$0xff] %v17651_v27 }
 0x1bc   : > { %14067 = vmatmul.mubr.msk.f32.gmra.mrb[16].mxu1 %vm383_vm0, %v11690_v19  ;;  %v11693_v19 = vld [vmem:[%s16089_s12 + $0x120] sm:$0xff] }
 0x1bd   : > { %14743 = vmatmul.mubr.msk.f32.vlgmr.msra.gmra.mrb[0].mxu0 %vm383_vm0, %v7997_v1  ;;  %14069 = vmatprep.mubr.msk.f32.mxu1 %vm383_vm0, %v11691_v47  ;;  %v17662_v47 = vld [vmem:[%s17092_s30 + $0x3a] sm:$0xff] }
 0x1be   : > { %14791 = vmatpush3.msra.mxu0 %v17399_v4  ;;  %14745 = vmatprep.mubr.msk.f32.mxu0 %vm383_vm0, %v17632_v22  ;;  %v11694_v4 = vld [vmem:[%s16089_s12 + $0x128] sm:$0xff]  ;;  %19434 = vst [vmem:[#allocation45_spill] sm:$0xff] %v17662_v47  ;;  %v11695_v1 = vld [vmem:[%s16089_s12 + $0x138] sm:$0xff] }
 0x1bf   : > { %14840 = vmatprep.subr.mxu0 %v17638_v33  ;;  %v17666_v22 = vld [vmem:[%s17092_s30 + $0x4a] sm:$0xff] }
 0x1c0   : > { %14070 = vmatmul.mubr.msk.f32.gmra.mrb[18].mxu1 %vm383_vm0, %v11692_v16  ;;  %19435 = vst [vmem:[#allocation46_spill] sm:$0xff] %v17666_v22  ;;  %v11696_v16 = vld [vmem:[%s16089_s12 + $0x140] sm:$0xff] }
 0x1c1   : > { %14746 = vmatmul.mubr.msk.f32.gmra.mrb[2].mxu0 %vm383_vm0, %v17647_v21  ;;  %14072 = vmatprep.mubr.msk.f32.mxu1 %vm383_vm0, %v11693_v19  ;;  %v17676_v19 = vld [vmem:[%s17092_s30 + $0x52] sm:$0xff]  ;;  %v17680_v21 = vld [vmem:[%s17092_s30 + $0x62] sm:$0xff] }
 0x1c2   : > { %14748 = vmatprep.mubr.msk.f32.mxu0 %vm383_vm0, %v17651_v27  ;;  %v11697_v27 = vld [vmem:[%s16089_s12 + $0x150] sm:$0xff]  ;;  %19436 = vst [vmem:[#allocation47_spill] sm:$0xff] %v17680_v21 }
 0x1c4   : > { %14073 = vmatmul.mubr.msk.f32.gmra.mrb[20].mxu1 %vm383_vm0, %v11694_v4  ;;  %v11698_v4 = vld [vmem:[%s16089_s12 + $0x158] sm:$0xff] }
 0x1c5   : > { %14749 = vmatmul.mubr.msk.f32.gmra.mrb[4].mxu0 %vm383_vm0, %v17662_v47  ;;  %14075 = vmatprep.mubr.msk.f32.mxu1 %vm383_vm0, %v11695_v1  ;;  %v17690_v1 = vld [vmem:[%s17092_s30 + $0x6a] sm:$0xff]  ;;  %v17694_v47 = vld [vmem:[%s17092_s30 + $0x7a] sm:$0xff] }
 0x1c6   : > { %14751 = vmatprep.mubr.msk.f32.mxu0 %vm383_vm0, %v17666_v22  ;;  %v11699_v22 = vld [vmem:[%s16089_s12 + $0x168] sm:$0xff]  ;;  %19437 = vst [vmem:[#allocation48_spill] sm:$0xff] %v17694_v47 }
 0x1c8   : > { %14076 = vmatmul.mubr.msk.f32.gmra.mrb[22].mxu1 %vm383_vm0, %v11696_v16  ;;  %v17704_v16 = vld [vmem:[%s17092_s30 + $0x82] sm:$0xff] }
 0x1c9   : > { %14752 = vmatmul.mubr.msk.f32.gmra.mrb[6].mxu0 %vm383_vm0, %v17676_v19  ;;  %14078 = vmatprep.mubr.msk.f32.mxu1 %vm383_vm0, %v11697_v27  ;;  %v11700_v27 = vld [vmem:[%s16089_s12 + $0x170] sm:$0xff] }
 0x1ca   : > { %14754 = vmatprep.mubr.msk.f32.mxu0 %vm383_vm0, %v17680_v21  ;;  %v17707_v21 = vld [vmem:[%s17092_s30 + $0x92] sm:$0xff] }
 0x1cb   : > { %19438 = vst [vmem:[#allocation49_spill] sm:$0xff] %v17707_v21 }
 0x1cc   : > { %14079 = vmatmul.mubr.msk.f32.gmra.mrb[24].mxu1 %vm383_vm0, %v11698_v4  ;;  %v11703_v4 = vld [vmem:[%s16089_s12 + $0x198] sm:$0xff] }
 0x1cd   : > { %14755 = vmatmul.mubr.msk.f32.gmra.mrb[8].mxu0 %vm383_vm0, %v17690_v1  ;;  %14081 = vmatprep.mubr.msk.f32.mxu1 %vm383_vm0, %v11699_v22  ;;  %v17717_v22 = vld [vmem:[%s17092_s30 + $0x9a] sm:$0xff] }
 0x1ce   : > { %14757 = vmatprep.mubr.msk.f32.mxu0 %vm383_vm0, %v17694_v47  ;;  %v17721_v47 = vld [vmem:[%s17092_s30 + $0xaa] sm:$0xff] }
 0x1d0   : > { %14082 = vmatmul.mubr.msk.f32.gmra.mrb[26].mxu1 %vm383_vm0, %v11700_v27  ;;  %v11704_v27 = vld [vmem:[%s16089_s12 + $0x1a0] sm:$0xff] }
 0x1d1   : > { %14758 = vmatmul.mubr.msk.f32.gmra.mrb[10].mxu0 %vm383_vm0, %v17704_v16  ;;  %14084 = vmatprep.mubr.msk.f32.mxu1 %vm383_vm0, %v16970_v48  ;;  %v17732_v48 = vld [vmem:[%s17092_s30 + $0xb2] sm:$0xff] }
 0x1d2   : > { %14760 = vmatprep.mubr.msk.f32.mxu0 %vm383_vm0, %v17707_v21  ;;  %v17735_v21 = vld [vmem:[%s17092_s30 + $0xc2] sm:$0xff] }
 0x1d4   : > { %14085 = vmatmul.mubr.msk.f32.gmra.mrb[28].mxu1 %vm383_vm0, %v16979_v54  ;;  %v17745_v54 = vld [vmem:[%s17092_s30 + $0xca] sm:$0xff] }
 0x1d5   : > { %14761 = vmatmul.mubr.msk.f32.gmra.mrb[12].mxu0 %vm383_vm0, %v17717_v22  ;;  %14087 = vmatprep.mubr.msk.f32.mxu1 %vm383_vm0, %v11703_v4  ;;  %v17748_v4 = vld [vmem:[%s17092_s30 + $0xda] sm:$0xff] }
 0x1d6   : > { %14763 = vmatprep.mubr.msk.f32.mxu0 %vm383_vm0, %v17721_v47 }
 0x1d8   : > { %14088 = vmatmul.mubr.msk.f32.gmra.mrb[30].mxu1 %vm383_vm0, %v11704_v27  ;;  %v17755_v27 = vld [vmem:[%s19242_s3 + $0x48] sm:$0xff] }
 0x1d9   : > { %14764 = vmatmul.mubr.msk.f32.gmra.mrb[14].mxu0 %vm383_vm0, %v17732_v48  ;;  %14092 = vmatprep.mubr.msk.f32.mxu1 %vm383_vm0, %v16993_v2  ;;  %v17765_v2 = vld [vmem:[%s17092_s30 + $0xe2] sm:$0xff] }
 0x1da   : > { %14766 = vmatprep.mubr.msk.f32.mxu0 %vm383_vm0, %v17735_v21 }
 0x1dc   : > { %14093 = vmatmul.mubr.msk.f32.vlgmr.msra.gmra.mrb[0].mxu1 %vm383_vm0, %v17005_v39  ;;  %v17768_v39 = vld [vmem:[%s17092_s30 + $0xf2] sm:$0xff] }
 0x1dd   : > { %14141 = vmatpush3.msra.mxu1 %v17524_v23  ;;  %14767 = vmatmul.mubr.msk.f32.gmra.mrb[16].mxu0 %vm383_vm0, %v17745_v54  ;;  %v17783_v23 = vld [vmem:[%s17092_s30 + $0x10a] sm:$0xff] }
 0x1de   : > { %14095 = vmatprep.mubr.msk.f32.mxu1 %vm383_vm0, %v17012_v59  ;;  %14769 = vmatprep.mubr.msk.f32.mxu0 %vm383_vm0, %v17748_v4  ;;  %v17780_v59 = vld [vmem:[%s17092_s30 + $0xfa] sm:$0xff] }
 0x1df   : > { %14190 = vmatprep.subr.mxu1 %v17755_v27 }
 0x1e0   : > { %14096 = vmatmul.mubr.msk.f32.gmra.mrb[2].mxu1 %vm383_vm0, %v17022_v63  ;;  %v17794_v63 = vld [vmem:[%s17092_s30 + $0x112] sm:$0xff] }
 0x1e1   : > { %14770 = vmatmul.mubr.msk.f32.gmra.mrb[18].mxu0 %vm383_vm0, %v17765_v2  ;;  %14098 = vmatprep.mubr.msk.f32.mxu1 %vm383_vm0, %v17027_v7  ;;  %v17797_v7 = vld [vmem:[%s17092_s30 + $0x122] sm:$0xff] }
 0x1e2   : > { %14772 = vmatprep.mubr.msk.f32.mxu0 %vm383_vm0, %v17768_v39 }
 0x1e4   : > { %14099 = vmatmul.mubr.msk.f32.gmra.mrb[4].mxu1 %vm383_vm0, %v17036_v44  ;;  %v17808_v44 = vld [vmem:[%s17092_s30 + $0x12a] sm:$0xff] }
 0x1e5   : > { %14773 = vmatmul.mubr.msk.f32.gmra.mrb[20].mxu0 %vm383_vm0, %v17780_v59  ;;  %14101 = vmatprep.mubr.msk.f32.mxu1 %vm383_vm0, %v17042_v53  ;;  %v17811_v53 = vld [vmem:[%s17092_s30 + $0x13a] sm:$0xff] }
 0x1e6   : > { %14775 = vmatprep.mubr.msk.f32.mxu0 %vm383_vm0, %v17783_v23 }
 0x1e8   : > { %14102 = vmatmul.mubr.msk.f32.gmra.mrb[6].mxu1 %vm383_vm0, %v17051_v45  ;;  %v17822_v45 = vld [vmem:[%s17092_s30 + $0x142] sm:$0xff] }
 0x1e9   : > { %14776 = vmatmul.mubr.msk.f32.gmra.mrb[22].mxu0 %vm383_vm0, %v17794_v63  ;;  %14104 = vmatprep.mubr.msk.f32.mxu1 %vm383_vm0, %v17056_v6  ;;  %v17825_v6 = vld [vmem:[%s17092_s30 + $0x152] sm:$0xff] }
 0x1ea   : > { %14778 = vmatprep.mubr.msk.f32.mxu0 %vm383_vm0, %v17797_v7 }
 0x1ec   : > { %14105 = vmatmul.mubr.msk.f32.gmra.mrb[8].mxu1 %vm383_vm0, %v17065_v35  ;;  %v17836_v35 = vld [vmem:[%s17092_s30 + $0x15a] sm:$0xff] }
 0x1ed   : > { %14779 = vmatmul.mubr.msk.f32.gmra.mrb[24].mxu0 %vm383_vm0, %v17808_v44  ;;  %14107 = vmatprep.mubr.msk.f32.mxu1 %vm383_vm0, %v17070_v31  ;;  %v17839_v31 = vld [vmem:[%s17092_s30 + $0x16a] sm:$0xff] }
 0x1ee   : > { %14781 = vmatprep.mubr.msk.f32.mxu0 %vm383_vm0, %v17811_v53 }
 0x1f0   : > { %14108 = vmatmul.mubr.msk.f32.gmra.mrb[10].mxu1 %vm383_vm0, %v17079_v25  ;;  %v17850_v25 = vld [vmem:[%s17092_s30 + $0x172] sm:$0xff] }
 0x1f1   : > { %14782 = vmatmul.mubr.msk.f32.gmra.mrb[26].mxu0 %vm383_vm0, %v17822_v45  ;;  %14110 = vmatprep.mubr.msk.f32.mxu1 %vm383_vm0, %v17084_v24  ;;  %v17865_v24 = vld [vmem:[%s19242_s3 + $0xb8] sm:$0xff] }
 0x1f2   : > { %14784 = vmatprep.mubr.msk.f32.mxu0 %vm383_vm0, %v17825_v6 }
 0x1f4   : > { %14111 = vmatmul.mubr.msk.f32.gmra.mrb[12].mxu1 %vm383_vm0, %v17099_v30  ;;  %v19439_v30 = vld [vmem:[#allocation20_spill] sm:$0xff] }
 0x1f5   : > { %14785 = vmatmul.mubr.msk.f32.gmra.mrb[28].mxu0 %vm383_vm0, %v17836_v35  ;;  %14113 = vmatprep.mubr.msk.f32.mxu1 %vm383_vm0, %v17104_v38  ;;  %v19440_v38 = vld [vmem:[#allocation2_spill] sm:$0xff] }
 0x1f6   : > { %14787 = vmatprep.mubr.msk.f32.mxu0 %vm383_vm0, %v17839_v31 }
 0x1f8   : > { %14114 = vmatmul.mubr.msk.f32.gmra.mrb[14].mxu1 %vm383_vm0, %v17113_v42  ;;  %v19441_v42 = vld [vmem:[#allocation21_spill] sm:$0xff] }
 0x1f9   : > { %14788 = vmatmul.mubr.msk.f32.gmra.mrb[30].mxu0 %vm383_vm0, %v17850_v25  ;;  %14116 = vmatprep.mubr.msk.f32.mxu1 %vm383_vm0, %v17118_v51  ;;  %v19442_v51 = vld [vmem:[#allocation3_spill] sm:$0xff] }
 0x1fa   : > { %14792 = vmatprep.mubr.msk.f32.mxu0 %vm383_vm0, %v17121_v43  ;;  %v19443_v43 = vld [vmem:[#allocation4_spill] sm:$0xff] }
 0x1fc   : > { %14117 = vmatmul.mubr.msk.f32.gmra.mrb[16].mxu1 %vm383_vm0, %v17134_v50  ;;  %v19444_v50 = vld [vmem:[#allocation5_spill] sm:$0xff] }
 0x1fd   : > { %14793 = vmatmul.mubr.msk.f32.vlgmr.msra.gmra.mrb[0].mxu0 %vm383_vm0, %v17140_v52  ;;  %14119 = vmatprep.mubr.msk.f32.mxu1 %vm383_vm0, %v17143_v56  ;;  %v11768_v52 = vld [vmem:[%s16089_s12 + $0x199] sm:$0xff] }
 0x1fe   : > { %14841 = vmatpush3.msra.mxu0 %v17638_v33  ;;  %14795 = vmatprep.mubr.msk.f32.mxu0 %vm383_vm0, %v17146_v58  ;;  %v19445_v56 = vld [vmem:[#allocation6_spill] sm:$0xff]  ;;  %v19446_v58 = vld [vmem:[#allocation7_spill] sm:$0xff] }
 0x1ff   : > { %14890 = vmatprep.subr.mxu0 %v17865_v24  ;;  %v11809_v33 = vld [vmem:[%s16089_s12 + $0x7a] sm:$0xff] }
 0x200   : > { %14120 = vmatmul.mubr.msk.f32.gmra.mrb[18].mxu1 %vm383_vm0, %v17156_v55  ;;  %v11769_v55 = vld [vmem:[%s16089_s12 + $0x1a1] sm:$0xff] }
 0x201   : > { %14796 = vmatmul.mubr.msk.f32.gmra.mrb[2].mxu0 %vm383_vm0, %v17161_v60  ;;  %14122 = vmatprep.mubr.msk.f32.mxu1 %vm383_vm0, %v17164_v62  ;;  %v19447_v60 = vld [vmem:[#allocation8_spill] sm:$0xff] }
 0x202   : > { %14798 = vmatprep.mubr.msk.f32.mxu0 %vm383_vm0, %v17167_v0  ;;  %v11803_v62 = vld [vmem:[%s16089_s12 + $0x32] sm:$0xff] }
 0x203   : > { %v19448_v0 = vld [vmem:[#allocation9_spill] sm:$0xff] }
 0x204   : > { %14123 = vmatmul.mubr.msk.f32.gmra.mrb[20].mxu1 %vm383_vm0, %v17176_v32  ;;  %v11804_v32 = vld [vmem:[%s16089_s12 + $0x3a] sm:$0xff] }
 0x205   : > { %14799 = vmatmul.mubr.msk.f32.gmra.mrb[4].mxu0 %vm383_vm0, %v17181_v49  ;;  %14125 = vmatprep.mubr.msk.f32.mxu1 %vm383_vm0, %v17184_v61  ;;  %v19449_v49 = vld [vmem:[#allocation10_spill] sm:$0xff]  ;;  %v11805_v61 = vld [vmem:[%s16089_s12 + $0x4a] sm:$0xff] }
 0x206   : > { %14801 = vmatprep.mubr.msk.f32.mxu0 %vm383_vm0, %v17187_v3  ;;  %v17937_v3 = vld [vmem:[%s19242_s3 + $0x50] sm:$0xff] }
 0x208   : > { %14126 = vmatmul.mubr.msk.f32.gmra.mrb[22].mxu1 %vm383_vm0, %v17196_v5  ;;  %v19450_v5 = vld [vmem:[#allocation11_spill] sm:$0xff] }
 0x209   : > { %14802 = vmatmul.mubr.msk.f32.gmra.mrb[6].mxu0 %vm383_vm0, %v17201_v10  ;;  %14128 = vmatprep.mubr.msk.f32.mxu1 %vm383_vm0, %v17204_v57  ;;  %v11806_v10 = vld [vmem:[%s16089_s12 + $0x52] sm:$0xff] }
 0x20a   : > { %14804 = vmatprep.mubr.msk.f32.mxu0 %vm383_vm0, %v17207_v41  ;;  %v19451_v57 = vld [vmem:[#allocation12_spill] sm:$0xff]  ;;  %v11807_v41 = vld [vmem:[%s16089_s12 + $0x62] sm:$0xff] }
 0x20c   : > { %14129 = vmatmul.mubr.msk.f32.gmra.mrb[24].mxu1 %vm383_vm0, %v17216_v29  ;;  %v11808_v29 = vld [vmem:[%s16089_s12 + $0x6a] sm:$0xff] }
 0x20d   : > { %14805 = vmatmul.mubr.msk.f32.gmra.mrb[8].mxu0 %vm383_vm0, %v17221_v37  ;;  %14131 = vmatprep.mubr.msk.f32.mxu1 %vm383_vm0, %v19439_v30  ;;  %v19452_v37 = vld [vmem:[#allocation13_spill] sm:$0xff]  ;;  %v19453_v30 = vld [vmem:[#allocation14_spill] sm:$0xff] }
 0x20e   : > { %14807 = vmatprep.mubr.msk.f32.mxu0 %vm383_vm0, %v19440_v38  ;;  %v11812_v38 = vld [vmem:[%s16089_s12 + $0x9a] sm:$0xff] }
 0x210   : > { %14132 = vmatmul.mubr.msk.f32.gmra.mrb[26].mxu1 %vm383_vm0, %v19441_v42  ;;  %v11813_v42 = vld [vmem:[%s16089_s12 + $0xaa] sm:$0xff] }
 0x211   : > { %14808 = vmatmul.mubr.msk.f32.gmra.mrb[10].mxu0 %vm383_vm0, %v19442_v51  ;;  %14134 = vmatprep.mubr.msk.f32.mxu1 %vm383_vm0, %v19443_v43  ;;  %v11814_v51 = vld [vmem:[%s16089_s12 + $0xb2] sm:$0xff]  ;;  %v11816_v43 = vld [vmem:[%s16089_s12 + $0xca] sm:$0xff] }
 0x212   : > { %14810 = vmatprep.mubr.msk.f32.mxu0 %vm383_vm0, %v19444_v50  ;;  %v17989_v50 = vld [vmem:[%s17092_s30 + $0x180] sm:$0xff] }
 0x214   : > { %14135 = vmatmul.mubr.msk.f32.gmra.mrb[28].mxu1 %vm383_vm0, %v19445_v56  ;;  %v18014_v56 = vld [vmem:[%s19242_s3 + $0xc0] sm:$0xff] }
 0x215   : > { %14811 = vmatmul.mubr.msk.f32.gmra.mrb[12].mxu0 %vm383_vm0, %v19446_v58  ;;  %14137 = vmatprep.mubr.msk.f32.mxu1 %vm383_vm0, %v11768_v52  ;;  %v11819_v52 = vld [vmem:[%s16089_s12 + $0xf2] sm:$0xff] }
 0x216   : > { %14813 = vmatprep.mubr.msk.f32.mxu0 %vm383_vm0, %v19447_v60  ;;  %v11822_v58 = vld [vmem:[%s16089_s12 + $0x112] sm:$0xff] }
 0x217   : > { %v19456_v60 = vld [vmem:[#allocation17_spill] sm:$0xff] }
 0x218   : > { %14138 = vmatmul.mubr.msk.f32.gmra.mrb[30].mxu1 %vm383_vm0, %v11769_v55  ;;  %v19455_v55 = vld [vmem:[#allocation16_spill] sm:$0xff] }
 0x219   : > { %14814 = vmatmul.mubr.msk.f32.gmra.mrb[14].mxu0 %vm383_vm0, %v19448_v0  ;;  %14142 = vmatprep.mubr.msk.f32.mxu1 %vm383_vm0, %v11803_v62  ;;  %v19457_v62 = vld [vmem:[#allocation18_spill] sm:$0xff] }
 0x21a   : > { %14816 = vmatprep.mubr.msk.f32.mxu0 %vm383_vm0, %v19449_v49  ;;  %v19459_v0 = vld [vmem:[#allocation22_spill] sm:$0xff] }
 0x21b   : > { %v11833_v49 = vld [vmem:[%s16089_s12 + $0x19a] sm:$0xff] }
 0x21c   : > { %14143 = vmatmul.mubr.msk.f32.vlgmr.msra.gmra.mrb[0].mxu1 %vm383_vm0, %v11804_v32  ;;  %v19460_v32 = vld [vmem:[#allocation23_spill] sm:$0xff] }
 0x21d   : > { %14191 = vmatpush3.msra.mxu1 %v17755_v27  ;;  %14817 = vmatmul.mubr.msk.f32.gmra.mrb[16].mxu0 %vm383_vm0, %v19450_v5  ;;  %v11810_v27 = vld [vmem:[%s16089_s12 + $0x82] sm:$0xff]  ;;  %v19462_v5 = vld [vmem:[#allocation25_spill] sm:$0xff] }
 0x21e   : > { %14145 = vmatprep.mubr.msk.f32.mxu1 %vm383_vm0, %v11805_v61  ;;  %14819 = vmatprep.mubr.msk.f32.mxu0 %vm383_vm0, %v19451_v57  ;;  %v19461_v61 = vld [vmem:[#allocation24_spill] sm:$0xff]  ;;  %v19463_v57 = vld [vmem:[#allocation26_spill] sm:$0xff] }
 0x21f   : > { %14240 = vmatprep.subr.mxu1 %v17937_v3 }
 0x220   : > { %14146 = vmatmul.mubr.msk.f32.gmra.mrb[2].mxu1 %vm383_vm0, %v11806_v10  ;;  %v11834_v10 = vld [vmem:[%s16089_s12 + $0x1a2] sm:$0xff] }
 0x221   : > { %14820 = vmatmul.mubr.msk.f32.gmra.mrb[18].mxu0 %vm383_vm0, %v17310_v36  ;;  %14148 = vmatprep.mubr.msk.f32.mxu1 %vm383_vm0, %v11807_v41  ;;  %v11811_v36 = vld [vmem:[%s16089_s12 + $0x92] sm:$0xff]  ;;  %v3737_v41 = vld [vmem:[%s16096_s22] sm:$0xff] }
 0x222   : > { %14822 = vmatprep.mubr.msk.f32.mxu0 %vm383_vm0, %v19452_v37  ;;  %v3738_v37 = vld [vmem:[%s16096_s22 + $0x8] sm:$0xff] }
 0x224   : > { %14149 = vmatmul.mubr.msk.f32.gmra.mrb[4].mxu1 %vm383_vm0, %v11808_v29  ;;  %v19464_v29 = vld [vmem:[#allocation27_spill] sm:$0xff] }
 0x225   : > { %14823 = vmatmul.mubr.msk.f32.gmra.mrb[20].mxu0 %vm383_vm0, %v17324_v26  ;;  %14151 = vmatprep.mubr.msk.f32.mxu1 %vm383_vm0, %v11809_v33  ;;  %v19454_v26 = vld [vmem:[#allocation15_spill] sm:$0xff]  ;;  %v19465_v33 = vld [vmem:[#allocation28_spill] sm:$0xff] }
 0x226   : > { %14825 = vmatprep.mubr.msk.f32.mxu0 %vm383_vm0, %v19453_v30  ;;  %v18087_v30 = vld [vmem:[%s19242_s3 + $0x58] sm:$0xff] }
 0x228   : > { %14152 = vmatmul.mubr.msk.f32.gmra.mrb[6].mxu1 %vm383_vm0, %v11810_v27  ;;  %v18081_v27 = vld [vmem:[%s16096_s22 + $0x18] sm:$0xff] }
 0x229   : > { %14826 = vmatmul.mubr.msk.f32.gmra.mrb[22].mxu0 %vm383_vm0, %v17338_v20  ;;  %14154 = vmatprep.mubr.msk.f32.mxu1 %vm383_vm0, %v11811_v36  ;;  %v11815_v20 = vld [vmem:[%s16089_s12 + $0xc2] sm:$0xff]  ;;  %v19466_v36 = vld [vmem:[#allocation29_spill] sm:$0xff] }
 0x22a   : > { %14828 = vmatprep.mubr.msk.f32.mxu0 %vm383_vm0, %v19454_v26  ;;  %v19467_v26 = vld [vmem:[#allocation30_spill] sm:$0xff] }
 0x22c   : > { %14155 = vmatmul.mubr.msk.f32.gmra.mrb[8].mxu1 %vm383_vm0, %v11812_v38  ;;  %v18093_v38 = vld [vmem:[%s16096_s22 + $0x20] sm:$0xff] }
 0x22d   : > { %14829 = vmatmul.mubr.msk.f32.gmra.mrb[24].mxu0 %vm383_vm0, %v17352_v34  ;;  %14157 = vmatprep.mubr.msk.f32.mxu1 %vm383_vm0, %v11813_v42  ;;  %v11817_v34 = vld [vmem:[%s16089_s12 + $0xda] sm:$0xff]  ;;  %v18100_v42 = vld [vmem:[%s16096_s22 + $0x30] sm:$0xff] }
 0x22e   : > { %14831 = vmatprep.mubr.msk.f32.mxu0 %vm383_vm0, %v17355_v12  ;;  %v11818_v12 = vld [vmem:[%s16089_s12 + $0xe2] sm:$0xff] }
 0x230   : > { %14158 = vmatmul.mubr.msk.f32.gmra.mrb[10].mxu1 %vm383_vm0, %v11814_v51  ;;  %v18110_v51 = vld [vmem:[%s16096_s22 + $0x38] sm:$0xff] }
 0x231   : > { %14832 = vmatmul.mubr.msk.f32.gmra.mrb[26].mxu0 %vm383_vm0, %v17366_v28  ;;  %14160 = vmatprep.mubr.msk.f32.mxu1 %vm383_vm0, %v11815_v20  ;;  %v17999_v28 = vld [vmem:[%s17092_s30 + $0x188] sm:$0xff]  ;;  %v19469_v20 = vld [vmem:[#allocation32_spill] sm:$0xff] }
 0x232   : > { %14834 = vmatprep.mubr.msk.f32.mxu0 %vm383_vm0, %v17369_v14  ;;  %v11820_v14 = vld [vmem:[%s16089_s12 + $0xfa] sm:$0xff] }
 0x234   : > { %14161 = vmatmul.mubr.msk.f32.gmra.mrb[12].mxu1 %vm383_vm0, %v11816_v43  ;;  %v18115_v43 = vld [vmem:[%s16096_s22 + $0x48] sm:$0xff] }
 0x235   : > { %14835 = vmatmul.mubr.msk.f32.gmra.mrb[28].mxu0 %vm383_vm0, %v17380_v11  ;;  %14163 = vmatprep.mubr.msk.f32.mxu1 %vm383_vm0, %v11817_v34  ;;  %v11821_v11 = vld [vmem:[%s16089_s12 + $0x10a] sm:$0xff]  ;;  %v19470_v34 = vld [vmem:[#allocation33_spill] sm:$0xff] }
 0x236   : > { %14837 = vmatprep.mubr.msk.f32.mxu0 %vm383_vm0, %v17989_v50 }
 0x238   : > { %14164 = vmatmul.mubr.msk.f32.gmra.mrb[14].mxu1 %vm383_vm0, %v11818_v12  ;;  %v18124_v12 = vld [vmem:[%s16096_s22 + $0x50] sm:$0xff] }
 0x239   : > { %14838 = vmatmul.mubr.msk.f32.gmra.mrb[30].mxu0 %vm383_vm0, %v17999_v28  ;;  %14166 = vmatprep.mubr.msk.f32.mxu1 %vm383_vm0, %v11819_v52  ;;  %v19471_v52 = vld [vmem:[#allocation34_spill] sm:$0xff] }
 0x23a   : > { %14842 = vmatprep.mubr.msk.f32.mxu0 %vm383_vm0, %v17392_v40  ;;  %v11823_v40 = vld [vmem:[%s16089_s12 + $0x122] sm:$0xff] }
 0x23c   : > { %14167 = vmatmul.mubr.msk.f32.gmra.mrb[16].mxu1 %vm383_vm0, %v11820_v14  ;;  %v18129_v14 = vld [vmem:[%s16096_s22 + $0x60] sm:$0xff] }
 0x23d   : > { %14843 = vmatmul.mubr.msk.f32.vlgmr.msra.gmra.mrb[0].mxu0 %vm383_vm0, %v17408_v18  ;;  %14169 = vmatprep.mubr.msk.f32.mxu1 %vm383_vm0, %v11821_v11  ;;  %v11824_v18 = vld [vmem:[%s16089_s12 + $0x12a] sm:$0xff] }
 0x23e   : > { %14891 = vmatpush3.msra.mxu0 %v17865_v24  ;;  %14845 = vmatprep.mubr.msk.f32.mxu0 %vm383_vm0, %v17411_v8  ;;  %v11825_v24 = vld [vmem:[%s16089_s12 + $0x13a] sm:$0xff]  ;;  %v11826_v8 = vld [vmem:[%s16089_s12 + $0x142] sm:$0xff] }
 0x23f   : > { %14940 = vmatprep.subr.mxu0 %v18014_v56  ;;  %v19472_v11 = vld [vmem:[#allocation35_spill] sm:$0xff] }
 0x240   : > { %14170 = vmatmul.mubr.msk.f32.gmra.mrb[18].mxu1 %vm383_vm0, %v11822_v58  ;;  %v18138_v58 = vld [vmem:[%s16096_s22 + $0x68] sm:$0xff] }
 0x241   : > { %14846 = vmatmul.mubr.msk.f32.gmra.mrb[2].mxu0 %vm383_vm0, %v17423_v9  ;;  %14172 = vmatprep.mubr.msk.f32.mxu1 %vm383_vm0, %v11823_v40  ;;  %v11827_v9 = vld [vmem:[%s16089_s12 + $0x152] sm:$0xff] }
 0x242   : > { %14848 = vmatprep.mubr.msk.f32.mxu0 %vm383_vm0, %v17426_v46  ;;  %v11828_v46 = vld [vmem:[%s16089_s12 + $0x15a] sm:$0xff]  ;;  %v19473_v40 = vld [vmem:[#allocation36_spill] sm:$0xff] }
 0x244   : > { %14173 = vmatmul.mubr.msk.f32.gmra.mrb[20].mxu1 %vm383_vm0, %v11824_v18  ;;  %v18143_v18 = vld [vmem:[%s16096_s22 + $0x78] sm:$0xff] }
 0x245   : > { %14849 = vmatmul.mubr.msk.f32.gmra.mrb[4].mxu0 %vm383_vm0, %v17437_v13  ;;  %14175 = vmatprep.mubr.msk.f32.mxu1 %vm383_vm0, %v11825_v24  ;;  %v11829_v13 = vld [vmem:[%s16089_s12 + $0x16a] sm:$0xff]  ;;  %v19474_v24 = vld [vmem:[#allocation37_spill] sm:$0xff] }
 0x246   : > { %14851 = vmatprep.mubr.msk.f32.mxu0 %vm383_vm0, %v17440_v15  ;;  %v11830_v15 = vld [vmem:[%s16089_s12 + $0x172] sm:$0xff] }
 0x248   : > { %14176 = vmatmul.mubr.msk.f32.gmra.mrb[22].mxu1 %vm383_vm0, %v11826_v8  ;;  %v18152_v8 = vld [vmem:[%s16096_s22 + $0x80] sm:$0xff] }
 0x249   : > { %14852 = vmatmul.mubr.msk.f32.gmra.mrb[6].mxu0 %vm383_vm0, %v17451_v17  ;;  %14178 = vmatprep.mubr.msk.f32.mxu1 %vm383_vm0, %v11827_v9  ;;  %v19458_v17 = vld [vmem:[#allocation19_spill] sm:$0xff]  ;;  %v19475_v9 = vld [vmem:[#allocation38_spill] sm:$0xff] }
 0x24a   : > { %14854 = vmatprep.mubr.msk.f32.mxu0 %vm383_vm0, %v19455_v55  ;;  %v19476_v55 = vld [vmem:[#allocation39_spill] sm:$0xff] }
 0x24c   : > { %14179 = vmatmul.mubr.msk.f32.gmra.mrb[24].mxu1 %vm383_vm0, %v11828_v46  ;;  %v18157_v46 = vld [vmem:[%s16096_s22 + $0x90] sm:$0xff] }
 0x24d   : > { %14855 = vmatmul.mubr.msk.f32.gmra.mrb[8].mxu0 %vm383_vm0, %v19456_v60  ;;  %14181 = vmatprep.mubr.msk.f32.mxu1 %vm383_vm0, %v11829_v13  ;;  %v18166_v13 = vld [vmem:[%s16096_s22 + $0x98] sm:$0xff]  ;;  %v19477_v60 = vld [vmem:[#allocation40_spill] sm:$0xff] }
 0x24e   : > { %14857 = vmatprep.mubr.msk.f32.mxu0 %vm383_vm0, %v19457_v62  ;;  %v18174_v62 = vld [vmem:[%s17092_s30 + $0x181] sm:$0xff] }
 0x250   : > { %14182 = vmatmul.mubr.msk.f32.gmra.mrb[26].mxu1 %vm383_vm0, %v11830_v15  ;;  %v18171_v15 = vld [vmem:[%s16096_s22 + $0xa8] sm:$0xff] }
 0x251   : > { %14858 = vmatmul.mubr.msk.f32.gmra.mrb[10].mxu0 %vm383_vm0, %v19458_v17  ;;  %14184 = vmatprep.mubr.msk.f32.mxu1 %vm383_vm0, %v19459_v0  ;;  %v19478_v17 = vld [vmem:[#allocation41_spill] sm:$0xff]  ;;  %v18183_v0 = vld [vmem:[%s16096_s22 + $0xb0] sm:$0xff] }
 0x252   : > { %14860 = vmatprep.mubr.msk.f32.mxu0 %vm383_vm0, %v19460_v32  ;;  %v18188_v32 = vld [vmem:[%s17092_s30 + $0x189] sm:$0xff] }
 0x254   : > { %14185 = vmatmul.mubr.msk.f32.gmra.mrb[28].mxu1 %vm383_vm0, %v19461_v61  ;;  %v18200_v61 = vld [vmem:[%s16096_s22 + $0xc8] sm:$0xff] }
 0x255   : > { %14861 = vmatmul.mubr.msk.f32.gmra.mrb[12].mxu0 %vm383_vm0, %v19462_v5  ;;  %14187 = vmatprep.mubr.msk.f32.mxu1 %vm383_vm0, %v11833_v49  ;;  %v18191_v49 = vld [vmem:[%s16096_s22 + $0xc0] sm:$0xff] }
 0x256   : > { %14863 = vmatprep.mubr.msk.f32.mxu0 %vm383_vm0, %v19463_v57  ;;  %v19479_v5 = vld [vmem:[#allocation42_spill] sm:$0xff]  ;;  %v18212_v57 = vld [vmem:[%s19242_s3 + $0xc8] sm:$0xff] }
 0x258   : > { %14188 = vmatmul.mubr.msk.f32.gmra.mrb[30].mxu1 %vm383_vm0, %v11834_v10  ;;  %v18205_v10 = vld [vmem:[%s16096_s22 + $0xd8] sm:$0xff] }
 0x259   : > { %14864 = vmatmul.mubr.msk.f32.gmra.mrb[14].mxu0 %vm383_vm0, %v19464_v29  ;;  %14192 = vmatprep.mubr.msk.f32.mxu1 %vm383_vm0, %v3737_v41  ;;  %v19480_v41 = vld [vmem:[#allocation43_spill] sm:$0xff]  ;;  %v18219_v29 = vld [vmem:[%s16096_s22 + $0xe0] sm:$0xff] }
 0x25a   : > { %14866 = vmatprep.mubr.msk.f32.mxu0 %vm383_vm0, %v19465_v33  ;;  %v18225_v33 = vld [vmem:[%s16096_s22 + $0xf0] sm:$0xff] }
 0x25c   : > { %14193 = vmatmul.mubr.msk.f32.vlgmr.msra.gmra.mrb[0].mxu1 %vm383_vm0, %v3738_v37  ;;  %v19481_v37 = vld [vmem:[#allocation44_spill] sm:$0xff] }
 0x25d   : > { %14241 = vmatpush3.msra.mxu1 %v17937_v3  ;;  %14867 = vmatmul.mubr.msk.f32.gmra.mrb[16].mxu0 %vm383_vm0, %v19466_v36  ;;  %v19468_v3 = vld [vmem:[#allocation31_spill] sm:$0xff]  ;;  %v19482_v36 = vld [vmem:[#allocation45_spill] sm:$0xff] }
 0x25e   : > { %14195 = vmatprep.mubr.msk.f32.mxu1 %vm383_vm0, %v18081_v27  ;;  %14869 = vmatprep.mubr.msk.f32.mxu0 %vm383_vm0, %v19467_v26  ;;  %v18235_v26 = vld [vmem:[%s16096_s22 + $0xf8] sm:$0xff] }
 0x25f   : > { %14290 = vmatprep.subr.mxu1 %v18087_v30 }
 0x260   : > { %14196 = vmatmul.mubr.msk.f32.gmra.mrb[2].mxu1 %vm383_vm0, %v18093_v38 }
 0x261   : > { %14870 = vmatmul.mubr.msk.f32.gmra.mrb[18].mxu0 %vm383_vm0, %v19468_v3  ;;  %14198 = vmatprep.mubr.msk.f32.mxu1 %vm383_vm0, %v18100_v42  ;;  %v18240_v3 = vld [vmem:[%s16096_s22 + $0x108] sm:$0xff] }
 0x262   : > { %14872 = vmatprep.mubr.msk.f32.mxu0 %vm383_vm0, %v19469_v20  ;;  %v18249_v20 = vld [vmem:[%s16096_s22 + $0x110] sm:$0xff] }
 0x264   : > { %14199 = vmatmul.mubr.msk.f32.gmra.mrb[4].mxu1 %vm383_vm0, %v18110_v51 }
 0x265   : > { %14873 = vmatmul.mubr.msk.f32.gmra.mrb[20].mxu0 %vm383_vm0, %v19470_v34  ;;  %14201 = vmatprep.mubr.msk.f32.mxu1 %vm383_vm0, %v18115_v43  ;;  %v19484_v34 = vld [vmem:[#allocation47_spill] sm:$0xff] }
 0x266   : > { %14875 = vmatprep.mubr.msk.f32.mxu0 %vm383_vm0, %v19471_v52  ;;  %v18254_v52 = vld [vmem:[%s16096_s22 + $0x120] sm:$0xff] }
 0x268   : > { %14202 = vmatmul.mubr.msk.f32.gmra.mrb[6].mxu1 %vm383_vm0, %v18124_v12 }
 0x269   : > { %14876 = vmatmul.mubr.msk.f32.gmra.mrb[22].mxu0 %vm383_vm0, %v19472_v11  ;;  %14204 = vmatprep.mubr.msk.f32.mxu1 %vm383_vm0, %v18129_v14  ;;  %v19485_v11 = vld [vmem:[#allocation48_spill] sm:$0xff] }
 0x26a   : > { %14878 = vmatprep.mubr.msk.f32.mxu0 %vm383_vm0, %v19473_v40  ;;  %v18268_v40 = vld [vmem:[%s16096_s22 + $0x138] sm:$0xff] }
 0x26c   : > { %14205 = vmatmul.mubr.msk.f32.gmra.mrb[8].mxu1 %vm383_vm0, %v18138_v58 }
 0x26d   : > { %14879 = vmatmul.mubr.msk.f32.gmra.mrb[24].mxu0 %vm383_vm0, %v19474_v24  ;;  %14207 = vmatprep.mubr.msk.f32.mxu1 %vm383_vm0, %v18143_v18  ;;  %v19486_v24 = vld [vmem:[#allocation49_spill] sm:$0xff] }
 0x26e   : > { %14881 = vmatprep.mubr.msk.f32.mxu0 %vm383_vm0, %v19475_v9  ;;  %v18282_v9 = vld [vmem:[%s16096_s22 + $0x150] sm:$0xff] }
 0x270   : > { %14208 = vmatmul.mubr.msk.f32.gmra.mrb[10].mxu1 %vm383_vm0, %v18152_v8 }
 0x271   : > { %14882 = vmatmul.mubr.msk.f32.gmra.mrb[26].mxu0 %vm383_vm0, %v19476_v55  ;;  %14210 = vmatprep.mubr.msk.f32.mxu1 %vm383_vm0, %v18157_v46  ;;  %v18296_v55 = vld [vmem:[%s16096_s22 + $0x168] sm:$0xff] }
 0x272   : > { %14884 = vmatprep.mubr.msk.f32.mxu0 %vm383_vm0, %v19477_v60  ;;  %v4124_v60 = vld [vmem:[%s16096_s22 + $0x1] sm:$0xff] }
 0x274   : > { %14211 = vmatmul.mubr.msk.f32.gmra.mrb[12].mxu1 %vm383_vm0, %v18166_v13 }
 0x275   : > { %14885 = vmatmul.mubr.msk.f32.gmra.mrb[28].mxu0 %vm383_vm0, %v19478_v17  ;;  %14213 = vmatprep.mubr.msk.f32.mxu1 %vm383_vm0, %v18171_v15  ;;  %v18375_v17 = vld [vmem:[%s17092_s30 + $0x182] sm:$0xff] }
 0x276   : > { %14887 = vmatprep.mubr.msk.f32.mxu0 %vm383_vm0, %v18174_v62 }
 0x278   : > { %14214 = vmatmul.mubr.msk.f32.gmra.mrb[14].mxu1 %vm383_vm0, %v18183_v0 }
 0x279   : > { %14888 = vmatmul.mubr.msk.f32.gmra.mrb[30].mxu0 %vm383_vm0, %v18188_v32  ;;  %14216 = vmatprep.mubr.msk.f32.mxu1 %vm383_vm0, %v18191_v49 }
 0x27a   : > { %14892 = vmatprep.mubr.msk.f32.mxu0 %vm383_vm0, %v19479_v5  ;;  %v12651_v5 = vld [vmem:[%s17092_s30 + $0x30] sm:$0xff] }
 0x27c   : > { %14217 = vmatmul.mubr.msk.f32.gmra.mrb[16].mxu1 %vm383_vm0, %v18200_v61 }
 0x27d   : > { %14893 = vmatmul.mubr.msk.f32.vlgmr.msra.gmra.mrb[0].mxu0 %vm383_vm0, %v19480_v41  ;;  %14219 = vmatprep.mubr.msk.f32.mxu1 %vm383_vm0, %v18205_v10  ;;  %v12652_v41 = vld [vmem:[%s17092_s30 + $0x38] sm:$0xff] }
 0x27e   : > { %14941 = vmatpush3.msra.mxu0 %v18014_v56  ;;  %14895 = vmatprep.mubr.msk.f32.mxu0 %vm383_vm0, %v19481_v37  ;;  %v19483_v56 = vld [vmem:[#allocation46_spill] sm:$0xff] }
 0x27f   : > { %14990 = vmatprep.subr.mxu0 %v18212_v57  ;;  %v18397_v37 = vld [vmem:[%s16096_s22 + $0xd9] sm:$0xff] }
 0x280   : > { %14220 = vmatmul.mubr.msk.f32.gmra.mrb[18].mxu1 %vm383_vm0, %v18219_v29 }
 0x281   : > { %14896 = vmatmul.mubr.msk.f32.gmra.mrb[2].mxu0 %vm383_vm0, %v19482_v36  ;;  %14222 = vmatprep.mubr.msk.f32.mxu1 %vm383_vm0, %v18225_v33  ;;  %v12653_v36 = vld [vmem:[%s17092_s30 + $0x48] sm:$0xff] }
 0x282   : > { %14898 = vmatprep.mubr.msk.f32.mxu0 %vm383_vm0, %v19483_v56  ;;  %v18404_v56 = vld [vmem:[%s19242_s3 + $0xd0] sm:$0xff] }
 0x284   : > { %14223 = vmatmul.mubr.msk.f32.gmra.mrb[20].mxu1 %vm383_vm0, %v18235_v26 }
 0x285   : > { %14899 = vmatmul.mubr.msk.f32.gmra.mrb[4].mxu0 %vm383_vm0, %v17676_v19  ;;  %14225 = vmatprep.mubr.msk.f32.mxu1 %vm383_vm0, %v18240_v3  ;;  %v18263_v19 = vld [vmem:[%s16096_s22 + $0x128] sm:$0xff] }
 0x286   : > { %14901 = vmatprep.mubr.msk.f32.mxu0 %vm383_vm0, %v19484_v34  ;;  %v18410_v34 = vld [vmem:[%s16096_s22 + $0xe1] sm:$0xff] }
 0x288   : > { %14226 = vmatmul.mubr.msk.f32.gmra.mrb[22].mxu1 %vm383_vm0, %v18249_v20 }
 0x289   : > { %14902 = vmatmul.mubr.msk.f32.gmra.mrb[6].mxu0 %vm383_vm0, %v17690_v1  ;;  %14228 = vmatprep.mubr.msk.f32.mxu1 %vm383_vm0, %v18254_v52  ;;  %v18277_v1 = vld [vmem:[%s16096_s22 + $0x140] sm:$0xff] }
 0x28a   : > { %14904 = vmatprep.mubr.msk.f32.mxu0 %vm383_vm0, %v19485_v11  ;;  %v12654_v11 = vld [vmem:[%s17092_s30 + $0x50] sm:$0xff] }
 0x28c   : > { %14229 = vmatmul.mubr.msk.f32.gmra.mrb[24].mxu1 %vm383_vm0, %v18263_v19 }
 0x28d   : > { %14905 = vmatmul.mubr.msk.f32.gmra.mrb[8].mxu0 %vm383_vm0, %v17704_v16  ;;  %14231 = vmatprep.mubr.msk.f32.mxu1 %vm383_vm0, %v18268_v40  ;;  %v18291_v16 = vld [vmem:[%s16096_s22 + $0x158] sm:$0xff] }
 0x28e   : > { %14907 = vmatprep.mubr.msk.f32.mxu0 %vm383_vm0, %v19486_v24  ;;  %v18416_v24 = vld [vmem:[%s16096_s22 + $0xf1] sm:$0xff] }
 0x290   : > { %14232 = vmatmul.mubr.msk.f32.gmra.mrb[26].mxu1 %vm383_vm0, %v18277_v1 }
 0x291   : > { %14908 = vmatmul.mubr.msk.f32.gmra.mrb[10].mxu0 %vm383_vm0, %v17717_v22  ;;  %14234 = vmatprep.mubr.msk.f32.mxu1 %vm383_vm0, %v18282_v9  ;;  %v18305_v22 = vld [vmem:[%s16096_s22 + $0x170] sm:$0xff] }
 0x292   : > { %14910 = vmatprep.mubr.msk.f32.mxu0 %vm383_vm0, %v17721_v47  ;;  %v4125_v47 = vld [vmem:[%s16096_s22 + $0x9] sm:$0xff] }
 0x294   : > { %14235 = vmatmul.mubr.msk.f32.gmra.mrb[28].mxu1 %vm383_vm0, %v18291_v16 }
 0x295   : > { %14911 = vmatmul.mubr.msk.f32.gmra.mrb[12].mxu0 %vm383_vm0, %v17732_v48  ;;  %14237 = vmatprep.mubr.msk.f32.mxu1 %vm383_vm0, %v18296_v55  ;;  %v4126_v48 = vld [vmem:[%s16096_s22 + $0x19] sm:$0xff] }
 0x296   : > { %14913 = vmatprep.mubr.msk.f32.mxu0 %vm383_vm0, %v17735_v21  ;;  %v18323_v21 = vld [vmem:[%s19242_s3 + $0x60] sm:$0xff] }
 0x298   : > { %14238 = vmatmul.mubr.msk.f32.gmra.mrb[30].mxu1 %vm383_vm0, %v18305_v22 }
 0x299   : > { %14914 = vmatmul.mubr.msk.f32.gmra.mrb[14].mxu0 %vm383_vm0, %v17745_v54  ;;  %14242 = vmatprep.mubr.msk.f32.mxu1 %vm383_vm0, %v4124_v60  ;;  %v4127_v54 = vld [vmem:[%s16096_s22 + $0x21] sm:$0xff] }
 0x29a   : > { %14916 = vmatprep.mubr.msk.f32.mxu0 %vm383_vm0, %v17748_v4  ;;  %v4128_v4 = vld [vmem:[%s16096_s22 + $0x31] sm:$0xff]  ;;  %v12655_v60 = vld [vmem:[%s17092_s30 + $0x60] sm:$0xff] }
 0x29c   : > { %14243 = vmatmul.mubr.msk.f32.vlgmr.msra.gmra.mrb[0].mxu1 %vm383_vm0, %v4125_v47  ;;  %v12656_v47 = vld [vmem:[%s17092_s30 + $0x68] sm:$0xff] }
 0x29d   : > { %14291 = vmatpush3.msra.mxu1 %v18087_v30  ;;  %14917 = vmatmul.mubr.msk.f32.gmra.mrb[16].mxu0 %vm383_vm0, %v17765_v2  ;;  %v4129_v2 = vld [vmem:[%s16096_s22 + $0x39] sm:$0xff]  ;;  %v4130_v30 = vld [vmem:[%s16096_s22 + $0x49] sm:$0xff] }
 0x29e   : > { %14245 = vmatprep.mubr.msk.f32.mxu1 %vm383_vm0, %v4126_v48  ;;  %14919 = vmatprep.mubr.msk.f32.mxu0 %vm383_vm0, %v17768_v39  ;;  %v4131_v39 = vld [vmem:[%s16096_s22 + $0x51] sm:$0xff]  ;;  %v18431_v48 = vld [vmem:[%s16096_s22 + $0x109] sm:$0xff] }
 0x29f   : > { %14340 = vmatprep.subr.mxu1 %v18323_v21 }
 0x2a0   : > { %14246 = vmatmul.mubr.msk.f32.gmra.mrb[2].mxu1 %vm383_vm0, %v4127_v54  ;;  %v12657_v54 = vld [vmem:[%s17092_s30 + $0x78] sm:$0xff] }
 0x2a1   : > { %14920 = vmatmul.mubr.msk.f32.gmra.mrb[18].mxu0 %vm383_vm0, %v17780_v59  ;;  %14248 = vmatprep.mubr.msk.f32.mxu1 %vm383_vm0, %v4128_v4  ;;  %v4132_v59 = vld [vmem:[%s16096_s22 + $0x61] sm:$0xff]  ;;  %v18440_v4 = vld [vmem:[%s16096_s22 + $0x111] sm:$0xff] }
 0x2a2   : > { %14922 = vmatprep.mubr.msk.f32.mxu0 %vm383_vm0, %v17783_v23  ;;  %v4133_v23 = vld [vmem:[%s16096_s22 + $0x69] sm:$0xff] }
 0x2a4   : > { %14249 = vmatmul.mubr.msk.f32.gmra.mrb[4].mxu1 %vm383_vm0, %v4129_v2  ;;  %v12658_v2 = vld [vmem:[%s17092_s30 + $0x80] sm:$0xff] }
 0x2a5   : > { %14923 = vmatmul.mubr.msk.f32.gmra.mrb[20].mxu0 %vm383_vm0, %v17794_v63  ;;  %14251 = vmatprep.mubr.msk.f32.mxu1 %vm383_vm0, %v4130_v30  ;;  %v4134_v63 = vld [vmem:[%s16096_s22 + $0x79] sm:$0xff]  ;;  %v18445_v30 = vld [vmem:[%s16096_s22 + $0x121] sm:$0xff] }
 0x2a6   : > { %14925 = vmatprep.mubr.msk.f32.mxu0 %vm383_vm0, %v17797_v7  ;;  %v4135_v7 = vld [vmem:[%s16096_s22 + $0x81] sm:$0xff] }
 0x2a8   : > { %14252 = vmatmul.mubr.msk.f32.gmra.mrb[6].mxu1 %vm383_vm0, %v4131_v39  ;;  %v12659_v39 = vld [vmem:[%s17092_s30 + $0x90] sm:$0xff] }
 0x2a9   : > { %14926 = vmatmul.mubr.msk.f32.gmra.mrb[22].mxu0 %vm383_vm0, %v17808_v44  ;;  %14254 = vmatprep.mubr.msk.f32.mxu1 %vm383_vm0, %v4132_v59  ;;  %v4136_v44 = vld [vmem:[%s16096_s22 + $0x91] sm:$0xff]  ;;  %v18454_v59 = vld [vmem:[%s16096_s22 + $0x129] sm:$0xff] }
 0x2aa   : > { %14928 = vmatprep.mubr.msk.f32.mxu0 %vm383_vm0, %v17811_v53  ;;  %v4137_v53 = vld [vmem:[%s16096_s22 + $0x99] sm:$0xff] }
 0x2ac   : > { %14255 = vmatmul.mubr.msk.f32.gmra.mrb[8].mxu1 %vm383_vm0, %v4133_v23  ;;  %v12660_v23 = vld [vmem:[%s17092_s30 + $0x98] sm:$0xff] }
 0x2ad   : > { %14929 = vmatmul.mubr.msk.f32.gmra.mrb[24].mxu0 %vm383_vm0, %v17822_v45  ;;  %14257 = vmatprep.mubr.msk.f32.mxu1 %vm383_vm0, %v4134_v63  ;;  %v4138_v45 = vld [vmem:[%s16096_s22 + $0xa9] sm:$0xff]  ;;  %v18459_v63 = vld [vmem:[%s16096_s22 + $0x139] sm:$0xff] }
 0x2ae   : > { %14931 = vmatprep.mubr.msk.f32.mxu0 %vm383_vm0, %v17825_v6  ;;  %v4139_v6 = vld [vmem:[%s16096_s22 + $0xb1] sm:$0xff] }
 0x2b0   : > { %14258 = vmatmul.mubr.msk.f32.gmra.mrb[10].mxu1 %vm383_vm0, %v4135_v7  ;;  %v12661_v7 = vld [vmem:[%s17092_s30 + $0xa8] sm:$0xff] }
 0x2b1   : > { %14932 = vmatmul.mubr.msk.f32.gmra.mrb[26].mxu0 %vm383_vm0, %v17836_v35  ;;  %14260 = vmatprep.mubr.msk.f32.mxu1 %vm383_vm0, %v4136_v44  ;;  %v18385_v35 = vld [vmem:[%s17092_s30 + $0x18a] sm:$0xff]  ;;  %v18468_v44 = vld [vmem:[%s16096_s22 + $0x141] sm:$0xff] }
 0x2b2   : > { %14934 = vmatprep.mubr.msk.f32.mxu0 %vm383_vm0, %v17839_v31  ;;  %v4140_v31 = vld [vmem:[%s16096_s22 + $0xc1] sm:$0xff] }
 0x2b4   : > { %14261 = vmatmul.mubr.msk.f32.gmra.mrb[12].mxu1 %vm383_vm0, %v4137_v53  ;;  %v12662_v53 = vld [vmem:[%s17092_s30 + $0xb0] sm:$0xff] }
 0x2b5   : > { %14935 = vmatmul.mubr.msk.f32.gmra.mrb[28].mxu0 %vm383_vm0, %v17850_v25  ;;  %14263 = vmatprep.mubr.msk.f32.mxu1 %vm383_vm0, %v4138_v45  ;;  %v4141_v25 = vld [vmem:[%s16096_s22 + $0xc9] sm:$0xff]  ;;  %v18473_v45 = vld [vmem:[%s16096_s22 + $0x151] sm:$0xff] }
 0x2b6   : > { %14937 = vmatprep.mubr.msk.f32.mxu0 %vm383_vm0, %v18375_v17 }
 0x2b8   : > { %14264 = vmatmul.mubr.msk.f32.gmra.mrb[14].mxu1 %vm383_vm0, %v4139_v6  ;;  %v12663_v6 = vld [vmem:[%s17092_s30 + $0xc0] sm:$0xff] }
 0x2b9   : > { %14938 = vmatmul.mubr.msk.f32.gmra.mrb[30].mxu0 %vm383_vm0, %v18385_v35  ;;  %14266 = vmatprep.mubr.msk.f32.mxu1 %vm383_vm0, %v4140_v31  ;;  %v18482_v31 = vld [vmem:[%s16096_s22 + $0x159] sm:$0xff] }
 0x2ba   : > { %14942 = vmatprep.mubr.msk.f32.mxu0 %vm383_vm0, %v12651_v5  ;;  %v12664_v5 = vld [vmem:[%s17092_s30 + $0xc8] sm:$0xff] }
 0x2bc   : > { %14267 = vmatmul.mubr.msk.f32.gmra.mrb[16].mxu1 %vm383_vm0, %v4141_v25  ;;  %v18487_v25 = vld [vmem:[%s16096_s22 + $0x169] sm:$0xff] }
 0x2bd   : > { %14943 = vmatmul.mubr.msk.f32.vlgmr.msra.gmra.mrb[0].mxu0 %vm383_vm0, %v12652_v41  ;;  %14269 = vmatprep.mubr.msk.f32.mxu1 %vm383_vm0, %v18397_v37  ;;  %v12665_v41 = vld [vmem:[%s17092_s30 + $0xd8] sm:$0xff] }
 0x2be   : > { %14991 = vmatpush3.msra.mxu0 %v18212_v57  ;;  %14945 = vmatprep.mubr.msk.f32.mxu0 %vm383_vm0, %v12653_v36  ;;  %v18426_v57 = vld [vmem:[%s16096_s22 + $0xf9] sm:$0xff]  ;;  %v18496_v36 = vld [vmem:[%s16096_s22 + $0x171] sm:$0xff] }
 0x2bf   : > { %15040 = vmatprep.subr.mxu0 %v18404_v56 }
 0x2c0   : > { %14270 = vmatmul.mubr.msk.f32.gmra.mrb[18].mxu1 %vm383_vm0, %v18410_v34 }
 0x2c1   : > { %14946 = vmatmul.mubr.msk.f32.gmra.mrb[2].mxu0 %vm383_vm0, %v12654_v11  ;;  %14272 = vmatprep.mubr.msk.f32.mxu1 %vm383_vm0, %v18416_v24  ;;  %v12666_v11 = vld [vmem:[%s17092_s30 + $0xe0] sm:$0xff] }
 0x2c2   : > { %14948 = vmatprep.mubr.msk.f32.mxu0 %vm383_vm0, %v12655_v60  ;;  %v4511_v60 = vld [vmem:[%s16096_s22 + $0x2] sm:$0xff] }
 0x2c4   : > { %14273 = vmatmul.mubr.msk.f32.gmra.mrb[20].mxu1 %vm383_vm0, %v18426_v57 }
 0x2c5   : > { %14949 = vmatmul.mubr.msk.f32.gmra.mrb[4].mxu0 %vm383_vm0, %v12656_v47  ;;  %14275 = vmatprep.mubr.msk.f32.mxu1 %vm383_vm0, %v18431_v48  ;;  %v12667_v47 = vld [vmem:[%s17092_s30 + $0xf0] sm:$0xff] }
 0x2c6   : > { %14951 = vmatprep.mubr.msk.f32.mxu0 %vm383_vm0, %v12657_v54  ;;  %v4512_v54 = vld [vmem:[%s16096_s22 + $0xa] sm:$0xff] }
 0x2c8   : > { %14276 = vmatmul.mubr.msk.f32.gmra.mrb[22].mxu1 %vm383_vm0, %v18440_v4 }
 0x2c9   : > { %14952 = vmatmul.mubr.msk.f32.gmra.mrb[6].mxu0 %vm383_vm0, %v12658_v2  ;;  %14278 = vmatprep.mubr.msk.f32.mxu1 %vm383_vm0, %v18445_v30  ;;  %v12668_v2 = vld [vmem:[%s17092_s30 + $0xf8] sm:$0xff] }
 0x2ca   : > { %14954 = vmatprep.mubr.msk.f32.mxu0 %vm383_vm0, %v12659_v39  ;;  %v4513_v39 = vld [vmem:[%s16096_s22 + $0x1a] sm:$0xff] }
 0x2cc   : > { %14279 = vmatmul.mubr.msk.f32.gmra.mrb[24].mxu1 %vm383_vm0, %v18454_v59 }
 0x2cd   : > { %14955 = vmatmul.mubr.msk.f32.gmra.mrb[8].mxu0 %vm383_vm0, %v12660_v23  ;;  %14281 = vmatprep.mubr.msk.f32.mxu1 %vm383_vm0, %v18459_v63  ;;  %v12669_v23 = vld [vmem:[%s17092_s30 + $0x108] sm:$0xff] }
 0x2ce   : > { %14957 = vmatprep.mubr.msk.f32.mxu0 %vm383_vm0, %v12661_v7  ;;  %v4514_v7 = vld [vmem:[%s16096_s22 + $0x22] sm:$0xff] }
 0x2d0   : > { %14282 = vmatmul.mubr.msk.f32.gmra.mrb[26].mxu1 %vm383_vm0, %v18468_v44 }
 0x2d1   : > { %14958 = vmatmul.mubr.msk.f32.gmra.mrb[10].mxu0 %vm383_vm0, %v12662_v53  ;;  %14284 = vmatprep.mubr.msk.f32.mxu1 %vm383_vm0, %v18473_v45  ;;  %v12670_v53 = vld [vmem:[%s17092_s30 + $0x110] sm:$0xff] }
 0x2d2   : > { %14960 = vmatprep.mubr.msk.f32.mxu0 %vm383_vm0, %v12663_v6  ;;  %v4515_v6 = vld [vmem:[%s16096_s22 + $0x32] sm:$0xff] }
 0x2d4   : > { %14285 = vmatmul.mubr.msk.f32.gmra.mrb[28].mxu1 %vm383_vm0, %v18482_v31 }
 0x2d5   : > { %14961 = vmatmul.mubr.msk.f32.gmra.mrb[12].mxu0 %vm383_vm0, %v12664_v5  ;;  %14287 = vmatprep.mubr.msk.f32.mxu1 %vm383_vm0, %v18487_v25  ;;  %v12671_v5 = vld [vmem:[%s17092_s30 + $0x120] sm:$0xff] }
 0x2d6   : > { %14963 = vmatprep.mubr.msk.f32.mxu0 %vm383_vm0, %v12665_v41  ;;  %v18523_v41 = vld [vmem:[%s19242_s3 + $0x68] sm:$0xff] }
 0x2d8   : > { %14288 = vmatmul.mubr.msk.f32.gmra.mrb[30].mxu1 %vm383_vm0, %v18496_v36 }
 0x2d9   : > { %14964 = vmatmul.mubr.msk.f32.gmra.mrb[14].mxu0 %vm383_vm0, %v12666_v11  ;;  %14292 = vmatprep.mubr.msk.f32.mxu1 %vm383_vm0, %v4511_v60  ;;  %v12672_v11 = vld [vmem:[%s17092_s30 + $0x128] sm:$0xff] }
 0x2da   : > { %14966 = vmatprep.mubr.msk.f32.mxu0 %vm383_vm0, %v12667_v47  ;;  %v4517_v60 = vld [vmem:[%s16096_s22 + $0x4a] sm:$0xff]  ;;  %v12673_v47 = vld [vmem:[%s17092_s30 + $0x138] sm:$0xff] }
 0x2dc   : > { %14293 = vmatmul.mubr.msk.f32.vlgmr.msra.gmra.mrb[0].mxu1 %vm383_vm0, %v4512_v54  ;;  %v4518_v54 = vld [vmem:[%s16096_s22 + $0x52] sm:$0xff] }
 0x2dd   : > { %14341 = vmatpush3.msra.mxu1 %v18323_v21  ;;  %14967 = vmatmul.mubr.msk.f32.gmra.mrb[16].mxu0 %vm383_vm0, %v12668_v2  ;;  %v4516_v21 = vld [vmem:[%s16096_s22 + $0x3a] sm:$0xff] }
 0x2de   : > { %14295 = vmatprep.mubr.msk.f32.mxu1 %vm383_vm0, %v4513_v39  ;;  %14969 = vmatprep.mubr.msk.f32.mxu0 %vm383_vm0, %v12669_v23  ;;  %v12674_v2 = vld [vmem:[%s17092_s30 + $0x140] sm:$0xff]  ;;  %v12675_v23 = vld [vmem:[%s17092_s30 + $0x150] sm:$0xff] }
 0x2df   : > { %15090 = vmatprep.subr.mxu1 %v18523_v41  ;;  %v4519_v39 = vld [vmem:[%s16096_s22 + $0x62] sm:$0xff] }
 0x2e0   : > { %14296 = vmatmul.mubr.msk.f32.gmra.mrb[2].mxu1 %vm383_vm0, %v4514_v7  ;;  %v4520_v7 = vld [vmem:[%s16096_s22 + $0x6a] sm:$0xff] }
 0x2e1   : > { %14970 = vmatmul.mubr.msk.f32.gmra.mrb[18].mxu0 %vm383_vm0, %v12670_v53  ;;  %14298 = vmatprep.mubr.msk.f32.mxu1 %vm383_vm0, %v4515_v6  ;;  %v12676_v53 = vld [vmem:[%s17092_s30 + $0x158] sm:$0xff] }
 0x2e2   : > { %14972 = vmatprep.mubr.msk.f32.mxu0 %vm383_vm0, %v12671_v5  ;;  %v4521_v6 = vld [vmem:[%s16096_s22 + $0x7a] sm:$0xff]  ;;  %v12677_v5 = vld [vmem:[%s17092_s30 + $0x168] sm:$0xff] }
 0x2e4   : > { %14299 = vmatmul.mubr.msk.f32.gmra.mrb[4].mxu1 %vm383_vm0, %v4516_v21  ;;  %v4522_v21 = vld [vmem:[%s16096_s22 + $0x82] sm:$0xff] }
 0x2e5   : > { %14973 = vmatmul.mubr.msk.f32.gmra.mrb[20].mxu0 %vm383_vm0, %v12672_v11  ;;  %14301 = vmatprep.mubr.msk.f32.mxu1 %vm383_vm0, %v4517_v60  ;;  %v12678_v11 = vld [vmem:[%s17092_s30 + $0x170] sm:$0xff] }
 0x2e6   : > { %14975 = vmatprep.mubr.msk.f32.mxu0 %vm383_vm0, %v12673_v47  ;;  %v4523_v60 = vld [vmem:[%s16096_s22 + $0x92] sm:$0xff]  ;;  %v4524_v47 = vld [vmem:[%s16096_s22 + $0x9a] sm:$0xff] }
 0x2e8   : > { %14302 = vmatmul.mubr.msk.f32.gmra.mrb[6].mxu1 %vm383_vm0, %v4518_v54  ;;  %v4525_v54 = vld [vmem:[%s16096_s22 + $0xaa] sm:$0xff] }
 0x2e9   : > { %14976 = vmatmul.mubr.msk.f32.gmra.mrb[22].mxu0 %vm383_vm0, %v12674_v2  ;;  %14304 = vmatprep.mubr.msk.f32.mxu1 %vm383_vm0, %v4519_v39  ;;  %v12681_v2 = vld [vmem:[%s17092_s30 + $0x198] sm:$0xff] }
 0x2ea   : > { %14978 = vmatprep.mubr.msk.f32.mxu0 %vm383_vm0, %v12675_v23  ;;  %v4526_v39 = vld [vmem:[%s16096_s22 + $0xb2] sm:$0xff]  ;;  %v12682_v23 = vld [vmem:[%s17092_s30 + $0x1a0] sm:$0xff] }
 0x2ec   : > { %14305 = vmatmul.mubr.msk.f32.gmra.mrb[8].mxu1 %vm383_vm0, %v4520_v7  ;;  %v4527_v7 = vld [vmem:[%s16096_s22 + $0xc2] sm:$0xff] }
 0x2ed   : > { %14979 = vmatmul.mubr.msk.f32.gmra.mrb[24].mxu0 %vm383_vm0, %v12676_v53  ;;  %14307 = vmatprep.mubr.msk.f32.mxu1 %vm383_vm0, %v4521_v6  ;;  %v4528_v53 = vld [vmem:[%s16096_s22 + $0xca] sm:$0xff]  ;;  %v4529_v6 = vld [vmem:[%s16096_s22 + $0xda] sm:$0xff] }
 0x2ee   : > { %14981 = vmatprep.mubr.msk.f32.mxu0 %vm383_vm0, %v12677_v5  ;;  %v12718_v5 = vld [vmem:[%s17092_s30 + $0x49] sm:$0xff] }
 0x2f0   : > { %14308 = vmatmul.mubr.msk.f32.gmra.mrb[10].mxu1 %vm383_vm0, %v4522_v21  ;;  %v4530_v21 = vld [vmem:[%s16096_s22 + $0xe2] sm:$0xff] }
 0x2f1   : > { %14982 = vmatmul.mubr.msk.f32.gmra.mrb[26].mxu0 %vm383_vm0, %v12678_v11  ;;  %14310 = vmatprep.mubr.msk.f32.mxu1 %vm383_vm0, %v4523_v60  ;;  %v12719_v11 = vld [vmem:[%s17092_s30 + $0x51] sm:$0xff] }
 0x2f2   : > { %14984 = vmatprep.mubr.msk.f32.mxu0 %vm383_vm0, %v17989_v50  ;;  %v12716_v50 = vld [vmem:[%s17092_s30 + $0x31] sm:$0xff] }
 0x2f3   : > { %v4531_v60 = vld [vmem:[%s16096_s22 + $0xf2] sm:$0xff] }
 0x2f4   : > { %14311 = vmatmul.mubr.msk.f32.gmra.mrb[12].mxu1 %vm383_vm0, %v4524_v47  ;;  %v12720_v47 = vld [vmem:[%s17092_s30 + $0x61] sm:$0xff] }
 0x2f5   : > { %14985 = vmatmul.mubr.msk.f32.gmra.mrb[28].mxu0 %vm383_vm0, %v17999_v28  ;;  %14313 = vmatprep.mubr.msk.f32.mxu1 %vm383_vm0, %v4525_v54  ;;  %v12717_v28 = vld [vmem:[%s17092_s30 + $0x39] sm:$0xff] }
 0x2f6   : > { %14987 = vmatprep.mubr.msk.f32.mxu0 %vm383_vm0, %v12681_v2  ;;  %v4532_v54 = vld [vmem:[%s16096_s22 + $0xfa] sm:$0xff]  ;;  %v4533_v2 = vld [vmem:[%s16096_s22 + $0x10a] sm:$0xff] }
 0x2f8   : > { %14314 = vmatmul.mubr.msk.f32.gmra.mrb[14].mxu1 %vm383_vm0, %v4526_v39  ;;  %v12722_v39 = vld [vmem:[%s17092_s30 + $0x79] sm:$0xff] }
 0x2f9   : > { %14988 = vmatmul.mubr.msk.f32.gmra.mrb[30].mxu0 %vm383_vm0, %v12682_v23  ;;  %14316 = vmatprep.mubr.msk.f32.mxu1 %vm383_vm0, %v4527_v7  ;;  %v4534_v23 = vld [vmem:[%s16096_s22 + $0x112] sm:$0xff]  ;;  %v12723_v7 = vld [vmem:[%s17092_s30 + $0x81] sm:$0xff] }
 0x2fa   : > { %14992 = vmatprep.mubr.msk.f32.mxu0 %vm383_vm0, %v12716_v50  ;;  %v4535_v50 = vld [vmem:[%s16096_s22 + $0x122] sm:$0xff] }
 0x2fc   : > { %14317 = vmatmul.mubr.msk.f32.gmra.mrb[16].mxu1 %vm383_vm0, %v4528_v53  ;;  %v12724_v53 = vld [vmem:[%s17092_s30 + $0x91] sm:$0xff] }
 0x2fd   : > { %14993 = vmatmul.mubr.msk.f32.vlgmr.msra.gmra.mrb[0].mxu0 %vm383_vm0, %v12717_v28  ;;  %14319 = vmatprep.mubr.msk.f32.mxu1 %vm383_vm0, %v4529_v6  ;;  %v4536_v28 = vld [vmem:[%s16096_s22 + $0x12a] sm:$0xff]  ;;  %v12725_v6 = vld [vmem:[%s17092_s30 + $0x99] sm:$0xff] }
 0x2fe   : > { %15041 = vmatpush3.msra.mxu0 %v18404_v56  ;;  %14995 = vmatprep.mubr.msk.f32.mxu0 %vm383_vm0, %v12718_v5  ;;  %v12721_v56 = vld [vmem:[%s17092_s30 + $0x69] sm:$0xff]  ;;  %v4537_v5 = vld [vmem:[%s16096_s22 + $0x13a] sm:$0xff] }
 0x300   : > { %14320 = vmatmul.mubr.msk.f32.gmra.mrb[18].mxu1 %vm383_vm0, %v4530_v21  ;;  %v12726_v21 = vld [vmem:[%s17092_s30 + $0xa9] sm:$0xff] }
 0x301   : > { %14996 = vmatmul.mubr.msk.f32.gmra.mrb[2].mxu0 %vm383_vm0, %v12719_v11  ;;  %14322 = vmatprep.mubr.msk.f32.mxu1 %vm383_vm0, %v4531_v60  ;;  %v4538_v11 = vld [vmem:[%s16096_s22 + $0x142] sm:$0xff]  ;;  %v12727_v60 = vld [vmem:[%s17092_s30 + $0xb1] sm:$0xff] }
 0x302   : > { %14998 = vmatprep.mubr.msk.f32.mxu0 %vm383_vm0, %v12720_v47  ;;  %v4539_v47 = vld [vmem:[%s16096_s22 + $0x152] sm:$0xff] }
 0x304   : > { %14323 = vmatmul.mubr.msk.f32.gmra.mrb[20].mxu1 %vm383_vm0, %v4532_v54  ;;  %v12728_v54 = vld [vmem:[%s17092_s30 + $0xc1] sm:$0xff] }
 0x305   : > { %14999 = vmatmul.mubr.msk.f32.gmra.mrb[4].mxu0 %vm383_vm0, %v12721_v56  ;;  %14325 = vmatprep.mubr.msk.f32.mxu1 %vm383_vm0, %v4533_v2  ;;  %v4540_v56 = vld [vmem:[%s16096_s22 + $0x15a] sm:$0xff]  ;;  %v12729_v2 = vld [vmem:[%s17092_s30 + $0xc9] sm:$0xff] }
 0x306   : > { %15001 = vmatprep.mubr.msk.f32.mxu0 %vm383_vm0, %v12722_v39  ;;  %v4541_v39 = vld [vmem:[%s16096_s22 + $0x16a] sm:$0xff] }
 0x308   : > { %14326 = vmatmul.mubr.msk.f32.gmra.mrb[22].mxu1 %vm383_vm0, %v4534_v23  ;;  %v12730_v23 = vld [vmem:[%s17092_s30 + $0xd9] sm:$0xff] }
 0x309   : > { %15002 = vmatmul.mubr.msk.f32.gmra.mrb[6].mxu0 %vm383_vm0, %v12723_v7  ;;  %14328 = vmatprep.mubr.msk.f32.mxu1 %vm383_vm0, %v4535_v50  ;;  %v4542_v7 = vld [vmem:[%s16096_s22 + $0x172] sm:$0xff]  ;;  %v12731_v50 = vld [vmem:[%s17092_s30 + $0xe1] sm:$0xff] }
 0x30a   : > { %15004 = vmatprep.mubr.msk.f32.mxu0 %vm383_vm0, %v12724_v53  ;;  %v12732_v53 = vld [vmem:[%s17092_s30 + $0xf1] sm:$0xff] }
 0x30c   : > { %14329 = vmatmul.mubr.msk.f32.gmra.mrb[24].mxu1 %vm383_vm0, %v4536_v28  ;;  %v12733_v28 = vld [vmem:[%s17092_s30 + $0xf9] sm:$0xff] }
 0x30d   : > { %15005 = vmatmul.mubr.msk.f32.gmra.mrb[8].mxu0 %vm383_vm0, %v12725_v6  ;;  %14331 = vmatprep.mubr.msk.f32.mxu1 %vm383_vm0, %v4537_v5  ;;  %v12734_v6 = vld [vmem:[%s17092_s30 + $0x109] sm:$0xff]  ;;  %v12736_v5 = vld [vmem:[%s17092_s30 + $0x121] sm:$0xff] }
 0x30e   : > { %15007 = vmatprep.mubr.msk.f32.mxu0 %vm383_vm0, %v12726_v21 }
 0x310   : > { %14332 = vmatmul.mubr.msk.f32.gmra.mrb[26].mxu1 %vm383_vm0, %v4538_v11 }
 0x311   : > { %15008 = vmatmul.mubr.msk.f32.gmra.mrb[10].mxu0 %vm383_vm0, %v12727_v60  ;;  %14334 = vmatprep.mubr.msk.f32.mxu1 %vm383_vm0, %v4539_v47 }
 0x312   : > { %15010 = vmatprep.mubr.msk.f32.mxu0 %vm383_vm0, %v12728_v54 }
 0x314   : > { %14335 = vmatmul.mubr.msk.f32.gmra.mrb[28].mxu1 %vm383_vm0, %v4540_v56 }
 0x315   : > { %15011 = vmatmul.mubr.msk.f32.gmra.mrb[12].mxu0 %vm383_vm0, %v12729_v2  ;;  %14337 = vmatprep.mubr.msk.f32.mxu1 %vm383_vm0, %v4541_v39 }
 0x316   : > { %15013 = vmatprep.mubr.msk.f32.mxu0 %vm383_vm0, %v12730_v23 }
 0x318   : > { %14338 = vmatmul.mubr.msk.f32.gmra.mrb[30].mxu1 %vm383_vm0, %v4542_v7 }
 0x319   : > { %15014 = vmatmul.mubr.msk.f32.gmra.mrb[14].mxu0 %vm383_vm0, %v12731_v50  ;;  %14342 = vmatprep.mubr.msk.f32.mxu1 %vm383_vm0, %v18081_v27  ;;  %v12735_v27 = vld [vmem:[%s17092_s30 + $0x111] sm:$0xff] }
 0x31a   : > { %15016 = vmatprep.mubr.msk.f32.mxu0 %vm383_vm0, %v12732_v53 }
 0x31c   : > { %14343 = vmatmul.mubr.msk.f32.vlgmr.msra.gmra.mrb[0].mxu1 %vm383_vm0, %v18093_v38  ;;  %v12737_v38 = vld [vmem:[%s17092_s30 + $0x129] sm:$0xff] }
 0x31d   : > { %15091 = vmatpush3.msra.mxu1 %v18523_v41  ;;  %15017 = vmatmul.mubr.msk.f32.gmra.mrb[16].mxu0 %vm383_vm0, %v12733_v28  ;;  %v12738_v41 = vld [vmem:[%s17092_s30 + $0x139] sm:$0xff] }
 0x31e   : > { %14345 = vmatprep.mubr.msk.f32.mxu1 %vm383_vm0, %v18100_v42  ;;  %15019 = vmatprep.mubr.msk.f32.mxu0 %vm383_vm0, %v12734_v6  ;;  %v12739_v42 = vld [vmem:[%s17092_s30 + $0x141] sm:$0xff] }
 0x320   : > { %14346 = vmatmul.mubr.msk.f32.gmra.mrb[2].mxu1 %vm383_vm0, %v18110_v51  ;;  %v12740_v51 = vld [vmem:[%s17092_s30 + $0x151] sm:$0xff] }
 0x321   : > { %15020 = vmatmul.mubr.msk.f32.gmra.mrb[18].mxu0 %vm383_vm0, %v12735_v27  ;;  %14348 = vmatprep.mubr.msk.f32.mxu1 %vm383_vm0, %v18115_v43  ;;  %v12741_v43 = vld [vmem:[%s17092_s30 + $0x159] sm:$0xff] }
 0x322   : > { %15022 = vmatprep.mubr.msk.f32.mxu0 %vm383_vm0, %v12736_v5 }
 0x324   : > { %14349 = vmatmul.mubr.msk.f32.gmra.mrb[4].mxu1 %vm383_vm0, %v18124_v12  ;;  %v12742_v12 = vld [vmem:[%s17092_s30 + $0x169] sm:$0xff] }
 0x325   : > { %15023 = vmatmul.mubr.msk.f32.gmra.mrb[20].mxu0 %vm383_vm0, %v12737_v38  ;;  %14351 = vmatprep.mubr.msk.f32.mxu1 %vm383_vm0, %v18129_v14  ;;  %v12743_v14 = vld [vmem:[%s17092_s30 + $0x171] sm:$0xff] }
 0x326   : > { %15025 = vmatprep.mubr.msk.f32.mxu0 %vm383_vm0, %v12738_v41 }
 0x328   : > { %14352 = vmatmul.mubr.msk.f32.gmra.mrb[6].mxu1 %vm383_vm0, %v18138_v58  ;;  %v12746_v58 = vld [vmem:[%s17092_s30 + $0x199] sm:$0xff] }
 0x329   : > { %15026 = vmatmul.mubr.msk.f32.gmra.mrb[22].mxu0 %vm383_vm0, %v12739_v42  ;;  %14354 = vmatprep.mubr.msk.f32.mxu1 %vm383_vm0, %v18143_v18  ;;  %v12747_v18 = vld [vmem:[%s17092_s30 + $0x1a1] sm:$0xff] }
 0x32a   : > { %15028 = vmatprep.mubr.msk.f32.mxu0 %vm383_vm0, %v12740_v51 }
 0x32c   : > { %14355 = vmatmul.mubr.msk.f32.gmra.mrb[8].mxu1 %vm383_vm0, %v18152_v8  ;;  %v12781_v8 = vld [vmem:[%s17092_s30 + $0x32] sm:$0xff] }
 0x32d   : > { %15029 = vmatmul.mubr.msk.f32.gmra.mrb[24].mxu0 %vm383_vm0, %v12741_v43  ;;  %14357 = vmatprep.mubr.msk.f32.mxu1 %vm383_vm0, %v18157_v46  ;;  %v12782_v46 = vld [vmem:[%s17092_s30 + $0x3a] sm:$0xff] }
 0x32e   : > { %15031 = vmatprep.mubr.msk.f32.mxu0 %vm383_vm0, %v12742_v12 }
 0x330   : > { %14358 = vmatmul.mubr.msk.f32.gmra.mrb[10].mxu1 %vm383_vm0, %v18166_v13  ;;  %v12783_v13 = vld [vmem:[%s17092_s30 + $0x4a] sm:$0xff] }
 0x331   : > { %15032 = vmatmul.mubr.msk.f32.gmra.mrb[26].mxu0 %vm383_vm0, %v12743_v14  ;;  %14360 = vmatprep.mubr.msk.f32.mxu1 %vm383_vm0, %v18171_v15  ;;  %v12784_v15 = vld [vmem:[%s17092_s30 + $0x52] sm:$0xff] }
 0x332   : > { %15034 = vmatprep.mubr.msk.f32.mxu0 %vm383_vm0, %v18174_v62  ;;  %v12785_v62 = vld [vmem:[%s17092_s30 + $0x62] sm:$0xff] }
 0x334   : > { %14361 = vmatmul.mubr.msk.f32.gmra.mrb[12].mxu1 %vm383_vm0, %v18183_v0  ;;  %v12786_v0 = vld [vmem:[%s17092_s30 + $0x6a] sm:$0xff] }
 0x335   : > { %15035 = vmatmul.mubr.msk.f32.gmra.mrb[28].mxu0 %vm383_vm0, %v18188_v32  ;;  %14363 = vmatprep.mubr.msk.f32.mxu1 %vm383_vm0, %v18191_v49  ;;  %v12787_v32 = vld [vmem:[%s17092_s30 + $0x7a] sm:$0xff]  ;;  %v12788_v49 = vld [vmem:[%s17092_s30 + $0x82] sm:$0xff] }
 0x336   : > { %15037 = vmatprep.mubr.msk.f32.mxu0 %vm383_vm0, %v12746_v58 }
 0x338   : > { %14364 = vmatmul.mubr.msk.f32.gmra.mrb[14].mxu1 %vm383_vm0, %v18200_v61  ;;  %v12789_v61 = vld [vmem:[%s17092_s30 + $0x92] sm:$0xff] }
 0x339   : > { %15038 = vmatmul.mubr.msk.f32.gmra.mrb[30].mxu0 %vm383_vm0, %v12747_v18  ;;  %14366 = vmatprep.mubr.msk.f32.mxu1 %vm383_vm0, %v18205_v10  ;;  %v12790_v10 = vld [vmem:[%s17092_s30 + $0x9a] sm:$0xff] }
 0x33a   : > { %15042 = vmatprep.mubr.msk.f32.mxu0 %vm383_vm0, %v12781_v8 }
 0x33c   : > { %14367 = vmatmul.mubr.msk.f32.gmra.mrb[16].mxu1 %vm383_vm0, %v18219_v29  ;;  %v12791_v29 = vld [vmem:[%s17092_s30 + $0xaa] sm:$0xff] }
 0x33d   : > { %15043 = vmatmul.mubr.msk.f32.vlgmr.msra.gmra.mrb[0].mxu0 %vm383_vm0, %v12782_v46  ;;  %14369 = vmatprep.mubr.msk.f32.mxu1 %vm383_vm0, %v18225_v33  ;;  %v12792_v33 = vld [vmem:[%s17092_s30 + $0xb2] sm:$0xff] }
 0x33e   : > { %15045 = vmatprep.mubr.msk.f32.mxu0 %vm383_vm0, %v12783_v13 }
 0x340   : > { %14370 = vmatmul.mubr.msk.f32.gmra.mrb[18].mxu1 %vm383_vm0, %v18235_v26  ;;  %v12793_v26 = vld [vmem:[%s17092_s30 + $0xc2] sm:$0xff] }
 0x341   : > { %15046 = vmatmul.mubr.msk.f32.gmra.mrb[2].mxu0 %vm383_vm0, %v12784_v15  ;;  %14372 = vmatprep.mubr.msk.f32.mxu1 %vm383_vm0, %v18240_v3  ;;  %v12794_v3 = vld [vmem:[%s17092_s30 + $0xca] sm:$0xff] }
 0x342   : > { %15048 = vmatprep.mubr.msk.f32.mxu0 %vm383_vm0, %v12785_v62 }
 0x344   : > { %14373 = vmatmul.mubr.msk.f32.gmra.mrb[20].mxu1 %vm383_vm0, %v18249_v20  ;;  %v11997_v20 = vld [vmem:[%s16096_s22 + $0x180] sm:$0xff] }
 0x345   : > { %15049 = vmatmul.mubr.msk.f32.gmra.mrb[4].mxu0 %vm383_vm0, %v12786_v0  ;;  %14375 = vmatprep.mubr.msk.f32.mxu1 %vm383_vm0, %v18254_v52  ;;  %v12795_v52 = vld [vmem:[%s17092_s30 + $0xda] sm:$0xff] }
 0x346   : > { %15051 = vmatprep.mubr.msk.f32.mxu0 %vm383_vm0, %v12787_v32 }
 0x348   : > { %14376 = vmatmul.mubr.msk.f32.gmra.mrb[22].mxu1 %vm383_vm0, %v18263_v19  ;;  %v11998_v19 = vld [vmem:[%s16096_s22 + $0x188] sm:$0xff] }
 0x349   : > { %15052 = vmatmul.mubr.msk.f32.gmra.mrb[6].mxu0 %vm383_vm0, %v12788_v49  ;;  %14378 = vmatprep.mubr.msk.f32.mxu1 %vm383_vm0, %v18268_v40  ;;  %v12796_v40 = vld [vmem:[%s17092_s30 + $0xe2] sm:$0xff] }
 0x34a   : > { %15054 = vmatprep.mubr.msk.f32.mxu0 %vm383_vm0, %v12789_v61 }
 0x34c   : > { %14379 = vmatmul.mubr.msk.f32.gmra.mrb[24].mxu1 %vm383_vm0, %v18277_v1  ;;  %v12797_v1 = vld [vmem:[%s17092_s30 + $0xf2] sm:$0xff] }
 0x34d   : > { %15055 = vmatmul.mubr.msk.f32.gmra.mrb[8].mxu0 %vm383_vm0, %v12790_v10  ;;  %14381 = vmatprep.mubr.msk.f32.mxu1 %vm383_vm0, %v18282_v9  ;;  %v12798_v9 = vld [vmem:[%s17092_s30 + $0xfa] sm:$0xff] }
 0x34e   : > { %15057 = vmatprep.mubr.msk.f32.mxu0 %vm383_vm0, %v12791_v29 }
 0x350   : > { %14382 = vmatmul.mubr.msk.f32.gmra.mrb[26].mxu1 %vm383_vm0, %v18291_v16  ;;  %v12799_v16 = vld [vmem:[%s17092_s30 + $0x10a] sm:$0xff] }
 0x351   : > { %15058 = vmatmul.mubr.msk.f32.gmra.mrb[10].mxu0 %vm383_vm0, %v12792_v33  ;;  %14384 = vmatprep.mubr.msk.f32.mxu1 %vm383_vm0, %v18296_v55  ;;  %v12800_v55 = vld [vmem:[%s17092_s30 + $0x112] sm:$0xff] }
 0x352   : > { %15060 = vmatprep.mubr.msk.f32.mxu0 %vm383_vm0, %v12793_v26 }
 0x354   : > { %14385 = vmatmul.mubr.msk.f32.gmra.mrb[28].mxu1 %vm383_vm0, %v18305_v22  ;;  %v12801_v22 = vld [vmem:[%s17092_s30 + $0x122] sm:$0xff] }
 0x355   : > { %15061 = vmatmul.mubr.msk.f32.gmra.mrb[12].mxu0 %vm383_vm0, %v12794_v3  ;;  %14387 = vmatprep.mubr.msk.f32.mxu1 %vm383_vm0, %v11997_v20 }
 0x356   : > { %15063 = vmatprep.mubr.msk.f32.mxu0 %vm383_vm0, %v12795_v52 }
 0x358   : > { %14388 = vmatmul.mubr.msk.f32.gmra.mrb[30].mxu1 %vm383_vm0, %v11998_v19 }
 0x359   : > { %15064 = vmatmul.mubr.msk.f32.gmra.mrb[14].mxu0 %vm383_vm0, %v12796_v40  ;;  %14416 = vmatprep.mubr.msk.f32.mxu1 %vm383_vm0, %v18397_v37  ;;  %v12802_v37 = vld [vmem:[%s17092_s30 + $0x12a] sm:$0xff] }
 0x35a   : > { %15066 = vmatprep.mubr.msk.f32.mxu0 %vm383_vm0, %v12797_v1 }
 0x35c   : > { %14417 = vmatmul.mubr.msk.f32.vlgmr.msra.gmra.mrb[16].mxu1 %vm383_vm0, %v18410_v34  ;;  %v12803_v34 = vld [vmem:[%s17092_s30 + $0x13a] sm:$0xff] }
 0x35d   : > { %15067 = vmatmul.mubr.msk.f32.gmra.mrb[16].mxu0 %vm383_vm0, %v12798_v9  ;;  %14419 = vmatprep.mubr.msk.f32.mxu1 %vm383_vm0, %v18416_v24  ;;  %v12804_v24 = vld [vmem:[%s17092_s30 + $0x142] sm:$0xff] }
 0x35e   : > { %15069 = vmatprep.mubr.msk.f32.mxu0 %vm383_vm0, %v12799_v16 }
 0x360   : > { %14420 = vmatmul.mubr.msk.f32.gmra.mrb[18].mxu1 %vm383_vm0, %v18426_v57  ;;  %v12805_v57 = vld [vmem:[%s17092_s30 + $0x152] sm:$0xff] }
 0x361   : > { %15070 = vmatmul.mubr.msk.f32.gmra.mrb[18].mxu0 %vm383_vm0, %v12800_v55  ;;  %14422 = vmatprep.mubr.msk.f32.mxu1 %vm383_vm0, %v18431_v48  ;;  %v12806_v48 = vld [vmem:[%s17092_s30 + $0x15a] sm:$0xff] }
 0x362   : > { %15072 = vmatprep.mubr.msk.f32.mxu0 %vm383_vm0, %v12801_v22 }
 0x364   : > { %14423 = vmatmul.mubr.msk.f32.gmra.mrb[20].mxu1 %vm383_vm0, %v18440_v4  ;;  %v12807_v4 = vld [vmem:[%s17092_s30 + $0x16a] sm:$0xff] }
 0x365   : > { %15073 = vmatmul.mubr.msk.f32.gmra.mrb[20].mxu0 %vm383_vm0, %v12802_v37  ;;  %14425 = vmatprep.mubr.msk.f32.mxu1 %vm383_vm0, %v18445_v30  ;;  %v12808_v30 = vld [vmem:[%s17092_s30 + $0x172] sm:$0xff] }
 0x366   : > { %15075 = vmatprep.mubr.msk.f32.mxu0 %vm383_vm0, %v12803_v34 }
 0x368   : > { %14426 = vmatmul.mubr.msk.f32.gmra.mrb[22].mxu1 %vm383_vm0, %v18454_v59  ;;  %v12062_v59 = vld [vmem:[%s16096_s22 + $0x181] sm:$0xff] }
 0x369   : > { %15076 = vmatmul.mubr.msk.f32.gmra.mrb[22].mxu0 %vm383_vm0, %v12804_v24  ;;  %14428 = vmatprep.mubr.msk.f32.mxu1 %vm383_vm0, %v18459_v63  ;;  %v12811_v63 = vld [vmem:[%s17092_s30 + $0x19a] sm:$0xff] }
 0x36a   : > { %15078 = vmatprep.mubr.msk.f32.mxu0 %vm383_vm0, %v12805_v57 }
 0x36c   : > { %14429 = vmatmul.mubr.msk.f32.gmra.mrb[24].mxu1 %vm383_vm0, %v18468_v44  ;;  %v12063_v44 = vld [vmem:[%s16096_s22 + $0x189] sm:$0xff]  ;;  %s11377_s22 = sshll.u32 %s15994_s16, 2 }
 0x36d   : > { %15079 = vmatmul.mubr.msk.f32.gmra.mrb[24].mxu0 %vm383_vm0, %v12806_v48  ;;  %14431 = vmatprep.mubr.msk.f32.mxu1 %vm383_vm0, %v18473_v45  ;;  %v12812_v45 = vld [vmem:[%s17092_s30 + $0x1a2] sm:$0xff]  ;;  %s308_s30 = sadd.s32 %s15990_s15, %s11377_s22 }
 0x36e   : > { %15081 = vmatprep.mubr.msk.f32.mxu0 %vm383_vm0, %v12807_v4  ;;  %p309_p8 = scmp.lt.s32.totalorder %s308_s30, 7 }
 0x370   : > { %14432 = vmatmul.mubr.msk.f32.gmra.mrb[26].mxu1 %vm383_vm0, %v18482_v31  ;;  %s19502_s30 = smov (!%p309_p8, %s308_s30), 7 }
 0x371   : > { %15082 = vmatmul.mubr.msk.f32.gmra.mrb[26].mxu0 %vm383_vm0, %v12808_v30  ;;  %14434 = vmatprep.mubr.msk.f32.mxu1 %vm383_vm0, %v18487_v25  ;;  %s12848_s15 = sshll.u32 %s19502_s30, 6 }
 0x372   : > { %15084 = vmatprep.mubr.msk.f32.mxu0 %vm383_vm0, %v18375_v17  ;;  %s18884_s27 = scalar_lea.vmem %s19243_s4, %s12848_s15 }
 0x374   : > { %14435 = vmatmul.mubr.msk.f32.gmra.mrb[28].mxu1 %vm383_vm0, %v18496_v36 }
 0x375   : > { %15085 = vmatmul.mubr.msk.f32.gmra.mrb[28].mxu0 %vm383_vm0, %v18385_v35  ;;  %14437 = vmatprep.mubr.msk.f32.mxu1 %vm383_vm0, %v12062_v59 }
 0x376   : > { %15087 = vmatprep.mubr.msk.f32.mxu0 %vm383_vm0, %v12811_v63 }
 0x378   : > { %14438 = vmatmul.mubr.msk.f32.gmra.mrb[30].mxu1 %vm383_vm0, %v12063_v44 }
 0x379   : > { %15088 = vmatmul.mubr.msk.f32.gmra.mrb[30].mxu0 %vm383_vm0, %v12812_v45 }
 0x3ef   : > { %v14344_v31 = vpop.f32.mrb[0].mxu1 }
 0x3f0   : > { %v5095_v17 = vpop.f32.mrb[1].mxu1 }
 0x3f3   : > { %v14347_v25 = vpop.f32.mrb[2].mxu1 }
 0x3f4   : > { %v5105_v21 = vpop.f32.mrb[3].mxu1 }
 0x3f7   : > { %v18832_v11 = vpop.f32.mrb[4].mxu1 }
 0x3f8   : > { %v18834_v36 = vpop.f32.mrb[5].mxu1 }
 0x3fb   : > { %v18836_v35 = vpop.f32.mrb[6].mxu1 }
 0x3fc   : > { %v18838_v60 = vpop.f32.mrb[7].mxu1 }
 0x3ff   : > { %v18840_v47 = vpop.f32.mrb[8].mxu1 }
 0x400   : > { %v18842_v54 = vpop.f32.mrb[9].mxu1 }
 0x403   : > { %v18844_v56 = vpop.f32.mrb[10].mxu1 }
 0x404   : > { %v18846_v2 = vpop.f32.mrb[11].mxu1 }
 0x407   : > { %v18848_v39 = vpop.f32.mrb[12].mxu1 }
 0x408   : > { %v18850_v23 = vpop.f32.mrb[13].mxu1 }
 0x40b   : > { %v18852_v7 = vpop.f32.mrb[14].mxu1 }
 0x40c   : > { %v18854_v50 = vpop.f32.mrb[15].mxu1 }
 0x410   : > { %v15044_v53 = vpop.f32.mrb[0].mxu0 }
 0x411   : > { %v15092_v28 = vadd.f32 %v15044_v53, %v14344_v31  ;;  %v10516_v6 = vpop.f32.mrb[1].mxu0 }
 0x412   : > { %v15093_v27 = vadd.f32 %v10516_v6, %v5095_v17 }
 0x414   : > { %v15047_v5 = vpop.f32.mrb[2].mxu0 }
 0x415   : > { %v18858_v38 = vadd.f32 %v15047_v5, %v14347_v25  ;;  %v10526_v41 = vpop.f32.mrb[3].mxu0 }
 0x416   : > { %v18860_v42 = vadd.f32 %v10526_v41, %v5105_v21 }
 0x417   : > { %v10708_v51 = vmax.f32 %v15092_v28, %v18858_v38 }
 0x418   : > { %v10707_v43 = vmax.f32 %v15093_v27, %v18860_v42  ;;  %v18864_v12 = vpop.f32.mrb[4].mxu0 }
 0x419   : > { %v10999_v14 = vsel %vm10737_vm1, %v10708_v51, -inf  ;;  %v11078_v58 = vsel %vm10802_vm2, %v10708_v51, -inf  ;;  %v11142_v18 = vsel %vm10867_vm3, %v10708_v51, -inf  ;;  %v11206_v8 = vsel %vm10932_vm4, %v10708_v51, -inf  ;;  %v18870_v46 = vpop.f32.mrb[5].mxu0 }
 0x41a   : > { %v11079_v13 = vrot.slane %v11078_v58, 4  ;;  %v11143_v15 = vrot.slane %v11142_v18, 4  ;;  %v11207_v62 = vrot.slane %v11206_v8, 4  ;;  %v10738_v0 = vsel %vm10737_vm1, %v10707_v43, -inf }
 0x41b   : > { %v10739_v32 = vrot.slane %v10738_v0, 4  ;;  %v10803_v49 = vsel %vm10802_vm2, %v10707_v43, -inf  ;;  %v10868_v61 = vsel %vm10867_vm3, %v10707_v43, -inf  ;;  %v10933_v10 = vsel %vm10932_vm4, %v10707_v43, -inf }
 0x41c   : > { %v11080_v29 = vmax.f32 %v11078_v58, %v11079_v13  ;;  %v11144_v33 = vmax.f32 %v11142_v18, %v11143_v15  ;;  %v11208_v26 = vmax.f32 %v11206_v8, %v11207_v62  ;;  %v10804_v3 = vrot.slane %v10803_v49, 4  ;;  %v15053_v20 = vpop.f32.mrb[6].mxu0 }
 0x41d   : > { %v10740_v52 = vmax.f32 %v10738_v0, %v10739_v32  ;;  %v10869_v19 = vrot.slane %v10868_v61, 4  ;;  %v10934_v40 = vrot.slane %v10933_v10, 4  ;;  %v10998_v1 = vsel %vm10997_vm5, %v10707_v43, -inf  ;;  %v10546_v9 = vpop.f32.mrb[7].mxu0 }
 0x41e   : > { %v11081_v16 = vrot.slane %v11080_v29, 2  ;;  %v11145_v55 = vrot.slane %v11144_v33, 2  ;;  %v11209_v22 = vrot.slane %v11208_v26, 2  ;;  %v10805_v37 = vmax.f32 %v10803_v49, %v10804_v3 }
 0x41f   : > { %v10741_v34 = vrot.slane %v10740_v52, 2  ;;  %v10870_v24 = vmax.f32 %v10868_v61, %v10869_v19  ;;  %v10935_v57 = vmax.f32 %v10933_v10, %v10934_v40  ;;  %v11000_v48 = vmax.f32 %v10998_v1, %v10999_v14 }
 0x420   : > { %v11082_v4 = vmax.f32 %v11080_v29, %v11081_v16  ;;  %v11146_v30 = vmax.f32 %v11144_v33, %v11145_v55  ;;  %v11210_v59 = vmax.f32 %v11208_v26, %v11209_v22  ;;  %v10806_v63 = vrot.slane %v10805_v37, 2  ;;  %v15056_v44 = vpop.f32.mrb[8].mxu0 }
 0x421   : > { %v10742_v45 = vmax.f32 %v10740_v52, %v10741_v34  ;;  %v10871_v31 = vrot.slane %v10870_v24, 2  ;;  %v10936_v17 = vrot.slane %v10935_v57, 2  ;;  %v11001_v25 = vrot.slane %v11000_v48, 4  ;;  %v10556_v21 = vpop.f32.mrb[9].mxu0 }
 0x422   : > { %v11083_v53 = vrot.slane %v11082_v4, 1  ;;  %v11147_v28 = vrot.slane %v11146_v30, 1  ;;  %v11211_v6 = vrot.slane %v11210_v59, 1  ;;  %v10807_v27 = vmax.f32 %v10805_v37, %v10806_v63 }
 0x423   : > { %v10743_v5 = vrot.slane %v10742_v45, 1  ;;  %v10872_v41 = vmax.f32 %v10870_v24, %v10871_v31  ;;  %v10937_v51 = vmax.f32 %v10935_v57, %v10936_v17  ;;  %v11002_v43 = vmax.f32 %v11000_v48, %v11001_v25 }
 0x424   : > { %v11084_v14 = vmax.f32 %v11082_v4, %v11083_v53  ;;  %v11148_v58 = vmax.f32 %v11146_v30, %v11147_v28  ;;  %v11212_v18 = vmax.f32 %v11210_v59, %v11211_v6  ;;  %v10808_v8 = vrot.slane %v10807_v27, 1  ;;  %v15059_v13 = vpop.f32.mrb[10].mxu0 }
 0x425   : > { %v10744_v15 = vmax.f32 %v10742_v45, %v10743_v5  ;;  %v10873_v62 = vrot.slane %v10872_v41, 1  ;;  %v10938_v0 = vrot.slane %v10937_v51, 1  ;;  %v11003_v32 = vrot.slane %v11002_v43, 2  ;;  %v10566_v49 = vpop.f32.mrb[11].mxu0 }
 0x426   : > { %11134 = vst [vmem:[%s18884_s27 + $0x5] sm:$0x1] %v11084_v14  ;;  %11198 = vst [vmem:[%s18884_s27 + $0x6] sm:$0x1] %v11148_v58  ;;  %v10809_v61 = vmax.f32 %v10807_v27, %v10808_v8  ;;  %v15096_v10 = vadd.f32 %v18864_v12, %v18832_v11  ;;  %v15097_v29 = vadd.f32 %v18870_v46, %v18834_v36 }
 0x427   : > { %11262 = vst [vmem:[%s18884_s27 + $0x7] sm:$0x1] %v11212_v18  ;;  %v18894_v33 = vadd.f32 %v15053_v20, %v18836_v35  ;;  %10794 = vst [vmem:[%s18884_s27] sm:$0x1] %v10744_v15  ;;  %v10874_v26 = vmax.f32 %v10872_v41, %v10873_v62  ;;  %v10939_v3 = vmax.f32 %v10937_v51, %v10938_v0 }
 0x428   : > { %v11004_v52 = vmax.f32 %v11002_v43, %v11003_v32  ;;  %v18898_v19 = vadd.f32 %v10546_v9, %v18838_v60  ;;  %10859 = vst [vmem:[%s18884_s27 + $0x1] sm:$0x1] %v10809_v61  ;;  %v18904_v1 = vadd.f32 %v15056_v44, %v18840_v47  ;;  %v18907_v11 = vadd.f32 %v10556_v21, %v18842_v54  ;;  %v15062_v35 = vpop.f32.mrb[12].mxu0 }
 0x429   : > { %v10711_v40 = vmax.f32 %v18858_v38, %v18894_v33  ;;  %v18910_v36 = vadd.f32 %v15059_v13, %v18844_v56  ;;  %10924 = vst [vmem:[%s18884_s27 + $0x2] sm:$0x1] %v10874_v26  ;;  %10989 = vst [vmem:[%s18884_s27 + $0x3] sm:$0x1] %v10939_v3  ;;  %v18917_v46 = vadd.f32 %v10566_v49, %v18846_v2  ;;  %v10576_v38 = vpop.f32.mrb[13].mxu0 }
 0x42a   : > { %v11005_v12 = vrot.slane %v11004_v52, 1  ;;  %v10709_v60 = vmax.f32 %v18860_v42, %v18898_v19  ;;  %v18920_v47 = vadd.f32 %v15062_v35, %v18848_v39  ;;  %v18925_v20 = vadd.f32 %v10576_v38, %v18850_v23 }
 0x42b   : > { %v10712_v54 = vmax.f32 %v10711_v40, %v15096_v10  ;;  %v10715_v56 = vmax.f32 %v18894_v33, %v18910_v36  ;;  %v10713_v55 = vmax.f32 %v18898_v19, %v18917_v46 }
 0x42c   : > { %v11006_v9 = vmax.f32 %v11004_v52, %v11005_v12  ;;  %v10710_v16 = vmax.f32 %v10709_v60, %v15097_v29  ;;  %v18933_v37 = vpop.f32.mrb[14].mxu0 }
 0x42d   : > { %v11008_v42 = vsel %vm10737_vm1, %v10712_v54, -inf  ;;  %v11085_v2 = vsel %vm10802_vm2, %v10712_v54, -inf  ;;  %v11149_v39 = vsel %vm10867_vm3, %v10712_v54, -inf  ;;  %v11213_v22 = vsel %vm10932_vm4, %v10712_v54, -inf  ;;  %v18937_v48 = vpop.f32.mrb[15].mxu0 }
 0x42e   : > { %11070 = vst [vmem:[%s18884_s27 + $0x4] sm:$0x1] %v11006_v9  ;;  %v11086_v34 = vrot.slane %v11085_v2, 4  ;;  %v11150_v24 = vrot.slane %v11149_v39, 4  ;;  %v11214_v23 = vrot.slane %v11213_v22, 4  ;;  %v10745_v57 = vsel %vm10737_vm1, %v10710_v16, -inf }
 0x42f   : > { %v10746_v4 = vrot.slane %v10745_v57, 4  ;;  %v10810_v30 = vsel %vm10802_vm2, %v10710_v16, -inf  ;;  %v10875_v59 = vsel %vm10867_vm3, %v10710_v16, -inf  ;;  %v10940_v63 = vsel %vm10932_vm4, %v10710_v16, -inf  ;;  %v18942_v25 = vpop.f32.mrb[16].mxu1 }
 0x430   : > { %v11087_v44 = vmax.f32 %v11085_v2, %v11086_v34  ;;  %v11151_v45 = vmax.f32 %v11149_v39, %v11150_v24  ;;  %v11215_v31 = vmax.f32 %v11213_v22, %v11214_v23  ;;  %v10811_v17 = vrot.slane %v10810_v30, 4  ;;  %v18945_v27 = vpop.f32.mrb[17].mxu1  ;;  %v18947_v5 = vpop.f32.mrb[16].mxu0 }
 0x431   : > { %v10747_v21 = vmax.f32 %v10745_v57, %v10746_v4  ;;  %v10876_v53 = vrot.slane %v10875_v59, 4  ;;  %v10941_v28 = vrot.slane %v10940_v63, 4  ;;  %v11007_v6 = vsel %vm10997_vm5, %v10710_v16, -inf  ;;  %v18949_v58 = vpop.f32.mrb[17].mxu0 }
 0x432   : > { %v11088_v41 = vrot.slane %v11087_v44, 2  ;;  %v11152_v51 = vrot.slane %v11151_v45, 2  ;;  %v11216_v43 = vrot.slane %v11215_v31, 2  ;;  %v10812_v14 = vmax.f32 %v10810_v30, %v10811_v17 }
 0x433   : > { %v10748_v18 = vrot.slane %v10747_v21, 2  ;;  %v10877_v8 = vmax.f32 %v10875_v59, %v10876_v53  ;;  %v10942_v13 = vmax.f32 %v10940_v63, %v10941_v28  ;;  %v11009_v15 = vmax.f32 %v11007_v6, %v11008_v42  ;;  %v18951_v61 = vpop.f32.mrb[18].mxu1 }
 0x434   : > { %v11089_v62 = vmax.f32 %v11087_v44, %v11088_v41  ;;  %v11153_v0 = vmax.f32 %v11151_v45, %v11152_v51  ;;  %v11217_v32 = vmax.f32 %v11215_v31, %v11216_v43  ;;  %v10813_v49 = vrot.slane %v10812_v14, 2  ;;  %v18953_v52 = vpop.f32.mrb[19].mxu1  ;;  %v18955_v40 = vpop.f32.mrb[18].mxu0 }
 0x435   : > { %v10749_v10 = vmax.f32 %v10747_v21, %v10748_v18  ;;  %v10878_v29 = vrot.slane %v10877_v8, 2  ;;  %v10943_v26 = vrot.slane %v10942_v13, 2  ;;  %v11010_v3 = vrot.slane %v11009_v15, 4  ;;  %v18957_v54 = vpop.f32.mrb[19].mxu0 }
 0x436   : > { %v11090_v35 = vrot.slane %v11089_v62, 1  ;;  %v11154_v12 = vrot.slane %v11153_v0, 1  ;;  %v11218_v60 = vrot.slane %v11217_v32, 1  ;;  %v10814_v38 = vmax.f32 %v10812_v14, %v10813_v49 }
 0x437   : > { %v10750_v9 = vrot.slane %v10749_v10, 1  ;;  %v10879_v16 = vmax.f32 %v10877_v8, %v10878_v29  ;;  %v10944_v42 = vmax.f32 %v10942_v13, %v10943_v26  ;;  %v11011_v2 = vmax.f32 %v11009_v15, %v11010_v3  ;;  %v18959_v23 = vpop.f32.mrb[20].mxu1 }
 0x438   : > { %v11091_v39 = vmax.f32 %v11089_v62, %v11090_v35  ;;  %v11155_v22 = vmax.f32 %v11153_v0, %v11154_v12  ;;  %v11219_v34 = vmax.f32 %v11217_v32, %v11218_v60  ;;  %v10815_v24 = vrot.slane %v10814_v38, 1  ;;  %v18961_v63 = vpop.f32.mrb[21].mxu1  ;;  %v18963_v44 = vpop.f32.mrb[20].mxu0 }
 0x439   : > { %v10751_v57 = vmax.f32 %v10749_v10, %v10750_v9  ;;  %v10880_v4 = vrot.slane %v10879_v16, 1  ;;  %v10945_v30 = vrot.slane %v10944_v42, 1  ;;  %v11012_v59 = vrot.slane %v11011_v2, 2  ;;  %v18980_v53 = vpop.f32.mrb[21].mxu0 }
 0x43a   : > { %11135 = vst [vmem:[%s18884_s27 + $0xd] sm:$0x1] %v11091_v39  ;;  %11199 = vst [vmem:[%s18884_s27 + $0xe] sm:$0x1] %v11155_v22  ;;  %v10816_v45 = vmax.f32 %v10814_v38, %v10815_v24  ;;  %v10716_v31 = vmax.f32 %v10715_v56, %v18904_v1  ;;  %v10714_v17 = vmax.f32 %v10713_v55, %v18907_v11 }
 0x43b   : > { %11263 = vst [vmem:[%s18884_s27 + $0xf] sm:$0x1] %v11219_v34  ;;  %v18978_v21 = vadd.f32 %v18933_v37, %v18852_v7  ;;  %10795 = vst [vmem:[%s18884_s27 + $0x8] sm:$0x1] %v10751_v57  ;;  %v10881_v28 = vmax.f32 %v10879_v16, %v10880_v4  ;;  %v10946_v6 = vmax.f32 %v10944_v42, %v10945_v30  ;;  %v18992_v56 = vpop.f32.mrb[22].mxu1 }
 0x43c   : > { %v11013_v41 = vmax.f32 %v11011_v2, %v11012_v59  ;;  %v18985_v33 = vadd.f32 %v18937_v48, %v18854_v50  ;;  %10860 = vst [vmem:[%s18884_s27 + $0x9] sm:$0x1] %v10816_v45  ;;  %v11017_v1 = vsel %vm10737_vm1, %v10716_v31, -inf  ;;  %v11092_v19 = vsel %vm10802_vm2, %v10716_v31, -inf  ;;  %v18996_v14 = vpop.f32.mrb[23].mxu1  ;;  %v18998_v50 = vpop.f32.mrb[22].mxu0 }
 0x43d   : > { %v11156_v11 = vsel %vm10867_vm3, %v10716_v31, -inf  ;;  %v11220_v7 = vsel %vm10932_vm4, %v10716_v31, -inf  ;;  %10925 = vst [vmem:[%s18884_s27 + $0xa] sm:$0x1] %v10881_v28  ;;  %10990 = vst [vmem:[%s18884_s27 + $0xb] sm:$0x1] %v10946_v6 }
 0x43e   : > { %v11014_v55 = vrot.slane %v11013_v41, 1  ;;  %v11093_v37 = vrot.slane %v11092_v19, 4  ;;  %v11157_v51 = vrot.slane %v11156_v11, 4  ;;  %v11221_v43 = vrot.slane %v11220_v7, 4  ;;  %v19004_v15 = vpop.f32.mrb[23].mxu0 }
 0x43f   : > { %v10752_v48 = vsel %vm10737_vm1, %v10714_v17, -inf  ;;  %v10817_v18 = vsel %vm10802_vm2, %v10714_v17, -inf  ;;  %v10882_v8 = vsel %vm10867_vm3, %v10714_v17, -inf  ;;  %v10947_v13 = vsel %vm10932_vm4, %v10714_v17, -inf  ;;  %v19006_v35 = vpop.f32.mrb[24].mxu1 }
 0x440   : > { %v11015_v62 = vmax.f32 %v11013_v41, %v11014_v55  ;;  %v11094_v0 = vmax.f32 %v11092_v19, %v11093_v37  ;;  %v11158_v32 = vmax.f32 %v11156_v11, %v11157_v51  ;;  %v11222_v49 = vmax.f32 %v11220_v7, %v11221_v43  ;;  %v19010_v16 = vpop.f32.mrb[25].mxu1  ;;  %v19012_v42 = vpop.f32.mrb[24].mxu0 }
 0x441   : > { %v10753_v10 = vrot.slane %v10752_v48, 4  ;;  %v10818_v29 = vrot.slane %v10817_v18, 4  ;;  %v10883_v26 = vrot.slane %v10882_v8, 4  ;;  %v10948_v3 = vrot.slane %v10947_v13, 4  ;;  %v19014_v24 = vpop.f32.mrb[25].mxu0 }
 0x442   : > { %11071 = vst [vmem:[%s18884_s27 + $0xc] sm:$0x1] %v11015_v62  ;;  %v11095_v12 = vrot.slane %v11094_v0, 2  ;;  %v11159_v60 = vrot.slane %v11158_v32, 2  ;;  %v11223_v38 = vrot.slane %v11222_v49, 2  ;;  %v11016_v9 = vsel %vm10997_vm5, %v10714_v17, -inf }
 0x443   : > { %v10754_v2 = vmax.f32 %v10752_v48, %v10753_v10  ;;  %v10819_v39 = vmax.f32 %v10817_v18, %v10818_v29  ;;  %v10884_v22 = vmax.f32 %v10882_v8, %v10883_v26  ;;  %v10949_v34 = vmax.f32 %v10947_v13, %v10948_v3  ;;  %v19016_v41 = vpop.f32.mrb[26].mxu1 }
 0x444   : > { %v11096_v57 = vmax.f32 %v11094_v0, %v11095_v12  ;;  %v11160_v4 = vmax.f32 %v11158_v32, %v11159_v60  ;;  %v11224_v30 = vmax.f32 %v11222_v49, %v11223_v38  ;;  %v11018_v59 = vmax.f32 %v11016_v9, %v11017_v1  ;;  %v19018_v55 = vpop.f32.mrb[27].mxu1  ;;  %v19020_v37 = vpop.f32.mrb[26].mxu0 }
 0x445   : > { %v10755_v45 = vrot.slane %v10754_v2, 2  ;;  %v10820_v31 = vrot.slane %v10819_v39, 2  ;;  %v10885_v28 = vrot.slane %v10884_v22, 2  ;;  %v10950_v6 = vrot.slane %v10949_v34, 2  ;;  %v19022_v18 = vpop.f32.mrb[27].mxu0 }
 0x446   : > { %v11097_v17 = vrot.slane %v11096_v57, 1  ;;  %v11161_v19 = vrot.slane %v11160_v4, 1  ;;  %v11225_v11 = vrot.slane %v11224_v30, 1  ;;  %v11019_v7 = vrot.slane %v11018_v59, 4 }
 0x447   : > { %v10756_v51 = vmax.f32 %v10754_v2, %v10755_v45  ;;  %v10821_v43 = vmax.f32 %v10819_v39, %v10820_v31  ;;  %v10886_v1 = vmax.f32 %v10884_v22, %v10885_v28  ;;  %v10951_v48 = vmax.f32 %v10949_v34, %v10950_v6  ;;  %v19024_v26 = vpop.f32.mrb[28].mxu1 }
 0x448   : > { %v11098_v8 = vmax.f32 %v11096_v57, %v11097_v17  ;;  %v11162_v13 = vmax.f32 %v11160_v4, %v11161_v19  ;;  %v11226_v62 = vmax.f32 %v11224_v30, %v11225_v11  ;;  %v11020_v0 = vmax.f32 %v11018_v59, %v11019_v7  ;;  %v19037_v9 = vpop.f32.mrb[29].mxu1  ;;  %v19039_v2 = vpop.f32.mrb[28].mxu0 }
 0x449   : > { %v10757_v32 = vrot.slane %v10756_v51, 1  ;;  %v10822_v49 = vrot.slane %v10821_v43, 1  ;;  %v10887_v10 = vrot.slane %v10886_v1, 1  ;;  %v10952_v29 = vrot.slane %v10951_v48, 1  ;;  %v19041_v4 = vpop.f32.mrb[29].mxu0 }
 0x44a   : > { %11136 = vst [vmem:[%s18884_s27 + $0x15] sm:$0x1] %v11098_v8  ;;  %11200 = vst [vmem:[%s18884_s27 + $0x16] sm:$0x1] %v11162_v13  ;;  %v11021_v3 = vrot.slane %v11020_v0, 2  ;;  %v10719_v12 = vmax.f32 %v18910_v36, %v18978_v21  ;;  %v10717_v60 = vmax.f32 %v18917_v46, %v18985_v33  ;;  %v19035_v38 = vadd.f32 %v18947_v5, %v18942_v25 }
 0x44b   : > { %11264 = vst [vmem:[%s18884_s27 + $0x17] sm:$0x1] %v11226_v62  ;;  %v10758_v39 = vmax.f32 %v10756_v51, %v10757_v32  ;;  %v10823_v22 = vmax.f32 %v10821_v43, %v10822_v49  ;;  %v10888_v34 = vmax.f32 %v10886_v1, %v10887_v10  ;;  %v10953_v57 = vmax.f32 %v10951_v48, %v10952_v29 }
 0x44c   : > { %v11022_v36 = vmax.f32 %v11020_v0, %v11021_v3  ;;  %v10720_v30 = vmax.f32 %v10719_v12, %v18920_v47  ;;  %v10718_v46 = vmax.f32 %v10717_v60, %v18925_v20  ;;  %v19047_v59 = vadd.f32 %v18949_v58, %v18945_v27  ;;  %v19069_v27 = vpop.f32.mrb[30].mxu1 }
 0x44d   : > { %10796 = vst [vmem:[%s18884_s27 + $0x10] sm:$0x1] %v10758_v39  ;;  %10861 = vst [vmem:[%s18884_s27 + $0x11] sm:$0x1] %v10823_v22  ;;  %v19055_v25 = vadd.f32 %v18955_v40, %v18951_v61  ;;  %v19059_v5 = vadd.f32 %v18957_v54, %v18953_v52  ;;  %v19063_v47 = vadd.f32 %v18963_v44, %v18959_v23  ;;  %v19074_v52 = vpop.f32.mrb[31].mxu1  ;;  %v19076_v54 = vpop.f32.mrb[30].mxu0 }
 0x44e   : > { %10926 = vst [vmem:[%s18884_s27 + $0x12] sm:$0x1] %v10888_v34  ;;  %10991 = vst [vmem:[%s18884_s27 + $0x13] sm:$0x1] %v10953_v57  ;;  %v19067_v20 = vadd.f32 %v18980_v53, %v18961_v63  ;;  %v11023_v58 = vrot.slane %v11022_v36, 1  ;;  %v11026_v45 = vsel %vm10737_vm1, %v10720_v30, -inf }
 0x44f   : > { %v11099_v61 = vsel %vm10802_vm2, %v10720_v30, -inf  ;;  %v11163_v40 = vsel %vm10867_vm3, %v10720_v30, -inf  ;;  %v11227_v31 = vsel %vm10932_vm4, %v10720_v30, -inf  ;;  %v10759_v63 = vsel %vm10737_vm1, %v10718_v46, -inf  ;;  %v19080_v53 = vpop.f32.mrb[31].mxu0 }
 0x450   : > { %v11100_v23 = vrot.slane %v11099_v61, 4  ;;  %v11164_v44 = vrot.slane %v11163_v40, 4  ;;  %v11024_v28 = vmax.f32 %v11022_v36, %v11023_v58  ;;  %v11228_v6 = vrot.slane %v11227_v31, 4 }
 0x451   : > { %v10760_v17 = vrot.slane %v10759_v63, 4  ;;  %v10824_v19 = vsel %vm10802_vm2, %v10718_v46, -inf  ;;  %v10889_v43 = vsel %vm10867_vm3, %v10718_v46, -inf  ;;  %v10954_v13 = vsel %vm10932_vm4, %v10718_v46, -inf }
 0x452   : > { %v11101_v11 = vmax.f32 %v11099_v61, %v11100_v23  ;;  %v11165_v7 = vmax.f32 %v11163_v40, %v11164_v44  ;;  %v10825_v51 = vrot.slane %v10824_v19, 4  ;;  %11072 = vst [vmem:[%s18884_s27 + $0x14] sm:$0x1] %v11024_v28  ;;  %v11229_v1 = vmax.f32 %v11227_v31, %v11228_v6 }
 0x453   : > { %v10761_v48 = vmax.f32 %v10759_v63, %v10760_v17  ;;  %v10890_v8 = vrot.slane %v10889_v43, 4  ;;  %v10955_v49 = vrot.slane %v10954_v13, 4  ;;  %v11025_v12 = vsel %vm10997_vm5, %v10718_v46, -inf }
 0x454   : > { %v11102_v62 = vrot.slane %v11101_v11, 2  ;;  %v11166_v0 = vrot.slane %v11165_v7, 2  ;;  %v10826_v32 = vmax.f32 %v10824_v19, %v10825_v51  ;;  %v11230_v10 = vrot.slane %v11229_v1, 2 }
 0x455   : > { %v10762_v29 = vrot.slane %v10761_v48, 2  ;;  %v10891_v3 = vmax.f32 %v10889_v43, %v10890_v8  ;;  %v10956_v34 = vmax.f32 %v10954_v13, %v10955_v49  ;;  %v11027_v58 = vmax.f32 %v11025_v12, %v11026_v45 }
 0x456   : > { %v11103_v60 = vmax.f32 %v11101_v11, %v11102_v62  ;;  %v11167_v39 = vmax.f32 %v11165_v7, %v11166_v0  ;;  %v10827_v22 = vrot.slane %v10826_v32, 2  ;;  %v11231_v57 = vmax.f32 %v11229_v1, %v11230_v10 }
 0x457   : > { %v10763_v36 = vmax.f32 %v10761_v48, %v10762_v29  ;;  %v10892_v30 = vrot.slane %v10891_v3, 2  ;;  %v10957_v44 = vrot.slane %v10956_v34, 2  ;;  %v11028_v6 = vrot.slane %v11027_v58, 4 }
 0x458   : > { %v11104_v61 = vrot.slane %v11103_v60, 1  ;;  %v11168_v40 = vrot.slane %v11167_v39, 1  ;;  %v10828_v23 = vmax.f32 %v10826_v32, %v10827_v22  ;;  %v11232_v31 = vrot.slane %v11231_v57, 1 }
 0x459   : > { %v10764_v63 = vrot.slane %v10763_v36, 1  ;;  %v10893_v28 = vmax.f32 %v10891_v3, %v10892_v30  ;;  %v10958_v11 = vmax.f32 %v10956_v34, %v10957_v44  ;;  %v11029_v43 = vmax.f32 %v11027_v58, %v11028_v6 }
 0x45a   : > { %v11105_v46 = vmax.f32 %v11103_v60, %v11104_v61  ;;  %v11169_v17 = vmax.f32 %v11167_v39, %v11168_v40  ;;  %v10829_v19 = vrot.slane %v10828_v23, 1  ;;  %v11233_v7 = vmax.f32 %v11231_v57, %v11232_v31 }
 0x45b   : > { %v10765_v51 = vmax.f32 %v10763_v36, %v10764_v63  ;;  %v10894_v45 = vrot.slane %v10893_v28, 1  ;;  %v10959_v48 = vrot.slane %v10958_v11, 1  ;;  %v10723_v8 = vmax.f32 %v18978_v21, %v19055_v25 }
 0x45c   : > { %11137 = vst [vmem:[%s18884_s27 + $0x1d] sm:$0x1] %v11105_v46  ;;  %11201 = vst [vmem:[%s18884_s27 + $0x1e] sm:$0x1] %v11169_v17  ;;  %v10830_v1 = vmax.f32 %v10828_v23, %v10829_v19  ;;  %v10721_v13 = vmax.f32 %v18985_v33, %v19059_v5  ;;  %v11030_v0 = vrot.slane %v11029_v43, 2  ;;  %v19097_v32 = vadd.f32 %v18998_v50, %v18992_v56 }
 0x45d   : > { %11265 = vst [vmem:[%s18884_s27 + $0x1f] sm:$0x1] %v11233_v7  ;;  %10797 = vst [vmem:[%s18884_s27 + $0x18] sm:$0x1] %v10765_v51  ;;  %v10895_v62 = vmax.f32 %v10893_v28, %v10894_v45  ;;  %v19101_v49 = vadd.f32 %v19004_v15, %v18996_v14  ;;  %v10960_v10 = vmax.f32 %v10958_v11, %v10959_v48 }
 0x45e   : > { %10862 = vst [vmem:[%s18884_s27 + $0x19] sm:$0x1] %v10830_v1  ;;  %v10724_v21 = vmax.f32 %v10723_v8, %v19035_v38  ;;  %v10722_v29 = vmax.f32 %v10721_v13, %v19047_v59  ;;  %v19108_v33 = vadd.f32 %v19012_v42, %v19006_v35  ;;  %v11031_v3 = vmax.f32 %v11029_v43, %v11030_v0 }
 0x45f   : > { %10927 = vst [vmem:[%s18884_s27 + $0x1a] sm:$0x1] %v10895_v62  ;;  %v10727_v56 = vmax.f32 %v19055_v25, %v19097_v32  ;;  %v10725_v50 = vmax.f32 %v19059_v5, %v19101_v49  ;;  %v19117_v14 = vadd.f32 %v19014_v24, %v19010_v16  ;;  %10992 = vst [vmem:[%s18884_s27 + $0x1b] sm:$0x1] %v10960_v10 }
 0x460   : > { %v11035_v15 = vsel %vm10737_vm1, %v10724_v21, -inf  ;;  %v11106_v38 = vsel %vm10802_vm2, %v10724_v21, -inf  ;;  %v11170_v35 = vsel %vm10867_vm3, %v10724_v21, -inf  ;;  %v11234_v42 = vsel %vm10932_vm4, %v10724_v21, -inf }
 0x461   : > { %v11032_v59 = vrot.slane %v11031_v3, 1  ;;  %v11107_v12 = vrot.slane %v11106_v38, 4  ;;  %v11171_v25 = vrot.slane %v11170_v35, 4  ;;  %v11235_v60 = vrot.slane %v11234_v42, 4 }
 0x462   : > { %v10766_v5 = vsel %vm10737_vm1, %v10722_v29, -inf  ;;  %v10831_v39 = vsel %vm10802_vm2, %v10722_v29, -inf  ;;  %v10896_v16 = vsel %vm10867_vm3, %v10722_v29, -inf  ;;  %v10961_v24 = vsel %vm10932_vm4, %v10722_v29, -inf }
 0x463   : > { %v11033_v22 = vmax.f32 %v11031_v3, %v11032_v59  ;;  %v11108_v34 = vmax.f32 %v11106_v38, %v11107_v12  ;;  %v11172_v57 = vmax.f32 %v11170_v35, %v11171_v25  ;;  %v11236_v36 = vmax.f32 %v11234_v42, %v11235_v60 }
 0x464   : > { %v10767_v30 = vrot.slane %v10766_v5, 4  ;;  %v10832_v58 = vrot.slane %v10831_v39, 4  ;;  %v10897_v61 = vrot.slane %v10896_v16, 4  ;;  %v10962_v40 = vrot.slane %v10961_v24, 4 }
 0x465   : > { %11073 = vst [vmem:[%s18884_s27 + $0x1c] sm:$0x1] %v11033_v22  ;;  %v11109_v23 = vrot.slane %v11108_v34, 2  ;;  %v11173_v44 = vrot.slane %v11172_v57, 2  ;;  %v11237_v31 = vrot.slane %v11236_v36, 2  ;;  %v11034_v63 = vsel %vm10997_vm5, %v10722_v29, -inf }
 0x466   : > { %v10768_v28 = vmax.f32 %v10766_v5, %v10767_v30  ;;  %v10833_v6 = vmax.f32 %v10831_v39, %v10832_v58  ;;  %v10898_v46 = vmax.f32 %v10896_v16, %v10897_v61  ;;  %v10963_v17 = vmax.f32 %v10961_v24, %v10962_v40 }
 0x467   : > { %v11110_v19 = vmax.f32 %v11108_v34, %v11109_v23  ;;  %v11174_v11 = vmax.f32 %v11172_v57, %v11173_v44  ;;  %v11238_v7 = vmax.f32 %v11236_v36, %v11237_v31  ;;  %v11036_v51 = vmax.f32 %v11034_v63, %v11035_v15 }
 0x468   : > { %v10769_v45 = vrot.slane %v10768_v28, 2  ;;  %v10834_v43 = vrot.slane %v10833_v6, 2  ;;  %v10899_v1 = vrot.slane %v10898_v46, 2  ;;  %v10964_v48 = vrot.slane %v10963_v17, 2 }
 0x469   : > { %v11111_v8 = vrot.slane %v11110_v19, 1  ;;  %v11175_v13 = vrot.slane %v11174_v11, 1  ;;  %v11239_v62 = vrot.slane %v11238_v7, 1  ;;  %v11037_v0 = vrot.slane %v11036_v51, 4 }
 0x46a   : > { %v10770_v10 = vmax.f32 %v10768_v28, %v10769_v45  ;;  %v10835_v21 = vmax.f32 %v10833_v6, %v10834_v43  ;;  %v10900_v29 = vmax.f32 %v10898_v46, %v10899_v1  ;;  %v10965_v3 = vmax.f32 %v10963_v17, %v10964_v48 }
 0x46b   : > { %v11112_v38 = vmax.f32 %v11110_v19, %v11111_v8  ;;  %v11176_v35 = vmax.f32 %v11174_v11, %v11175_v13  ;;  %v11240_v42 = vmax.f32 %v11238_v7, %v11239_v62  ;;  %v11038_v59 = vmax.f32 %v11036_v51, %v11037_v0 }
 0x46c   : > { %v10771_v15 = vrot.slane %v10770_v10, 1  ;;  %v10836_v12 = vrot.slane %v10835_v21, 1  ;;  %v10901_v25 = vrot.slane %v10900_v29, 1  ;;  %v10966_v60 = vrot.slane %v10965_v3, 1 }
 0x46d   : > { %11138 = vst [vmem:[%s18884_s27 + $0x25] sm:$0x1] %v11112_v38  ;;  %11202 = vst [vmem:[%s18884_s27 + $0x26] sm:$0x1] %v11176_v35  ;;  %v11039_v5 = vrot.slane %v11038_v59, 2  ;;  %v10728_v39 = vmax.f32 %v10727_v56, %v19063_v47  ;;  %v10726_v16 = vmax.f32 %v10725_v50, %v19067_v20  ;;  %v19137_v24 = vadd.f32 %v19020_v37, %v19016_v41 }
 0x46e   : > { %11266 = vst [vmem:[%s18884_s27 + $0x27] sm:$0x1] %v11240_v42  ;;  %v10772_v22 = vmax.f32 %v10770_v10, %v10771_v15  ;;  %v10837_v34 = vmax.f32 %v10835_v21, %v10836_v12  ;;  %v10902_v57 = vmax.f32 %v10900_v29, %v10901_v25  ;;  %v10967_v36 = vmax.f32 %v10965_v3, %v10966_v60 }
 0x46f   : > { %v11040_v30 = vmax.f32 %v11038_v59, %v11039_v5  ;;  %v11044_v58 = vsel %vm10737_vm1, %v10728_v39, -inf  ;;  %v11113_v61 = vsel %vm10802_vm2, %v10728_v39, -inf  ;;  %v11177_v40 = vsel %vm10867_vm3, %v10728_v39, -inf }
 0x470   : > { %10798 = vst [vmem:[%s18884_s27 + $0x20] sm:$0x1] %v10772_v22  ;;  %10863 = vst [vmem:[%s18884_s27 + $0x21] sm:$0x1] %v10837_v34  ;;  %v11114_v47 = vrot.slane %v11113_v61, 4  ;;  %v11178_v20 = vrot.slane %v11177_v40, 4 }
 0x471   : > { %10928 = vst [vmem:[%s18884_s27 + $0x22] sm:$0x1] %v10902_v57  ;;  %10993 = vst [vmem:[%s18884_s27 + $0x23] sm:$0x1] %v10967_v36  ;;  %v11241_v41 = vsel %vm10932_vm4, %v10728_v39, -inf  ;;  %v10773_v37 = vsel %vm10737_vm1, %v10726_v16, -inf }
 0x472   : > { %v11041_v56 = vrot.slane %v11040_v30, 1  ;;  %v11242_v50 = vrot.slane %v11241_v41, 4  ;;  %v10774_v23 = vrot.slane %v10773_v37, 4  ;;  %v10838_v44 = vsel %vm10802_vm2, %v10726_v16, -inf }
 0x473   : > { %v11115_v31 = vmax.f32 %v11113_v61, %v11114_v47  ;;  %v11179_v63 = vmax.f32 %v11177_v40, %v11178_v20  ;;  %v10839_v28 = vrot.slane %v10838_v44, 4  ;;  %v10903_v6 = vsel %vm10867_vm3, %v10726_v16, -inf }
 0x474   : > { %v11042_v46 = vmax.f32 %v11040_v30, %v11041_v56  ;;  %v11243_v17 = vmax.f32 %v11241_v41, %v11242_v50  ;;  %v10775_v19 = vmax.f32 %v10773_v37, %v10774_v23  ;;  %v10904_v11 = vrot.slane %v10903_v6, 4 }
 0x475   : > { %v11116_v7 = vrot.slane %v11115_v31, 2  ;;  %v11180_v51 = vrot.slane %v11179_v63, 2  ;;  %v10840_v45 = vmax.f32 %v10838_v44, %v10839_v28  ;;  %v10968_v43 = vsel %vm10932_vm4, %v10726_v16, -inf }
 0x476   : > { %11074 = vst [vmem:[%s18884_s27 + $0x24] sm:$0x1] %v11042_v46  ;;  %v11244_v1 = vrot.slane %v11243_v17, 2  ;;  %v10776_v48 = vrot.slane %v10775_v19, 2  ;;  %v10905_v8 = vmax.f32 %v10903_v6, %v10904_v11  ;;  %v10969_v13 = vrot.slane %v10968_v43, 4 }
 0x477   : > { %v11117_v62 = vmax.f32 %v11115_v31, %v11116_v7  ;;  %v11181_v0 = vmax.f32 %v11179_v63, %v11180_v51  ;;  %v10841_v10 = vrot.slane %v10840_v45, 2  ;;  %v11043_v21 = vsel %vm10997_vm5, %v10726_v16, -inf }
 0x478   : > { %v11245_v29 = vmax.f32 %v11243_v17, %v11244_v1  ;;  %v10777_v3 = vmax.f32 %v10775_v19, %v10776_v48  ;;  %v10906_v38 = vrot.slane %v10905_v8, 2  ;;  %v10970_v35 = vmax.f32 %v10968_v43, %v10969_v13 }
 0x479   : > { %v11118_v42 = vrot.slane %v11117_v62, 1  ;;  %v11182_v59 = vrot.slane %v11181_v0, 1  ;;  %v10842_v15 = vmax.f32 %v10840_v45, %v10841_v10  ;;  %v11045_v12 = vmax.f32 %v11043_v21, %v11044_v58 }
 0x47a   : > { %v11246_v25 = vrot.slane %v11245_v29, 1  ;;  %v10778_v60 = vrot.slane %v10777_v3, 1  ;;  %v10907_v5 = vmax.f32 %v10905_v8, %v10906_v38  ;;  %v10971_v39 = vrot.slane %v10970_v35, 2 }
 0x47b   : > { %v11119_v22 = vmax.f32 %v11117_v62, %v11118_v42  ;;  %v11183_v34 = vmax.f32 %v11181_v0, %v11182_v59  ;;  %v10843_v57 = vrot.slane %v10842_v15, 1  ;;  %v11046_v16 = vrot.slane %v11045_v12, 4 }
 0x47c   : > { %v11247_v36 = vmax.f32 %v11245_v29, %v11246_v25  ;;  %v10779_v30 = vmax.f32 %v10777_v3, %v10778_v60  ;;  %v10908_v61 = vrot.slane %v10907_v5, 1  ;;  %v10972_v40 = vmax.f32 %v10970_v35, %v10971_v39 }
 0x47d   : > { %11139 = vst [vmem:[%s18884_s27 + $0x2d] sm:$0x1] %v11119_v22  ;;  %11203 = vst [vmem:[%s18884_s27 + $0x2e] sm:$0x1] %v11183_v34  ;;  %v10844_v47 = vmax.f32 %v10842_v15, %v10843_v57  ;;  %v11047_v58 = vmax.f32 %v11045_v12, %v11046_v16  ;;  %v10731_v20 = vmax.f32 %v19097_v32, %v19137_v24 }
 0x47e   : > { %v19159_v41 = vadd.f32 %v19022_v18, %v19018_v55  ;;  %11267 = vst [vmem:[%s18884_s27 + $0x2f] sm:$0x1] %v11247_v36  ;;  %10799 = vst [vmem:[%s18884_s27 + $0x28] sm:$0x1] %v10779_v30  ;;  %v10909_v37 = vmax.f32 %v10907_v5, %v10908_v61  ;;  %v10973_v56 = vrot.slane %v10972_v40, 1  ;;  %v19165_v50 = vadd.f32 %v19039_v2, %v19024_v26 }
 0x47f   : > { %v19169_v23 = vadd.f32 %v19041_v4, %v19037_v9  ;;  %10864 = vst [vmem:[%s18884_s27 + $0x29] sm:$0x1] %v10844_v47  ;;  %v11048_v44 = vrot.slane %v11047_v58, 2  ;;  %v10732_v32 = vmax.f32 %v10731_v20, %v19108_v33  ;;  %v19177_v18 = vadd.f32 %v19076_v54, %v19069_v27 }
 0x480   : > { %v10729_v55 = vmax.f32 %v19101_v49, %v19159_v41  ;;  %10929 = vst [vmem:[%s18884_s27 + $0x2a] sm:$0x1] %v10909_v37  ;;  %v10974_v31 = vmax.f32 %v10972_v40, %v10973_v56  ;;  %v15123_v26 = vadd.f32 %v19080_v53, %v19074_v52 }
 0x481   : > { %v11049_v2 = vmax.f32 %v11047_v58, %v11048_v44  ;;  %v11053_v9 = vsel %vm10737_vm1, %v10732_v32, -inf  ;;  %v11120_v4 = vsel %vm10802_vm2, %v10732_v32, -inf  ;;  %v11184_v63 = vsel %vm10867_vm3, %v10732_v32, -inf }
 0x482   : > { %10994 = vst [vmem:[%s18884_s27 + $0x2b] sm:$0x1] %v10974_v31  ;;  %v11121_v33 = vrot.slane %v11120_v4, 4  ;;  %v11185_v28 = vrot.slane %v11184_v63, 4  ;;  %v11248_v49 = vsel %vm10932_vm4, %v10732_v32, -inf  ;;  %v10730_v27 = vmax.f32 %v10729_v55, %v19117_v14 }
 0x483   : > { %v11050_v54 = vrot.slane %v11049_v2, 1  ;;  %v11249_v6 = vrot.slane %v11248_v49, 4  ;;  %v10735_v52 = vmax.f32 %v19137_v24, %v19177_v18  ;;  %v10733_v53 = vmax.f32 %v19159_v41, %v15123_v26 }
 0x484   : > { %v11122_v46 = vmax.f32 %v11120_v4, %v11121_v33  ;;  %v11186_v17 = vmax.f32 %v11184_v63, %v11185_v28  ;;  %v10780_v19 = vsel %vm10737_vm1, %v10730_v27, -inf  ;;  %v10845_v11 = vsel %vm10802_vm2, %v10730_v27, -inf }
 0x485   : > { %v11051_v7 = vmax.f32 %v11049_v2, %v11050_v54  ;;  %v11250_v51 = vmax.f32 %v11248_v49, %v11249_v6  ;;  %v10781_v45 = vrot.slane %v10780_v19, 4  ;;  %v10846_v43 = vrot.slane %v10845_v11, 4 }
 0x486   : > { %v11123_v1 = vrot.slane %v11122_v46, 2  ;;  %v11187_v14 = vrot.slane %v11186_v17, 2  ;;  %v10910_v48 = vsel %vm10867_vm3, %v10730_v27, -inf  ;;  %v10975_v8 = vsel %vm10932_vm4, %v10730_v27, -inf }
 0x487   : > { %11075 = vst [vmem:[%s18884_s27 + $0x2c] sm:$0x1] %v11051_v7  ;;  %v11251_v24 = vrot.slane %v11250_v51, 2  ;;  %v10782_v13 = vmax.f32 %v10780_v19, %v10781_v45  ;;  %v10847_v62 = vmax.f32 %v10845_v11, %v10846_v43  ;;  %v10911_v0 = vrot.slane %v10910_v48, 4 }
 0x488   : > { %v11124_v10 = vmax.f32 %v11122_v46, %v11123_v1  ;;  %v11188_v21 = vmax.f32 %v11186_v17, %v11187_v14  ;;  %v10976_v29 = vrot.slane %v10975_v8, 4  ;;  %v11052_v3 = vsel %vm10997_vm5, %v10730_v27, -inf }
 0x489   : > { %v11252_v38 = vmax.f32 %v11250_v51, %v11251_v24  ;;  %v10783_v35 = vrot.slane %v10782_v13, 2  ;;  %v10848_v42 = vrot.slane %v10847_v62, 2  ;;  %v10912_v59 = vmax.f32 %v10910_v48, %v10911_v0 }
 0x48a   : > { %v11125_v15 = vrot.slane %v11124_v10, 1  ;;  %v11189_v12 = vrot.slane %v11188_v21, 1  ;;  %v10977_v25 = vmax.f32 %v10975_v8, %v10976_v29  ;;  %v11054_v60 = vmax.f32 %v11052_v3, %v11053_v9 }
 0x48b   : > { %v11253_v5 = vrot.slane %v11252_v38, 1  ;;  %v10784_v39 = vmax.f32 %v10782_v13, %v10783_v35  ;;  %v10849_v22 = vmax.f32 %v10847_v62, %v10848_v42  ;;  %v10913_v34 = vrot.slane %v10912_v59, 2 }
 0x48c   : > { %v11126_v57 = vmax.f32 %v11124_v10, %v11125_v15  ;;  %v11190_v16 = vmax.f32 %v11188_v21, %v11189_v12  ;;  %v10978_v36 = vrot.slane %v10977_v25, 2  ;;  %v11055_v30 = vrot.slane %v11054_v60, 4 }
 0x48d   : > { %v11254_v61 = vmax.f32 %v11252_v38, %v11253_v5  ;;  %v10785_v40 = vrot.slane %v10784_v39, 1  ;;  %v10850_v47 = vrot.slane %v10849_v22, 1  ;;  %v10914_v58 = vmax.f32 %v10912_v59, %v10913_v34 }
 0x48e   : > { %11140 = vst [vmem:[%s18884_s27 + $0x35] sm:$0x1] %v11126_v57  ;;  %11204 = vst [vmem:[%s18884_s27 + $0x36] sm:$0x1] %v11190_v16  ;;  %v10979_v20 = vmax.f32 %v10977_v25, %v10978_v36  ;;  %v11056_v41 = vmax.f32 %v11054_v60, %v11055_v30  ;;  %v10736_v37 = vmax.f32 %v10735_v52, %v19165_v50 }
 0x48f   : > { %v10734_v56 = vmax.f32 %v10733_v53, %v19169_v23  ;;  %11268 = vst [vmem:[%s18884_s27 + $0x37] sm:$0x1] %v11254_v61  ;;  %v10786_v44 = vmax.f32 %v10784_v39, %v10785_v40  ;;  %v10851_v32 = vmax.f32 %v10849_v22, %v10850_v47  ;;  %v10915_v55 = vrot.slane %v10914_v58, 1 }
 0x490   : > { %v10980_v18 = vrot.slane %v10979_v20, 1  ;;  %v11057_v31 = vrot.slane %v11056_v41, 2  ;;  %v11062_v26 = vsel %vm10737_vm1, %v10736_v37, -inf  ;;  %v11127_v2 = vsel %vm10802_vm2, %v10736_v37, -inf }
 0x491   : > { %10800 = vst [vmem:[%s18884_s27 + $0x30] sm:$0x1] %v10786_v44  ;;  %10865 = vst [vmem:[%s18884_s27 + $0x31] sm:$0x1] %v10851_v32  ;;  %v10916_v9 = vmax.f32 %v10914_v58, %v10915_v55  ;;  %v11128_v4 = vrot.slane %v11127_v2, 4  ;;  %v11191_v50 = vsel %vm10867_vm3, %v10736_v37, -inf }
 0x492   : > { %v11255_v23 = vsel %vm10932_vm4, %v10736_v37, -inf  ;;  %v10981_v63 = vmax.f32 %v10979_v20, %v10980_v18  ;;  %v11058_v33 = vmax.f32 %v11056_v41, %v11057_v31  ;;  %v11192_v28 = vrot.slane %v11191_v50, 4 }
 0x493   : > { %v11256_v49 = vrot.slane %v11255_v23, 4  ;;  %10930 = vst [vmem:[%s18884_s27 + $0x32] sm:$0x1] %v10916_v9  ;;  %v11129_v27 = vmax.f32 %v11127_v2, %v11128_v4  ;;  %v10787_v54 = vsel %vm10737_vm1, %v10734_v56, -inf  ;;  %v10852_v6 = vsel %vm10802_vm2, %v10734_v56, -inf }
 0x494   : > { %v10917_v52 = vsel %vm10867_vm3, %v10734_v56, -inf  ;;  %10995 = vst [vmem:[%s18884_s27 + $0x33] sm:$0x1] %v10981_v63  ;;  %v11059_v53 = vrot.slane %v11058_v33, 1  ;;  %v11193_v46 = vmax.f32 %v11191_v50, %v11192_v28  ;;  %v10788_v19 = vrot.slane %v10787_v54, 4 }
 0x495   : > { %v11257_v17 = vmax.f32 %v11255_v23, %v11256_v49  ;;  %v11130_v11 = vrot.slane %v11129_v27, 2  ;;  %v10853_v7 = vrot.slane %v10852_v6, 4  ;;  %v10918_v51 = vrot.slane %v10917_v52, 4 }
 0x496   : > { %v10982_v45 = vsel %vm10932_vm4, %v10734_v56, -inf  ;;  %v11060_v43 = vmax.f32 %v11058_v33, %v11059_v53  ;;  %v11194_v1 = vrot.slane %v11193_v46, 2  ;;  %v10789_v48 = vmax.f32 %v10787_v54, %v10788_v19 }
 0x497   : > { %v11258_v14 = vrot.slane %v11257_v17, 2  ;;  %v11131_v8 = vmax.f32 %v11129_v27, %v11130_v11  ;;  %v10854_v24 = vmax.f32 %v10852_v6, %v10853_v7  ;;  %v10919_v13 = vmax.f32 %v10917_v52, %v10918_v51 }
 0x498   : > { %v10983_v62 = vrot.slane %v10982_v45, 4  ;;  %11076 = vst [vmem:[%s18884_s27 + $0x34] sm:$0x1] %v11060_v43  ;;  %v11195_v0 = vmax.f32 %v11193_v46, %v11194_v1  ;;  %v10790_v21 = vrot.slane %v10789_v48, 2  ;;  %v11061_v29 = vsel %vm10997_vm5, %v10734_v56, -inf }
 0x499   : > { %v11259_v10 = vmax.f32 %v11257_v17, %v11258_v14  ;;  %v11132_v3 = vrot.slane %v11131_v8, 1  ;;  %v10855_v38 = vrot.slane %v10854_v24, 2  ;;  %v10920_v35 = vrot.slane %v10919_v13, 2 }
 0x49a   : > { %v10984_v42 = vmax.f32 %v10982_v45, %v10983_v62  ;;  %v11196_v59 = vrot.slane %v11195_v0, 1  ;;  %v10791_v12 = vmax.f32 %v10789_v48, %v10790_v21  ;;  %v11063_v25 = vmax.f32 %v11061_v29, %v11062_v26 }
 0x49b   : > { %v11260_v15 = vrot.slane %v11259_v10, 1  ;;  %v11133_v60 = vmax.f32 %v11131_v8, %v11132_v3  ;;  %v10856_v5 = vmax.f32 %v10854_v24, %v10855_v38  ;;  %v10921_v39 = vmax.f32 %v10919_v13, %v10920_v35 }
 0x49c   : > { %v10985_v22 = vrot.slane %v10984_v42, 2  ;;  %v11197_v34 = vmax.f32 %v11195_v0, %v11196_v59  ;;  %v10792_v16 = vrot.slane %v10791_v12, 1  ;;  %v11064_v36 = vrot.slane %v11063_v25, 4 }
 0x49d   : > { %v11261_v57 = vmax.f32 %v11259_v10, %v11260_v15  ;;  %11141 = vst [vmem:[%s18884_s27 + $0x3d] sm:$0x1] %v11133_v60  ;;  %v10857_v30 = vrot.slane %v10856_v5, 1  ;;  %v10922_v61 = vrot.slane %v10921_v39, 1 }
 0x49e   : > { %v10986_v40 = vmax.f32 %v10984_v42, %v10985_v22  ;;  %11205 = vst [vmem:[%s18884_s27 + $0x3e] sm:$0x1] %v11197_v34  ;;  %v10793_v47 = vmax.f32 %v10791_v12, %v10792_v16  ;;  %v11065_v58 = vmax.f32 %v11063_v25, %v11064_v36 }
 0x49f   : > { %11269 = vst [vmem:[%s18884_s27 + $0x3f] sm:$0x1] %v11261_v57  ;;  %v10858_v20 = vmax.f32 %v10856_v5, %v10857_v30  ;;  %v10923_v41 = vmax.f32 %v10921_v39, %v10922_v61 }
 0x4a0   : > { %v10987_v37 = vrot.slane %v10986_v40, 1  ;;  %10801 = vst [vmem:[%s18884_s27 + $0x38] sm:$0x1] %v10793_v47  ;;  %v11066_v56 = vrot.slane %v11065_v58, 2 }
 0x4a1   : > { %10866 = vst [vmem:[%s18884_s27 + $0x39] sm:$0x1] %v10858_v20  ;;  %10931 = vst [vmem:[%s18884_s27 + $0x3a] sm:$0x1] %v10923_v41 }
 0x4a2   : > { %v10988_v44 = vmax.f32 %v10986_v40, %v10987_v37  ;;  %v11067_v32 = vmax.f32 %v11065_v58, %v11066_v56 }
 0x4a4   : > { %10996 = vst [vmem:[%s18884_s27 + $0x3b] sm:$0x1] %v10988_v44  ;;  %v11068_v55 = vrot.slane %v11067_v32, 1 }
 0x4a6   : > { %v11069_v18 = vmax.f32 %v11067_v32, %v11068_v55 }
 0x4a8   : > { %11077 = vst [vmem:[%s18884_s27 + $0x3c] sm:$0x1] %v11069_v18 }
 0x4a9 PF: > { %s14_s19 = sadd.s32 1, %s16006_s19   ;;  %s19487_s15 = smov %s15998_s17 }
 0x4aa   : > { %p11_p9 = scmp.ge.s32.totalorder %s14_s19, 10   ;;  %s19488_s16 = smov %s16002_s18 }
 0x4ab   : > { %s19489_s17 = smov %s19492_s20  ;;  %s19490_s18 = smov %s19496_s21 }
 0x4ac   :  { %13 = sbr.rel (!%p11_p9) target bundleno = 3 (0x3), region = 104 }

</bundles_post_ra>
